<compile_context>
chip_gen: v6e
topology: v6e:2x2x1
jax: 0.10.0
libtpu: 0.0.40
codegen_flags: <defaults>
</compile_context>

<pallas_src>
import functools

import jax
import jax.numpy as jnp
from jax.experimental import pallas as pl
from jax.experimental.pallas import tpu as pltpu

LRELU_SLOPE = 0.2
IN_EPS = 1e-5
DIS_FILTERS = [64, 128, 256, 512]
KSIZE = 4
PAD = 1


def _conv_in_lrelu(x, w_ref, b_ref, *, L_out, stride, do_norm, do_act):
    """One Conv1d(+InstanceNorm1d)(+LeakyReLU) layer on a single sample.

    x:     (L_in, C_in) float32 value (channel-last).
    w_ref: (K, C_in, C_out) ref, tap-major weights (bf16 for C_in>1, f32 for C_in==1).
    b_ref: (1, C_out) float32 ref.
    Returns (L_out, C_out) float32 value.
    """
    L_in, C_in = x.shape
    K, _, C_out = w_ref.shape

    row = jax.lax.broadcasted_iota(jnp.int32, (L_out, L_in), 0)
    col = jax.lax.broadcasted_iota(jnp.int32, (L_out, L_in), 1)

    acc = jnp.zeros((L_out, C_out), jnp.float32)
    for k in range(K):
        # 0/1 selection matrix: output row l reads input row (stride*l + k - PAD).
        # Out-of-range source rows select nothing -> exactly reproduces zero padding.
        sel = (col == stride * row + (k - PAD)).astype(jnp.float32)
        tap = jnp.dot(sel, x, preferred_element_type=jnp.float32)       # (L_out, C_in)
        w_k = w_ref[k]                                                   # (C_in, C_out)
        if C_in == 1:
            # Layer 1: contraction dim is 1 -> cheaper/cleaner as a VPU broadcast-mul.
            acc = acc + tap * w_k.astype(jnp.float32)
        else:
            acc = acc + jnp.dot(tap.astype(jnp.bfloat16), w_k,
                                preferred_element_type=jnp.float32)

    y = acc + b_ref[...]                                                 # bias (f32)

    if do_norm:
        # InstanceNorm1d (PyTorch defaults): per (sample, channel) stats over length,
        # biased variance, eps=1e-5, no affine.  Computed in float32.
        mean = jnp.mean(y, axis=0, keepdims=True)
        var = jnp.mean(jnp.square(y - mean), axis=0, keepdims=True)
        y = (y - mean) * jax.lax.rsqrt(var + IN_EPS)
    if do_act:
        y = jnp.where(y > 0, y, LRELU_SLOPE * y)                         # LeakyReLU(0.2)
    return y


def _discriminator_kernel(x_ref, w1, b1, w2, b2, w3, b3, w4, b4, w5, b5, o_ref,
                          *, layer_cfg):
    """Whole discriminator for one sample (one grid step).

    x_ref: (1, L, 1)        input sample, channel-last.
    w*/b*: per-layer weights (K, C_in, C_out) / biases (1, C_out).
    o_ref: (1, L_final, 1)  output patch map, channel-last.
    """
    y = x_ref[0].astype(jnp.float32)                    # (L, 1)
    w_refs = (w1, w2, w3, w4, w5)
    b_refs = (b1, b2, b3, b4, b5)
    for (L_out, stride, do_norm, do_act), w_r, b_r in zip(layer_cfg, w_refs, b_refs):
        y = _conv_in_lrelu(y, w_r, b_r, L_out=L_out, stride=stride,
                           do_norm=do_norm, do_act=do_act)
    o_ref[0] = y.astype(o_ref.dtype)                    # (L_final, 1)


def _layer_config(L):
    """(L_out, stride, do_norm, do_act) per layer + final length, PyTorch conv arithmetic."""
    strides = (2, 2, 2, 2, 1)
    norms = (False, True, True, True, False)
    acts = (True, True, True, True, False)
    cfg = []
    L_in = L
    for s, nm, ac in zip(strides, norms, acts):
        L_out = (L_in + 2 * PAD - KSIZE) // s + 1
        cfg.append((L_out, s, nm, ac))
        L_in = L_out
    return tuple(cfg), L_in


def discriminator_forward(x_ncl, params):
    """x_ncl: (N, 1, L) PyTorch NCL layout.  Returns (N, 1, L_final)."""
    N, C, L = x_ncl.shape
    assert C == 1
    layer_cfg, L_final = _layer_config(L)

    x_nlc = jnp.transpose(x_ncl, (0, 2, 1)).astype(jnp.float32)          # (N, L, 1)

    # Flatten params to the kernel's input order.  PyTorch (C_out, C_in, K) weights are
    # converted to tap-major (K, C_in, C_out); bf16 for the MXU except the tiny C_in=1
    # first-layer weight (used on the VPU in f32).  Biases stay f32.
    flat_inputs = [x_nlc]
    in_specs = [pl.BlockSpec((1, L, 1), lambda n: (n, 0, 0))]
    for (w, b) in params:
        c_out, c_in, k = w.shape
        w_dtype = jnp.float32 if c_in == 1 else jnp.bfloat16
        w_t = jnp.transpose(w, (2, 1, 0)).astype(w_dtype)                # (K, C_in, C_out)
        b_r = b.reshape(1, c_out).astype(jnp.float32)
        flat_inputs += [w_t, b_r]
        in_specs += [pl.BlockSpec((k, c_in, c_out), lambda n: (0, 0, 0)),
                     pl.BlockSpec((1, c_out), lambda n: (0, 0))]

    kern = functools.partial(_discriminator_kernel, layer_cfg=layer_cfg)
    out_nlc = pl.pallas_call(
        kern,
        out_shape=jax.ShapeDtypeStruct((N, L_final, 1), jnp.float32),
        grid=(N,),
        in_specs=in_specs,
        out_specs=pl.BlockSpec((1, L_final, 1), lambda n: (n, 0, 0)),
        compiler_params=pltpu.CompilerParams(dimension_semantics=("parallel",)),
    )(*flat_inputs)

    return jnp.transpose(out_nlc, (0, 2, 1))                             # back to NCL


def init_params(key):
    """Deterministic init matching PyTorch Conv1d shapes (uniform(+-1/sqrt(fan_in)))."""
    shapes = [
        (DIS_FILTERS[0], 1, KSIZE),
        (DIS_FILTERS[1], DIS_FILTERS[0], KSIZE),
        (DIS_FILTERS[2], DIS_FILTERS[1], KSIZE),
        (DIS_FILTERS[3], DIS_FILTERS[2], KSIZE),
        (1, DIS_FILTERS[3], KSIZE),
    ]
    params = []
    for co, ci, k in shapes:
        key, kw, kb = jax.random.split(key, 3)
        bound = 1.0 / float(jnp.sqrt(ci * k))
        w = jax.random.uniform(kw, (co, ci, k), jnp.float32, -bound, bound)
        b = jax.random.uniform(kb, (co,), jnp.float32, -bound, bound)
        params.append((w, b))
    return params


if __name__ == "__main__":
    key = jax.random.PRNGKey(0)
    k_param, k_x = jax.random.split(key)
    params = init_params(k_param)

    # Small shape consistent with the module: batch=2, 1 channel, seq=64.
    x = jax.random.normal(k_x, (2, 1, 64), dtype=jnp.float32)

    fwd = jax.jit(discriminator_forward)
    out = fwd(x, params)
    out = jax.block_until_ready(out)
    assert out.shape == (2, 1, 3), out.shape   # 64 -> 32 -> 16 -> 8 -> 4 -> 3
    print("KERNEL_OK")
</pallas_src>

<mosaic_0001>
module attributes {stable_mosaic.version = 11 : i64} {
  func.func @_discriminator_kernel(%arg0: i32, %arg1: memref<1x64x1xf32, #tpu.memory_space<vmem>>, %arg2: memref<4x1x64xf32, #tpu.memory_space<vmem>>, %arg3: memref<1x64xf32, #tpu.memory_space<vmem>>, %arg4: memref<4x64x128xbf16, #tpu.memory_space<vmem>>, %arg5: memref<1x128xf32, #tpu.memory_space<vmem>>, %arg6: memref<4x128x256xbf16, #tpu.memory_space<vmem>>, %arg7: memref<1x256xf32, #tpu.memory_space<vmem>>, %arg8: memref<4x256x512xbf16, #tpu.memory_space<vmem>>, %arg9: memref<1x512xf32, #tpu.memory_space<vmem>>, %arg10: memref<4x512x1xbf16, #tpu.memory_space<vmem>>, %arg11: memref<1x1xf32, #tpu.memory_space<vmem>>, %arg12: memref<1x3x1xf32, #tpu.memory_space<vmem>>) attributes {dimension_semantics = [#tpu.dimension_semantics<parallel>], iteration_bounds = array<i64: 2>, scalar_prefetch = 0 : i64, scratch_operands = 0 : i64, tpu.core_type = #tpu.core_type<tc>, window_params = [{transform_indices = @transform_0, window_bounds = array<i64: 1, 64, 1>}, {pipeline_mode = #tpu.pipeline_mode<synchronous>, transform_indices = @transform_1, window_bounds = array<i64: 4, 1, 64>}, {pipeline_mode = #tpu.pipeline_mode<synchronous>, transform_indices = @transform_2, window_bounds = array<i64: 1, 64>}, {pipeline_mode = #tpu.pipeline_mode<synchronous>, transform_indices = @transform_3, window_bounds = array<i64: 4, 64, 128>}, {pipeline_mode = #tpu.pipeline_mode<synchronous>, transform_indices = @transform_4, window_bounds = array<i64: 1, 128>}, {pipeline_mode = #tpu.pipeline_mode<synchronous>, transform_indices = @transform_5, window_bounds = array<i64: 4, 128, 256>}, {pipeline_mode = #tpu.pipeline_mode<synchronous>, transform_indices = @transform_6, window_bounds = array<i64: 1, 256>}, {pipeline_mode = #tpu.pipeline_mode<synchronous>, transform_indices = @transform_7, window_bounds = array<i64: 4, 256, 512>}, {pipeline_mode = #tpu.pipeline_mode<synchronous>, transform_indices = @transform_8, window_bounds = array<i64: 1, 512>}, {pipeline_mode = #tpu.pipeline_mode<synchronous>, transform_indices = @transform_9, window_bounds = array<i64: 4, 512, 1>}, {pipeline_mode = #tpu.pipeline_mode<synchronous>, transform_indices = @transform_10, window_bounds = array<i64: 1, 1>}, {transform_indices = @transform_11, window_bounds = array<i64: 1, 3, 1>}]} {
    %c0 = arith.constant 0 : index
    %c0_0 = arith.constant 0 : index
    %c0_1 = arith.constant 0 : index
    %0 = vector.load %arg1[%c0, %c0_0, %c0_1] : memref<1x64x1xf32, #tpu.memory_space<vmem>>, vector<1x64x1xf32>
    %1 = vector.shape_cast %0 : vector<1x64x1xf32> to vector<64x1xf32>
    %2 = tpu.iota {dimensions = array<i32: 0>} : vector<32x64xi32>
    %3 = tpu.iota {dimensions = array<i32: 1>} : vector<32x64xi32>
    %cst = arith.constant 0.000000e+00 : f32
    %4 = vector.broadcast %cst : f32 to vector<32x64xf32>
    %c2_i32 = arith.constant 2 : i32
    %5 = vector.broadcast %c2_i32 : i32 to vector<32x64xi32>
    %6 = arith.muli %5, %2 : vector<32x64xi32>
    %c-1_i32 = arith.constant -1 : i32
    %7 = vector.broadcast %c-1_i32 : i32 to vector<32x64xi32>
    %8 = arith.addi %6, %7 : vector<32x64xi32>
    %9 = arith.cmpi eq, %3, %8 : vector<32x64xi32>
    %10 = arith.extui %9 : vector<32x64xi1> to vector<32x64xi32>
    %11 = arith.sitofp %10 : vector<32x64xi32> to vector<32x64xf32>
    %cst_2 = arith.constant dense<0.000000e+00> : vector<32x1xf32>
    %12 = tpu.matmul %11, %1, %cst_2 {dimension_numbers = #tpu.dot_dimension_numbers<[1], [0], [0], [1], [0, 0, 1, 1], [], []>} : vector<32x64xf32>, vector<64x1xf32>, vector<32x1xf32> -> vector<32x1xf32>
    %c0_3 = arith.constant 0 : index
    %c0_4 = arith.constant 0 : index
    %c0_5 = arith.constant 0 : index
    %13 = vector.load %arg2[%c0_3, %c0_4, %c0_5] : memref<4x1x64xf32, #tpu.memory_space<vmem>>, vector<1x1x64xf32>
    %14 = vector.shape_cast %13 : vector<1x1x64xf32> to vector<1x64xf32>
    %15 = vector.broadcast %12 : vector<32x1xf32> to vector<32x64xf32>
    %16 = vector.broadcast %14 : vector<1x64xf32> to vector<32x64xf32>
    %17 = arith.mulf %15, %16 : vector<32x64xf32>
    %18 = arith.addf %4, %17 : vector<32x64xf32>
    %c2_i32_6 = arith.constant 2 : i32
    %19 = vector.broadcast %c2_i32_6 : i32 to vector<32x64xi32>
    %20 = arith.muli %19, %2 : vector<32x64xi32>
    %c0_i32 = arith.constant 0 : i32
    %21 = vector.broadcast %c0_i32 : i32 to vector<32x64xi32>
    %22 = arith.addi %20, %21 : vector<32x64xi32>
    %23 = arith.cmpi eq, %3, %22 : vector<32x64xi32>
    %24 = arith.extui %23 : vector<32x64xi1> to vector<32x64xi32>
    %25 = arith.sitofp %24 : vector<32x64xi32> to vector<32x64xf32>
    %cst_7 = arith.constant dense<0.000000e+00> : vector<32x1xf32>
    %26 = tpu.matmul %25, %1, %cst_7 {dimension_numbers = #tpu.dot_dimension_numbers<[1], [0], [0], [1], [0, 0, 1, 1], [], []>} : vector<32x64xf32>, vector<64x1xf32>, vector<32x1xf32> -> vector<32x1xf32>
    %c1 = arith.constant 1 : index
    %c0_8 = arith.constant 0 : index
    %c0_9 = arith.constant 0 : index
    %27 = vector.load %arg2[%c1, %c0_8, %c0_9] : memref<4x1x64xf32, #tpu.memory_space<vmem>>, vector<1x1x64xf32>
    %28 = vector.shape_cast %27 : vector<1x1x64xf32> to vector<1x64xf32>
    %29 = vector.broadcast %26 : vector<32x1xf32> to vector<32x64xf32>
    %30 = vector.broadcast %28 : vector<1x64xf32> to vector<32x64xf32>
    %31 = arith.mulf %29, %30 : vector<32x64xf32>
    %32 = arith.addf %18, %31 : vector<32x64xf32>
    %c2_i32_10 = arith.constant 2 : i32
    %33 = vector.broadcast %c2_i32_10 : i32 to vector<32x64xi32>
    %34 = arith.muli %33, %2 : vector<32x64xi32>
    %c1_i32 = arith.constant 1 : i32
    %35 = vector.broadcast %c1_i32 : i32 to vector<32x64xi32>
    %36 = arith.addi %34, %35 : vector<32x64xi32>
    %37 = arith.cmpi eq, %3, %36 : vector<32x64xi32>
    %38 = arith.extui %37 : vector<32x64xi1> to vector<32x64xi32>
    %39 = arith.sitofp %38 : vector<32x64xi32> to vector<32x64xf32>
    %cst_11 = arith.constant dense<0.000000e+00> : vector<32x1xf32>
    %40 = tpu.matmul %39, %1, %cst_11 {dimension_numbers = #tpu.dot_dimension_numbers<[1], [0], [0], [1], [0, 0, 1, 1], [], []>} : vector<32x64xf32>, vector<64x1xf32>, vector<32x1xf32> -> vector<32x1xf32>
    %c2 = arith.constant 2 : index
    %c0_12 = arith.constant 0 : index
    %c0_13 = arith.constant 0 : index
    %41 = vector.load %arg2[%c2, %c0_12, %c0_13] : memref<4x1x64xf32, #tpu.memory_space<vmem>>, vector<1x1x64xf32>
    %42 = vector.shape_cast %41 : vector<1x1x64xf32> to vector<1x64xf32>
    %43 = vector.broadcast %40 : vector<32x1xf32> to vector<32x64xf32>
    %44 = vector.broadcast %42 : vector<1x64xf32> to vector<32x64xf32>
    %45 = arith.mulf %43, %44 : vector<32x64xf32>
    %46 = arith.addf %32, %45 : vector<32x64xf32>
    %c2_i32_14 = arith.constant 2 : i32
    %47 = vector.broadcast %c2_i32_14 : i32 to vector<32x64xi32>
    %48 = arith.muli %47, %2 : vector<32x64xi32>
    %c2_i32_15 = arith.constant 2 : i32
    %49 = vector.broadcast %c2_i32_15 : i32 to vector<32x64xi32>
    %50 = arith.addi %48, %49 : vector<32x64xi32>
    %51 = arith.cmpi eq, %3, %50 : vector<32x64xi32>
    %52 = arith.extui %51 : vector<32x64xi1> to vector<32x64xi32>
    %53 = arith.sitofp %52 : vector<32x64xi32> to vector<32x64xf32>
    %cst_16 = arith.constant dense<0.000000e+00> : vector<32x1xf32>
    %54 = tpu.matmul %53, %1, %cst_16 {dimension_numbers = #tpu.dot_dimension_numbers<[1], [0], [0], [1], [0, 0, 1, 1], [], []>} : vector<32x64xf32>, vector<64x1xf32>, vector<32x1xf32> -> vector<32x1xf32>
    %c3 = arith.constant 3 : index
    %c0_17 = arith.constant 0 : index
    %c0_18 = arith.constant 0 : index
    %55 = vector.load %arg2[%c3, %c0_17, %c0_18] : memref<4x1x64xf32, #tpu.memory_space<vmem>>, vector<1x1x64xf32>
    %56 = vector.shape_cast %55 : vector<1x1x64xf32> to vector<1x64xf32>
    %57 = vector.broadcast %54 : vector<32x1xf32> to vector<32x64xf32>
    %58 = vector.broadcast %56 : vector<1x64xf32> to vector<32x64xf32>
    %59 = arith.mulf %57, %58 : vector<32x64xf32>
    %60 = arith.addf %46, %59 : vector<32x64xf32>
    %c0_19 = arith.constant 0 : index
    %c0_20 = arith.constant 0 : index
    %61 = vector.load %arg3[%c0_19, %c0_20] : memref<1x64xf32, #tpu.memory_space<vmem>>, vector<1x64xf32>
    %62 = vector.broadcast %61 : vector<1x64xf32> to vector<32x64xf32>
    %63 = arith.addf %60, %62 : vector<32x64xf32>
    %cst_21 = arith.constant 0.000000e+00 : f32
    %64 = vector.broadcast %cst_21 : f32 to vector<32x64xf32>
    %65 = arith.cmpf ogt, %63, %64 : vector<32x64xf32>
    %cst_22 = arith.constant 2.000000e-01 : f32
    %66 = vector.broadcast %cst_22 : f32 to vector<32x64xf32>
    %67 = arith.mulf %66, %63 : vector<32x64xf32>
    %68 = arith.select %65, %63, %67 : vector<32x64xi1>, vector<32x64xf32>
    %69 = tpu.iota {dimensions = array<i32: 0>} : vector<16x32xi32>
    %70 = tpu.iota {dimensions = array<i32: 1>} : vector<16x32xi32>
    %cst_23 = arith.constant 0.000000e+00 : f32
    %71 = vector.broadcast %cst_23 : f32 to vector<16x128xf32>
    %c2_i32_24 = arith.constant 2 : i32
    %72 = vector.broadcast %c2_i32_24 : i32 to vector<16x32xi32>
    %73 = arith.muli %72, %69 : vector<16x32xi32>
    %c-1_i32_25 = arith.constant -1 : i32
    %74 = vector.broadcast %c-1_i32_25 : i32 to vector<16x32xi32>
    %75 = arith.addi %73, %74 : vector<16x32xi32>
    %76 = arith.cmpi eq, %70, %75 : vector<16x32xi32>
    %77 = arith.extui %76 : vector<16x32xi1> to vector<16x32xi32>
    %78 = arith.sitofp %77 : vector<16x32xi32> to vector<16x32xf32>
    %cst_26 = arith.constant dense<0.000000e+00> : vector<16x64xf32>
    %79 = tpu.matmul %78, %68, %cst_26 {dimension_numbers = #tpu.dot_dimension_numbers<[1], [0], [0], [1], [0, 0, 1, 1], [], []>} : vector<16x32xf32>, vector<32x64xf32>, vector<16x64xf32> -> vector<16x64xf32>
    %c0_27 = arith.constant 0 : index
    %c0_28 = arith.constant 0 : index
    %c0_29 = arith.constant 0 : index
    %80 = vector.load %arg4[%c0_27, %c0_28, %c0_29] : memref<4x64x128xbf16, #tpu.memory_space<vmem>>, vector<1x64x128xbf16>
    %81 = vector.shape_cast %80 : vector<1x64x128xbf16> to vector<64x128xbf16>
    %82 = arith.truncf %79 : vector<16x64xf32> to vector<16x64xbf16>
    %cst_30 = arith.constant dense<0.000000e+00> : vector<16x128xf32>
    %83 = tpu.matmul %82, %81, %cst_30 {dimension_numbers = #tpu.dot_dimension_numbers<[1], [0], [0], [1], [0, 0, 1, 1], [], []>} : vector<16x64xbf16>, vector<64x128xbf16>, vector<16x128xf32> -> vector<16x128xf32>
    %84 = arith.addf %71, %83 : vector<16x128xf32>
    %c2_i32_31 = arith.constant 2 : i32
    %85 = vector.broadcast %c2_i32_31 : i32 to vector<16x32xi32>
    %86 = arith.muli %85, %69 : vector<16x32xi32>
    %c0_i32_32 = arith.constant 0 : i32
    %87 = vector.broadcast %c0_i32_32 : i32 to vector<16x32xi32>
    %88 = arith.addi %86, %87 : vector<16x32xi32>
    %89 = arith.cmpi eq, %70, %88 : vector<16x32xi32>
    %90 = arith.extui %89 : vector<16x32xi1> to vector<16x32xi32>
    %91 = arith.sitofp %90 : vector<16x32xi32> to vector<16x32xf32>
    %cst_33 = arith.constant dense<0.000000e+00> : vector<16x64xf32>
    %92 = tpu.matmul %91, %68, %cst_33 {dimension_numbers = #tpu.dot_dimension_numbers<[1], [0], [0], [1], [0, 0, 1, 1], [], []>} : vector<16x32xf32>, vector<32x64xf32>, vector<16x64xf32> -> vector<16x64xf32>
    %c1_34 = arith.constant 1 : index
    %c0_35 = arith.constant 0 : index
    %c0_36 = arith.constant 0 : index
    %93 = vector.load %arg4[%c1_34, %c0_35, %c0_36] : memref<4x64x128xbf16, #tpu.memory_space<vmem>>, vector<1x64x128xbf16>
    %94 = vector.shape_cast %93 : vector<1x64x128xbf16> to vector<64x128xbf16>
    %95 = arith.truncf %92 : vector<16x64xf32> to vector<16x64xbf16>
    %cst_37 = arith.constant dense<0.000000e+00> : vector<16x128xf32>
    %96 = tpu.matmul %95, %94, %cst_37 {dimension_numbers = #tpu.dot_dimension_numbers<[1], [0], [0], [1], [0, 0, 1, 1], [], []>} : vector<16x64xbf16>, vector<64x128xbf16>, vector<16x128xf32> -> vector<16x128xf32>
    %97 = arith.addf %84, %96 : vector<16x128xf32>
    %c2_i32_38 = arith.constant 2 : i32
    %98 = vector.broadcast %c2_i32_38 : i32 to vector<16x32xi32>
    %99 = arith.muli %98, %69 : vector<16x32xi32>
    %c1_i32_39 = arith.constant 1 : i32
    %100 = vector.broadcast %c1_i32_39 : i32 to vector<16x32xi32>
    %101 = arith.addi %99, %100 : vector<16x32xi32>
    %102 = arith.cmpi eq, %70, %101 : vector<16x32xi32>
    %103 = arith.extui %102 : vector<16x32xi1> to vector<16x32xi32>
    %104 = arith.sitofp %103 : vector<16x32xi32> to vector<16x32xf32>
    %cst_40 = arith.constant dense<0.000000e+00> : vector<16x64xf32>
    %105 = tpu.matmul %104, %68, %cst_40 {dimension_numbers = #tpu.dot_dimension_numbers<[1], [0], [0], [1], [0, 0, 1, 1], [], []>} : vector<16x32xf32>, vector<32x64xf32>, vector<16x64xf32> -> vector<16x64xf32>
    %c2_41 = arith.constant 2 : index
    %c0_42 = arith.constant 0 : index
    %c0_43 = arith.constant 0 : index
    %106 = vector.load %arg4[%c2_41, %c0_42, %c0_43] : memref<4x64x128xbf16, #tpu.memory_space<vmem>>, vector<1x64x128xbf16>
    %107 = vector.shape_cast %106 : vector<1x64x128xbf16> to vector<64x128xbf16>
    %108 = arith.truncf %105 : vector<16x64xf32> to vector<16x64xbf16>
    %cst_44 = arith.constant dense<0.000000e+00> : vector<16x128xf32>
    %109 = tpu.matmul %108, %107, %cst_44 {dimension_numbers = #tpu.dot_dimension_numbers<[1], [0], [0], [1], [0, 0, 1, 1], [], []>} : vector<16x64xbf16>, vector<64x128xbf16>, vector<16x128xf32> -> vector<16x128xf32>
    %110 = arith.addf %97, %109 : vector<16x128xf32>
    %c2_i32_45 = arith.constant 2 : i32
    %111 = vector.broadcast %c2_i32_45 : i32 to vector<16x32xi32>
    %112 = arith.muli %111, %69 : vector<16x32xi32>
    %c2_i32_46 = arith.constant 2 : i32
    %113 = vector.broadcast %c2_i32_46 : i32 to vector<16x32xi32>
    %114 = arith.addi %112, %113 : vector<16x32xi32>
    %115 = arith.cmpi eq, %70, %114 : vector<16x32xi32>
    %116 = arith.extui %115 : vector<16x32xi1> to vector<16x32xi32>
    %117 = arith.sitofp %116 : vector<16x32xi32> to vector<16x32xf32>
    %cst_47 = arith.constant dense<0.000000e+00> : vector<16x64xf32>
    %118 = tpu.matmul %117, %68, %cst_47 {dimension_numbers = #tpu.dot_dimension_numbers<[1], [0], [0], [1], [0, 0, 1, 1], [], []>} : vector<16x32xf32>, vector<32x64xf32>, vector<16x64xf32> -> vector<16x64xf32>
    %c3_48 = arith.constant 3 : index
    %c0_49 = arith.constant 0 : index
    %c0_50 = arith.constant 0 : index
    %119 = vector.load %arg4[%c3_48, %c0_49, %c0_50] : memref<4x64x128xbf16, #tpu.memory_space<vmem>>, vector<1x64x128xbf16>
    %120 = vector.shape_cast %119 : vector<1x64x128xbf16> to vector<64x128xbf16>
    %121 = arith.truncf %118 : vector<16x64xf32> to vector<16x64xbf16>
    %cst_51 = arith.constant dense<0.000000e+00> : vector<16x128xf32>
    %122 = tpu.matmul %121, %120, %cst_51 {dimension_numbers = #tpu.dot_dimension_numbers<[1], [0], [0], [1], [0, 0, 1, 1], [], []>} : vector<16x64xbf16>, vector<64x128xbf16>, vector<16x128xf32> -> vector<16x128xf32>
    %123 = arith.addf %110, %122 : vector<16x128xf32>
    %c0_52 = arith.constant 0 : index
    %c0_53 = arith.constant 0 : index
    %124 = vector.load %arg5[%c0_52, %c0_53] : memref<1x128xf32, #tpu.memory_space<vmem>>, vector<1x128xf32>
    %125 = vector.broadcast %124 : vector<1x128xf32> to vector<16x128xf32>
    %126 = arith.addf %123, %125 : vector<16x128xf32>
    %cst_54 = arith.constant dense<0.000000e+00> : vector<128xf32>
    %127 = vector.multi_reduction <add>, %126, %cst_54 [0] : vector<16x128xf32> to vector<128xf32>
    %128 = vector.shape_cast %127 : vector<128xf32> to vector<1x128xf32>
    %cst_55 = arith.constant 1.600000e+01 : f32
    %129 = vector.broadcast %cst_55 : f32 to vector<1x128xf32>
    %130 = arith.divf %128, %129 : vector<1x128xf32>
    %131 = vector.broadcast %130 : vector<1x128xf32> to vector<16x128xf32>
    %132 = arith.subf %126, %131 : vector<16x128xf32>
    %133 = arith.mulf %132, %132 : vector<16x128xf32>
    %cst_56 = arith.constant dense<0.000000e+00> : vector<128xf32>
    %134 = vector.multi_reduction <add>, %133, %cst_56 [0] : vector<16x128xf32> to vector<128xf32>
    %135 = vector.shape_cast %134 : vector<128xf32> to vector<1x128xf32>
    %cst_57 = arith.constant 1.600000e+01 : f32
    %136 = vector.broadcast %cst_57 : f32 to vector<1x128xf32>
    %137 = arith.divf %135, %136 : vector<1x128xf32>
    %138 = vector.broadcast %130 : vector<1x128xf32> to vector<16x128xf32>
    %139 = arith.subf %126, %138 : vector<16x128xf32>
    %cst_58 = arith.constant 9.99999974E-6 : f32
    %140 = vector.broadcast %cst_58 : f32 to vector<1x128xf32>
    %141 = arith.addf %137, %140 : vector<1x128xf32>
    %142 = math.rsqrt %141 : vector<1x128xf32>
    %143 = vector.broadcast %142 : vector<1x128xf32> to vector<16x128xf32>
    %144 = arith.mulf %139, %143 : vector<16x128xf32>
    %cst_59 = arith.constant 0.000000e+00 : f32
    %145 = vector.broadcast %cst_59 : f32 to vector<16x128xf32>
    %146 = arith.cmpf ogt, %144, %145 : vector<16x128xf32>
    %cst_60 = arith.constant 2.000000e-01 : f32
    %147 = vector.broadcast %cst_60 : f32 to vector<16x128xf32>
    %148 = arith.mulf %147, %144 : vector<16x128xf32>
    %149 = arith.select %146, %144, %148 : vector<16x128xi1>, vector<16x128xf32>
    %150 = tpu.iota {dimensions = array<i32: 0>} : vector<8x16xi32>
    %151 = tpu.iota {dimensions = array<i32: 1>} : vector<8x16xi32>
    %cst_61 = arith.constant 0.000000e+00 : f32
    %152 = vector.broadcast %cst_61 : f32 to vector<8x256xf32>
    %c2_i32_62 = arith.constant 2 : i32
    %153 = vector.broadcast %c2_i32_62 : i32 to vector<8x16xi32>
    %154 = arith.muli %153, %150 : vector<8x16xi32>
    %c-1_i32_63 = arith.constant -1 : i32
    %155 = vector.broadcast %c-1_i32_63 : i32 to vector<8x16xi32>
    %156 = arith.addi %154, %155 : vector<8x16xi32>
    %157 = arith.cmpi eq, %151, %156 : vector<8x16xi32>
    %158 = arith.extui %157 : vector<8x16xi1> to vector<8x16xi32>
    %159 = arith.sitofp %158 : vector<8x16xi32> to vector<8x16xf32>
    %cst_64 = arith.constant dense<0.000000e+00> : vector<8x128xf32>
    %160 = tpu.matmul %159, %149, %cst_64 {dimension_numbers = #tpu.dot_dimension_numbers<[1], [0], [0], [1], [0, 0, 1, 1], [], []>} : vector<8x16xf32>, vector<16x128xf32>, vector<8x128xf32> -> vector<8x128xf32>
    %c0_65 = arith.constant 0 : index
    %c0_66 = arith.constant 0 : index
    %c0_67 = arith.constant 0 : index
    %161 = vector.load %arg6[%c0_65, %c0_66, %c0_67] : memref<4x128x256xbf16, #tpu.memory_space<vmem>>, vector<1x128x256xbf16>
    %162 = vector.shape_cast %161 : vector<1x128x256xbf16> to vector<128x256xbf16>
    %163 = arith.truncf %160 : vector<8x128xf32> to vector<8x128xbf16>
    %cst_68 = arith.constant dense<0.000000e+00> : vector<8x256xf32>
    %164 = tpu.matmul %163, %162, %cst_68 {dimension_numbers = #tpu.dot_dimension_numbers<[1], [0], [0], [1], [0, 0, 1, 1], [], []>} : vector<8x128xbf16>, vector<128x256xbf16>, vector<8x256xf32> -> vector<8x256xf32>
    %165 = arith.addf %152, %164 : vector<8x256xf32>
    %c2_i32_69 = arith.constant 2 : i32
    %166 = vector.broadcast %c2_i32_69 : i32 to vector<8x16xi32>
    %167 = arith.muli %166, %150 : vector<8x16xi32>
    %c0_i32_70 = arith.constant 0 : i32
    %168 = vector.broadcast %c0_i32_70 : i32 to vector<8x16xi32>
    %169 = arith.addi %167, %168 : vector<8x16xi32>
    %170 = arith.cmpi eq, %151, %169 : vector<8x16xi32>
    %171 = arith.extui %170 : vector<8x16xi1> to vector<8x16xi32>
    %172 = arith.sitofp %171 : vector<8x16xi32> to vector<8x16xf32>
    %cst_71 = arith.constant dense<0.000000e+00> : vector<8x128xf32>
    %173 = tpu.matmul %172, %149, %cst_71 {dimension_numbers = #tpu.dot_dimension_numbers<[1], [0], [0], [1], [0, 0, 1, 1], [], []>} : vector<8x16xf32>, vector<16x128xf32>, vector<8x128xf32> -> vector<8x128xf32>
    %c1_72 = arith.constant 1 : index
    %c0_73 = arith.constant 0 : index
    %c0_74 = arith.constant 0 : index
    %174 = vector.load %arg6[%c1_72, %c0_73, %c0_74] : memref<4x128x256xbf16, #tpu.memory_space<vmem>>, vector<1x128x256xbf16>
    %175 = vector.shape_cast %174 : vector<1x128x256xbf16> to vector<128x256xbf16>
    %176 = arith.truncf %173 : vector<8x128xf32> to vector<8x128xbf16>
    %cst_75 = arith.constant dense<0.000000e+00> : vector<8x256xf32>
    %177 = tpu.matmul %176, %175, %cst_75 {dimension_numbers = #tpu.dot_dimension_numbers<[1], [0], [0], [1], [0, 0, 1, 1], [], []>} : vector<8x128xbf16>, vector<128x256xbf16>, vector<8x256xf32> -> vector<8x256xf32>
    %178 = arith.addf %165, %177 : vector<8x256xf32>
    %c2_i32_76 = arith.constant 2 : i32
    %179 = vector.broadcast %c2_i32_76 : i32 to vector<8x16xi32>
    %180 = arith.muli %179, %150 : vector<8x16xi32>
    %c1_i32_77 = arith.constant 1 : i32
    %181 = vector.broadcast %c1_i32_77 : i32 to vector<8x16xi32>
    %182 = arith.addi %180, %181 : vector<8x16xi32>
    %183 = arith.cmpi eq, %151, %182 : vector<8x16xi32>
    %184 = arith.extui %183 : vector<8x16xi1> to vector<8x16xi32>
    %185 = arith.sitofp %184 : vector<8x16xi32> to vector<8x16xf32>
    %cst_78 = arith.constant dense<0.000000e+00> : vector<8x128xf32>
    %186 = tpu.matmul %185, %149, %cst_78 {dimension_numbers = #tpu.dot_dimension_numbers<[1], [0], [0], [1], [0, 0, 1, 1], [], []>} : vector<8x16xf32>, vector<16x128xf32>, vector<8x128xf32> -> vector<8x128xf32>
    %c2_79 = arith.constant 2 : index
    %c0_80 = arith.constant 0 : index
    %c0_81 = arith.constant 0 : index
    %187 = vector.load %arg6[%c2_79, %c0_80, %c0_81] : memref<4x128x256xbf16, #tpu.memory_space<vmem>>, vector<1x128x256xbf16>
    %188 = vector.shape_cast %187 : vector<1x128x256xbf16> to vector<128x256xbf16>
    %189 = arith.truncf %186 : vector<8x128xf32> to vector<8x128xbf16>
    %cst_82 = arith.constant dense<0.000000e+00> : vector<8x256xf32>
    %190 = tpu.matmul %189, %188, %cst_82 {dimension_numbers = #tpu.dot_dimension_numbers<[1], [0], [0], [1], [0, 0, 1, 1], [], []>} : vector<8x128xbf16>, vector<128x256xbf16>, vector<8x256xf32> -> vector<8x256xf32>
    %191 = arith.addf %178, %190 : vector<8x256xf32>
    %c2_i32_83 = arith.constant 2 : i32
    %192 = vector.broadcast %c2_i32_83 : i32 to vector<8x16xi32>
    %193 = arith.muli %192, %150 : vector<8x16xi32>
    %c2_i32_84 = arith.constant 2 : i32
    %194 = vector.broadcast %c2_i32_84 : i32 to vector<8x16xi32>
    %195 = arith.addi %193, %194 : vector<8x16xi32>
    %196 = arith.cmpi eq, %151, %195 : vector<8x16xi32>
    %197 = arith.extui %196 : vector<8x16xi1> to vector<8x16xi32>
    %198 = arith.sitofp %197 : vector<8x16xi32> to vector<8x16xf32>
    %cst_85 = arith.constant dense<0.000000e+00> : vector<8x128xf32>
    %199 = tpu.matmul %198, %149, %cst_85 {dimension_numbers = #tpu.dot_dimension_numbers<[1], [0], [0], [1], [0, 0, 1, 1], [], []>} : vector<8x16xf32>, vector<16x128xf32>, vector<8x128xf32> -> vector<8x128xf32>
    %c3_86 = arith.constant 3 : index
    %c0_87 = arith.constant 0 : index
    %c0_88 = arith.constant 0 : index
    %200 = vector.load %arg6[%c3_86, %c0_87, %c0_88] : memref<4x128x256xbf16, #tpu.memory_space<vmem>>, vector<1x128x256xbf16>
    %201 = vector.shape_cast %200 : vector<1x128x256xbf16> to vector<128x256xbf16>
    %202 = arith.truncf %199 : vector<8x128xf32> to vector<8x128xbf16>
    %cst_89 = arith.constant dense<0.000000e+00> : vector<8x256xf32>
    %203 = tpu.matmul %202, %201, %cst_89 {dimension_numbers = #tpu.dot_dimension_numbers<[1], [0], [0], [1], [0, 0, 1, 1], [], []>} : vector<8x128xbf16>, vector<128x256xbf16>, vector<8x256xf32> -> vector<8x256xf32>
    %204 = arith.addf %191, %203 : vector<8x256xf32>
    %c0_90 = arith.constant 0 : index
    %c0_91 = arith.constant 0 : index
    %205 = vector.load %arg7[%c0_90, %c0_91] : memref<1x256xf32, #tpu.memory_space<vmem>>, vector<1x256xf32>
    %206 = vector.broadcast %205 : vector<1x256xf32> to vector<8x256xf32>
    %207 = arith.addf %204, %206 : vector<8x256xf32>
    %cst_92 = arith.constant dense<0.000000e+00> : vector<256xf32>
    %208 = vector.multi_reduction <add>, %207, %cst_92 [0] : vector<8x256xf32> to vector<256xf32>
    %209 = vector.shape_cast %208 : vector<256xf32> to vector<1x256xf32>
    %cst_93 = arith.constant 8.000000e+00 : f32
    %210 = vector.broadcast %cst_93 : f32 to vector<1x256xf32>
    %211 = arith.divf %209, %210 : vector<1x256xf32>
    %212 = vector.broadcast %211 : vector<1x256xf32> to vector<8x256xf32>
    %213 = arith.subf %207, %212 : vector<8x256xf32>
    %214 = arith.mulf %213, %213 : vector<8x256xf32>
    %cst_94 = arith.constant dense<0.000000e+00> : vector<256xf32>
    %215 = vector.multi_reduction <add>, %214, %cst_94 [0] : vector<8x256xf32> to vector<256xf32>
    %216 = vector.shape_cast %215 : vector<256xf32> to vector<1x256xf32>
    %cst_95 = arith.constant 8.000000e+00 : f32
    %217 = vector.broadcast %cst_95 : f32 to vector<1x256xf32>
    %218 = arith.divf %216, %217 : vector<1x256xf32>
    %219 = vector.broadcast %211 : vector<1x256xf32> to vector<8x256xf32>
    %220 = arith.subf %207, %219 : vector<8x256xf32>
    %cst_96 = arith.constant 9.99999974E-6 : f32
    %221 = vector.broadcast %cst_96 : f32 to vector<1x256xf32>
    %222 = arith.addf %218, %221 : vector<1x256xf32>
    %223 = math.rsqrt %222 : vector<1x256xf32>
    %224 = vector.broadcast %223 : vector<1x256xf32> to vector<8x256xf32>
    %225 = arith.mulf %220, %224 : vector<8x256xf32>
    %cst_97 = arith.constant 0.000000e+00 : f32
    %226 = vector.broadcast %cst_97 : f32 to vector<8x256xf32>
    %227 = arith.cmpf ogt, %225, %226 : vector<8x256xf32>
    %cst_98 = arith.constant 2.000000e-01 : f32
    %228 = vector.broadcast %cst_98 : f32 to vector<8x256xf32>
    %229 = arith.mulf %228, %225 : vector<8x256xf32>
    %230 = arith.select %227, %225, %229 : vector<8x256xi1>, vector<8x256xf32>
    %231 = tpu.iota {dimensions = array<i32: 0>} : vector<4x8xi32>
    %232 = tpu.iota {dimensions = array<i32: 1>} : vector<4x8xi32>
    %cst_99 = arith.constant 0.000000e+00 : f32
    %233 = vector.broadcast %cst_99 : f32 to vector<4x512xf32>
    %c2_i32_100 = arith.constant 2 : i32
    %234 = vector.broadcast %c2_i32_100 : i32 to vector<4x8xi32>
    %235 = arith.muli %234, %231 : vector<4x8xi32>
    %c-1_i32_101 = arith.constant -1 : i32
    %236 = vector.broadcast %c-1_i32_101 : i32 to vector<4x8xi32>
    %237 = arith.addi %235, %236 : vector<4x8xi32>
    %238 = arith.cmpi eq, %232, %237 : vector<4x8xi32>
    %239 = arith.extui %238 : vector<4x8xi1> to vector<4x8xi32>
    %240 = arith.sitofp %239 : vector<4x8xi32> to vector<4x8xf32>
    %cst_102 = arith.constant dense<0.000000e+00> : vector<4x256xf32>
    %241 = tpu.matmul %240, %230, %cst_102 {dimension_numbers = #tpu.dot_dimension_numbers<[1], [0], [0], [1], [0, 0, 1, 1], [], []>} : vector<4x8xf32>, vector<8x256xf32>, vector<4x256xf32> -> vector<4x256xf32>
    %c0_103 = arith.constant 0 : index
    %c0_104 = arith.constant 0 : index
    %c0_105 = arith.constant 0 : index
    %242 = vector.load %arg8[%c0_103, %c0_104, %c0_105] : memref<4x256x512xbf16, #tpu.memory_space<vmem>>, vector<1x256x512xbf16>
    %243 = vector.shape_cast %242 : vector<1x256x512xbf16> to vector<256x512xbf16>
    %244 = arith.truncf %241 : vector<4x256xf32> to vector<4x256xbf16>
    %cst_106 = arith.constant dense<0.000000e+00> : vector<4x512xf32>
    %245 = tpu.matmul %244, %243, %cst_106 {dimension_numbers = #tpu.dot_dimension_numbers<[1], [0], [0], [1], [0, 0, 1, 1], [], []>} : vector<4x256xbf16>, vector<256x512xbf16>, vector<4x512xf32> -> vector<4x512xf32>
    %246 = arith.addf %233, %245 : vector<4x512xf32>
    %c2_i32_107 = arith.constant 2 : i32
    %247 = vector.broadcast %c2_i32_107 : i32 to vector<4x8xi32>
    %248 = arith.muli %247, %231 : vector<4x8xi32>
    %c0_i32_108 = arith.constant 0 : i32
    %249 = vector.broadcast %c0_i32_108 : i32 to vector<4x8xi32>
    %250 = arith.addi %248, %249 : vector<4x8xi32>
    %251 = arith.cmpi eq, %232, %250 : vector<4x8xi32>
    %252 = arith.extui %251 : vector<4x8xi1> to vector<4x8xi32>
    %253 = arith.sitofp %252 : vector<4x8xi32> to vector<4x8xf32>
    %cst_109 = arith.constant dense<0.000000e+00> : vector<4x256xf32>
    %254 = tpu.matmul %253, %230, %cst_109 {dimension_numbers = #tpu.dot_dimension_numbers<[1], [0], [0], [1], [0, 0, 1, 1], [], []>} : vector<4x8xf32>, vector<8x256xf32>, vector<4x256xf32> -> vector<4x256xf32>
    %c1_110 = arith.constant 1 : index
    %c0_111 = arith.constant 0 : index
    %c0_112 = arith.constant 0 : index
    %255 = vector.load %arg8[%c1_110, %c0_111, %c0_112] : memref<4x256x512xbf16, #tpu.memory_space<vmem>>, vector<1x256x512xbf16>
    %256 = vector.shape_cast %255 : vector<1x256x512xbf16> to vector<256x512xbf16>
    %257 = arith.truncf %254 : vector<4x256xf32> to vector<4x256xbf16>
    %cst_113 = arith.constant dense<0.000000e+00> : vector<4x512xf32>
    %258 = tpu.matmul %257, %256, %cst_113 {dimension_numbers = #tpu.dot_dimension_numbers<[1], [0], [0], [1], [0, 0, 1, 1], [], []>} : vector<4x256xbf16>, vector<256x512xbf16>, vector<4x512xf32> -> vector<4x512xf32>
    %259 = arith.addf %246, %258 : vector<4x512xf32>
    %c2_i32_114 = arith.constant 2 : i32
    %260 = vector.broadcast %c2_i32_114 : i32 to vector<4x8xi32>
    %261 = arith.muli %260, %231 : vector<4x8xi32>
    %c1_i32_115 = arith.constant 1 : i32
    %262 = vector.broadcast %c1_i32_115 : i32 to vector<4x8xi32>
    %263 = arith.addi %261, %262 : vector<4x8xi32>
    %264 = arith.cmpi eq, %232, %263 : vector<4x8xi32>
    %265 = arith.extui %264 : vector<4x8xi1> to vector<4x8xi32>
    %266 = arith.sitofp %265 : vector<4x8xi32> to vector<4x8xf32>
    %cst_116 = arith.constant dense<0.000000e+00> : vector<4x256xf32>
    %267 = tpu.matmul %266, %230, %cst_116 {dimension_numbers = #tpu.dot_dimension_numbers<[1], [0], [0], [1], [0, 0, 1, 1], [], []>} : vector<4x8xf32>, vector<8x256xf32>, vector<4x256xf32> -> vector<4x256xf32>
    %c2_117 = arith.constant 2 : index
    %c0_118 = arith.constant 0 : index
    %c0_119 = arith.constant 0 : index
    %268 = vector.load %arg8[%c2_117, %c0_118, %c0_119] : memref<4x256x512xbf16, #tpu.memory_space<vmem>>, vector<1x256x512xbf16>
    %269 = vector.shape_cast %268 : vector<1x256x512xbf16> to vector<256x512xbf16>
    %270 = arith.truncf %267 : vector<4x256xf32> to vector<4x256xbf16>
    %cst_120 = arith.constant dense<0.000000e+00> : vector<4x512xf32>
    %271 = tpu.matmul %270, %269, %cst_120 {dimension_numbers = #tpu.dot_dimension_numbers<[1], [0], [0], [1], [0, 0, 1, 1], [], []>} : vector<4x256xbf16>, vector<256x512xbf16>, vector<4x512xf32> -> vector<4x512xf32>
    %272 = arith.addf %259, %271 : vector<4x512xf32>
    %c2_i32_121 = arith.constant 2 : i32
    %273 = vector.broadcast %c2_i32_121 : i32 to vector<4x8xi32>
    %274 = arith.muli %273, %231 : vector<4x8xi32>
    %c2_i32_122 = arith.constant 2 : i32
    %275 = vector.broadcast %c2_i32_122 : i32 to vector<4x8xi32>
    %276 = arith.addi %274, %275 : vector<4x8xi32>
    %277 = arith.cmpi eq, %232, %276 : vector<4x8xi32>
    %278 = arith.extui %277 : vector<4x8xi1> to vector<4x8xi32>
    %279 = arith.sitofp %278 : vector<4x8xi32> to vector<4x8xf32>
    %cst_123 = arith.constant dense<0.000000e+00> : vector<4x256xf32>
    %280 = tpu.matmul %279, %230, %cst_123 {dimension_numbers = #tpu.dot_dimension_numbers<[1], [0], [0], [1], [0, 0, 1, 1], [], []>} : vector<4x8xf32>, vector<8x256xf32>, vector<4x256xf32> -> vector<4x256xf32>
    %c3_124 = arith.constant 3 : index
    %c0_125 = arith.constant 0 : index
    %c0_126 = arith.constant 0 : index
    %281 = vector.load %arg8[%c3_124, %c0_125, %c0_126] : memref<4x256x512xbf16, #tpu.memory_space<vmem>>, vector<1x256x512xbf16>
    %282 = vector.shape_cast %281 : vector<1x256x512xbf16> to vector<256x512xbf16>
    %283 = arith.truncf %280 : vector<4x256xf32> to vector<4x256xbf16>
    %cst_127 = arith.constant dense<0.000000e+00> : vector<4x512xf32>
    %284 = tpu.matmul %283, %282, %cst_127 {dimension_numbers = #tpu.dot_dimension_numbers<[1], [0], [0], [1], [0, 0, 1, 1], [], []>} : vector<4x256xbf16>, vector<256x512xbf16>, vector<4x512xf32> -> vector<4x512xf32>
    %285 = arith.addf %272, %284 : vector<4x512xf32>
    %c0_128 = arith.constant 0 : index
    %c0_129 = arith.constant 0 : index
    %286 = vector.load %arg9[%c0_128, %c0_129] : memref<1x512xf32, #tpu.memory_space<vmem>>, vector<1x512xf32>
    %287 = vector.broadcast %286 : vector<1x512xf32> to vector<4x512xf32>
    %288 = arith.addf %285, %287 : vector<4x512xf32>
    %cst_130 = arith.constant dense<0.000000e+00> : vector<512xf32>
    %289 = vector.multi_reduction <add>, %288, %cst_130 [0] : vector<4x512xf32> to vector<512xf32>
    %290 = vector.shape_cast %289 : vector<512xf32> to vector<1x512xf32>
    %cst_131 = arith.constant 4.000000e+00 : f32
    %291 = vector.broadcast %cst_131 : f32 to vector<1x512xf32>
    %292 = arith.divf %290, %291 : vector<1x512xf32>
    %293 = vector.broadcast %292 : vector<1x512xf32> to vector<4x512xf32>
    %294 = arith.subf %288, %293 : vector<4x512xf32>
    %295 = arith.mulf %294, %294 : vector<4x512xf32>
    %cst_132 = arith.constant dense<0.000000e+00> : vector<512xf32>
    %296 = vector.multi_reduction <add>, %295, %cst_132 [0] : vector<4x512xf32> to vector<512xf32>
    %297 = vector.shape_cast %296 : vector<512xf32> to vector<1x512xf32>
    %cst_133 = arith.constant 4.000000e+00 : f32
    %298 = vector.broadcast %cst_133 : f32 to vector<1x512xf32>
    %299 = arith.divf %297, %298 : vector<1x512xf32>
    %300 = vector.broadcast %292 : vector<1x512xf32> to vector<4x512xf32>
    %301 = arith.subf %288, %300 : vector<4x512xf32>
    %cst_134 = arith.constant 9.99999974E-6 : f32
    %302 = vector.broadcast %cst_134 : f32 to vector<1x512xf32>
    %303 = arith.addf %299, %302 : vector<1x512xf32>
    %304 = math.rsqrt %303 : vector<1x512xf32>
    %305 = vector.broadcast %304 : vector<1x512xf32> to vector<4x512xf32>
    %306 = arith.mulf %301, %305 : vector<4x512xf32>
    %cst_135 = arith.constant 0.000000e+00 : f32
    %307 = vector.broadcast %cst_135 : f32 to vector<4x512xf32>
    %308 = arith.cmpf ogt, %306, %307 : vector<4x512xf32>
    %cst_136 = arith.constant 2.000000e-01 : f32
    %309 = vector.broadcast %cst_136 : f32 to vector<4x512xf32>
    %310 = arith.mulf %309, %306 : vector<4x512xf32>
    %311 = arith.select %308, %306, %310 : vector<4x512xi1>, vector<4x512xf32>
    %312 = tpu.iota {dimensions = array<i32: 0>} : vector<3x4xi32>
    %313 = tpu.iota {dimensions = array<i32: 1>} : vector<3x4xi32>
    %cst_137 = arith.constant 0.000000e+00 : f32
    %314 = vector.broadcast %cst_137 : f32 to vector<3x1xf32>
    %c1_i32_138 = arith.constant 1 : i32
    %315 = vector.broadcast %c1_i32_138 : i32 to vector<3x4xi32>
    %316 = arith.muli %315, %312 : vector<3x4xi32>
    %c-1_i32_139 = arith.constant -1 : i32
    %317 = vector.broadcast %c-1_i32_139 : i32 to vector<3x4xi32>
    %318 = arith.addi %316, %317 : vector<3x4xi32>
    %319 = arith.cmpi eq, %313, %318 : vector<3x4xi32>
    %320 = arith.extui %319 : vector<3x4xi1> to vector<3x4xi32>
    %321 = arith.sitofp %320 : vector<3x4xi32> to vector<3x4xf32>
    %cst_140 = arith.constant dense<0.000000e+00> : vector<3x512xf32>
    %322 = tpu.matmul %321, %311, %cst_140 {dimension_numbers = #tpu.dot_dimension_numbers<[1], [0], [0], [1], [0, 0, 1, 1], [], []>} : vector<3x4xf32>, vector<4x512xf32>, vector<3x512xf32> -> vector<3x512xf32>
    %c0_141 = arith.constant 0 : index
    %c0_142 = arith.constant 0 : index
    %c0_143 = arith.constant 0 : index
    %323 = vector.load %arg10[%c0_141, %c0_142, %c0_143] : memref<4x512x1xbf16, #tpu.memory_space<vmem>>, vector<1x512x1xbf16>
    %324 = vector.shape_cast %323 : vector<1x512x1xbf16> to vector<512x1xbf16>
    %325 = arith.truncf %322 : vector<3x512xf32> to vector<3x512xbf16>
    %cst_144 = arith.constant dense<0.000000e+00> : vector<3x1xf32>
    %326 = tpu.matmul %325, %324, %cst_144 {dimension_numbers = #tpu.dot_dimension_numbers<[1], [0], [0], [1], [0, 0, 1, 1], [], []>} : vector<3x512xbf16>, vector<512x1xbf16>, vector<3x1xf32> -> vector<3x1xf32>
    %327 = arith.addf %314, %326 : vector<3x1xf32>
    %c1_i32_145 = arith.constant 1 : i32
    %328 = vector.broadcast %c1_i32_145 : i32 to vector<3x4xi32>
    %329 = arith.muli %328, %312 : vector<3x4xi32>
    %c0_i32_146 = arith.constant 0 : i32
    %330 = vector.broadcast %c0_i32_146 : i32 to vector<3x4xi32>
    %331 = arith.addi %329, %330 : vector<3x4xi32>
    %332 = arith.cmpi eq, %313, %331 : vector<3x4xi32>
    %333 = arith.extui %332 : vector<3x4xi1> to vector<3x4xi32>
    %334 = arith.sitofp %333 : vector<3x4xi32> to vector<3x4xf32>
    %cst_147 = arith.constant dense<0.000000e+00> : vector<3x512xf32>
    %335 = tpu.matmul %334, %311, %cst_147 {dimension_numbers = #tpu.dot_dimension_numbers<[1], [0], [0], [1], [0, 0, 1, 1], [], []>} : vector<3x4xf32>, vector<4x512xf32>, vector<3x512xf32> -> vector<3x512xf32>
    %c1_148 = arith.constant 1 : index
    %c0_149 = arith.constant 0 : index
    %c0_150 = arith.constant 0 : index
    %336 = vector.load %arg10[%c1_148, %c0_149, %c0_150] : memref<4x512x1xbf16, #tpu.memory_space<vmem>>, vector<1x512x1xbf16>
    %337 = vector.shape_cast %336 : vector<1x512x1xbf16> to vector<512x1xbf16>
    %338 = arith.truncf %335 : vector<3x512xf32> to vector<3x512xbf16>
    %cst_151 = arith.constant dense<0.000000e+00> : vector<3x1xf32>
    %339 = tpu.matmul %338, %337, %cst_151 {dimension_numbers = #tpu.dot_dimension_numbers<[1], [0], [0], [1], [0, 0, 1, 1], [], []>} : vector<3x512xbf16>, vector<512x1xbf16>, vector<3x1xf32> -> vector<3x1xf32>
    %340 = arith.addf %327, %339 : vector<3x1xf32>
    %c1_i32_152 = arith.constant 1 : i32
    %341 = vector.broadcast %c1_i32_152 : i32 to vector<3x4xi32>
    %342 = arith.muli %341, %312 : vector<3x4xi32>
    %c1_i32_153 = arith.constant 1 : i32
    %343 = vector.broadcast %c1_i32_153 : i32 to vector<3x4xi32>
    %344 = arith.addi %342, %343 : vector<3x4xi32>
    %345 = arith.cmpi eq, %313, %344 : vector<3x4xi32>
    %346 = arith.extui %345 : vector<3x4xi1> to vector<3x4xi32>
    %347 = arith.sitofp %346 : vector<3x4xi32> to vector<3x4xf32>
    %cst_154 = arith.constant dense<0.000000e+00> : vector<3x512xf32>
    %348 = tpu.matmul %347, %311, %cst_154 {dimension_numbers = #tpu.dot_dimension_numbers<[1], [0], [0], [1], [0, 0, 1, 1], [], []>} : vector<3x4xf32>, vector<4x512xf32>, vector<3x512xf32> -> vector<3x512xf32>
    %c2_155 = arith.constant 2 : index
    %c0_156 = arith.constant 0 : index
    %c0_157 = arith.constant 0 : index
    %349 = vector.load %arg10[%c2_155, %c0_156, %c0_157] : memref<4x512x1xbf16, #tpu.memory_space<vmem>>, vector<1x512x1xbf16>
    %350 = vector.shape_cast %349 : vector<1x512x1xbf16> to vector<512x1xbf16>
    %351 = arith.truncf %348 : vector<3x512xf32> to vector<3x512xbf16>
    %cst_158 = arith.constant dense<0.000000e+00> : vector<3x1xf32>
    %352 = tpu.matmul %351, %350, %cst_158 {dimension_numbers = #tpu.dot_dimension_numbers<[1], [0], [0], [1], [0, 0, 1, 1], [], []>} : vector<3x512xbf16>, vector<512x1xbf16>, vector<3x1xf32> -> vector<3x1xf32>
    %353 = arith.addf %340, %352 : vector<3x1xf32>
    %c1_i32_159 = arith.constant 1 : i32
    %354 = vector.broadcast %c1_i32_159 : i32 to vector<3x4xi32>
    %355 = arith.muli %354, %312 : vector<3x4xi32>
    %c2_i32_160 = arith.constant 2 : i32
    %356 = vector.broadcast %c2_i32_160 : i32 to vector<3x4xi32>
    %357 = arith.addi %355, %356 : vector<3x4xi32>
    %358 = arith.cmpi eq, %313, %357 : vector<3x4xi32>
    %359 = arith.extui %358 : vector<3x4xi1> to vector<3x4xi32>
    %360 = arith.sitofp %359 : vector<3x4xi32> to vector<3x4xf32>
    %cst_161 = arith.constant dense<0.000000e+00> : vector<3x512xf32>
    %361 = tpu.matmul %360, %311, %cst_161 {dimension_numbers = #tpu.dot_dimension_numbers<[1], [0], [0], [1], [0, 0, 1, 1], [], []>} : vector<3x4xf32>, vector<4x512xf32>, vector<3x512xf32> -> vector<3x512xf32>
    %c3_162 = arith.constant 3 : index
    %c0_163 = arith.constant 0 : index
    %c0_164 = arith.constant 0 : index
    %362 = vector.load %arg10[%c3_162, %c0_163, %c0_164] : memref<4x512x1xbf16, #tpu.memory_space<vmem>>, vector<1x512x1xbf16>
    %363 = vector.shape_cast %362 : vector<1x512x1xbf16> to vector<512x1xbf16>
    %364 = arith.truncf %361 : vector<3x512xf32> to vector<3x512xbf16>
    %cst_165 = arith.constant dense<0.000000e+00> : vector<3x1xf32>
    %365 = tpu.matmul %364, %363, %cst_165 {dimension_numbers = #tpu.dot_dimension_numbers<[1], [0], [0], [1], [0, 0, 1, 1], [], []>} : vector<3x512xbf16>, vector<512x1xbf16>, vector<3x1xf32> -> vector<3x1xf32>
    %366 = arith.addf %353, %365 : vector<3x1xf32>
    %c0_166 = arith.constant 0 : index
    %c0_167 = arith.constant 0 : index
    %367 = vector.load %arg11[%c0_166, %c0_167] : memref<1x1xf32, #tpu.memory_space<vmem>>, vector<1x1xf32>
    %368 = vector.broadcast %367 : vector<1x1xf32> to vector<3x1xf32>
    %369 = arith.addf %366, %368 : vector<3x1xf32>
    %c0_168 = arith.constant 0 : index
    %c0_169 = arith.constant 0 : index
    %c0_170 = arith.constant 0 : index
    %370 = vector.load %arg12[%c0_168, %c0_169, %c0_170] : memref<1x3x1xf32, #tpu.memory_space<vmem>>, vector<1x3x1xf32>
    %371 = vector.shape_cast %370 : vector<1x3x1xf32> to vector<3x1xf32>
    %372 = vector.shape_cast %369 : vector<3x1xf32> to vector<1x3x1xf32>
    tpu.vector_store %arg12[%c0_168, %c0_169, %c0_170], %372 {strides = array<i32>} : memref<1x3x1xf32, #tpu.memory_space<vmem>>, vector<1x3x1xf32>,
    return
  }
  func.func @transform_0(%arg0: i32) -> (i32, i32, i32) {
    %c0_i32 = arith.constant 0 : i32
    %c0_i32_0 = arith.constant 0 : i32
    %c0_i32_1 = arith.constant 0 : i32
    return %arg0, %c0_i32, %c0_i32_0 : i32, i32, i32
  }
  func.func @transform_1(%arg0: i32) -> (i32, i32, i32) {
    %c0_i32 = arith.constant 0 : i32
    %c0_i32_0 = arith.constant 0 : i32
    %c0_i32_1 = arith.constant 0 : i32
    %c0_i32_2 = arith.constant 0 : i32
    return %c0_i32, %c0_i32_0, %c0_i32_1 : i32, i32, i32
  }
  func.func @transform_2(%arg0: i32) -> (i32, i32) {
    %c0_i32 = arith.constant 0 : i32
    %c0_i32_0 = arith.constant 0 : i32
    %c0_i32_1 = arith.constant 0 : i32
    return %c0_i32, %c0_i32_0 : i32, i32
  }
  func.func @transform_3(%arg0: i32) -> (i32, i32, i32) {
    %c0_i32 = arith.constant 0 : i32
    %c0_i32_0 = arith.constant 0 : i32
    %c0_i32_1 = arith.constant 0 : i32
    %c0_i32_2 = arith.constant 0 : i32
    return %c0_i32, %c0_i32_0, %c0_i32_1 : i32, i32, i32
  }
  func.func @transform_4(%arg0: i32) -> (i32, i32) {
    %c0_i32 = arith.constant 0 : i32
    %c0_i32_0 = arith.constant 0 : i32
    %c0_i32_1 = arith.constant 0 : i32
    return %c0_i32, %c0_i32_0 : i32, i32
  }
  func.func @transform_5(%arg0: i32) -> (i32, i32, i32) {
    %c0_i32 = arith.constant 0 : i32
    %c0_i32_0 = arith.constant 0 : i32
    %c0_i32_1 = arith.constant 0 : i32
    %c0_i32_2 = arith.constant 0 : i32
    return %c0_i32, %c0_i32_0, %c0_i32_1 : i32, i32, i32
  }
  func.func @transform_6(%arg0: i32) -> (i32, i32) {
    %c0_i32 = arith.constant 0 : i32
    %c0_i32_0 = arith.constant 0 : i32
    %c0_i32_1 = arith.constant 0 : i32
    return %c0_i32, %c0_i32_0 : i32, i32
  }
  func.func @transform_7(%arg0: i32) -> (i32, i32, i32) {
    %c0_i32 = arith.constant 0 : i32
    %c0_i32_0 = arith.constant 0 : i32
    %c0_i32_1 = arith.constant 0 : i32
    %c0_i32_2 = arith.constant 0 : i32
    return %c0_i32, %c0_i32_0, %c0_i32_1 : i32, i32, i32
  }
  func.func @transform_8(%arg0: i32) -> (i32, i32) {
    %c0_i32 = arith.constant 0 : i32
    %c0_i32_0 = arith.constant 0 : i32
    %c0_i32_1 = arith.constant 0 : i32
    return %c0_i32, %c0_i32_0 : i32, i32
  }
  func.func @transform_9(%arg0: i32) -> (i32, i32, i32) {
    %c0_i32 = arith.constant 0 : i32
    %c0_i32_0 = arith.constant 0 : i32
    %c0_i32_1 = arith.constant 0 : i32
    %c0_i32_2 = arith.constant 0 : i32
    return %c0_i32, %c0_i32_0, %c0_i32_1 : i32, i32, i32
  }
  func.func @transform_10(%arg0: i32) -> (i32, i32) {
    %c0_i32 = arith.constant 0 : i32
    %c0_i32_0 = arith.constant 0 : i32
    %c0_i32_1 = arith.constant 0 : i32
    return %c0_i32, %c0_i32_0 : i32, i32
  }
  func.func @transform_11(%arg0: i32) -> (i32, i32, i32) {
    %c0_i32 = arith.constant 0 : i32
    %c0_i32_0 = arith.constant 0 : i32
    %c0_i32_1 = arith.constant 0 : i32
    return %arg0, %c0_i32, %c0_i32_0 : i32, i32, i32
  }
}

</mosaic_0001>

<bundles_post_ra>
// kernel: discriminator_forward.1
= control target key start
LH: loop header
LB: loop body
LE: loop exit
PB: predicated region body
PF: predicated region fallthrough
CT: control target
= control target key end

     0   :  { %s9171_s19 = smov 0   ;;  %s11073_s0 = inlined_call_operand.vmem [shape: f32[2,64,1], index: 0, kind: input, shape index: {}]   ;;  %s11074_s1 = inlined_call_operand.vmem [shape: f32[4,1,64], index: 1, kind: input, shape index: {}]   ;;  %s11075_s2 = inlined_call_operand.vmem [shape: f32[1,64], index: 2, kind: input, shape index: {}]   ;;  %s11076_s3 = inlined_call_operand.vmem [shape: bf16[4,64,128], index: 3, kind: input, shape index: {}]   ;;  %s11077_s4 = inlined_call_operand.vmem [shape: f32[1,128], index: 4, kind: input, shape index: {}]   ;;  %s11078_s5 = inlined_call_operand.vmem [shape: bf16[4,128,256], index: 5, kind: input, shape index: {}]   ;;  %s11079_s6 = inlined_call_operand.vmem [shape: f32[1,256], index: 6, kind: input, shape index: {}]   ;;  %s11080_s7 = inlined_call_operand.vmem [shape: bf16[4,256,512], index: 7, kind: input, shape index: {}]   ;;  %s11081_s8 = inlined_call_operand.vmem [shape: f32[1,512], index: 8, kind: input, shape index: {}]   ;;  %s11082_s9 = inlined_call_operand.vmem [shape: bf16[4,512,1], index: 9, kind: input, shape index: {}]   ;;  %s11083_s10 = inlined_call_operand.<no memory space> [shape: f32[1,1], index: 10, kind: input, shape index: {}]   ;;  %s11084_s11 = inlined_call_operand.vmem [shape: f32[2,3,1], index: 11, kind: output, shape index: {}]  }
   0x1   :  { %v16_v0 = vstv %s11083_s10 }
   0x2   :  { %17 = vst [vmem:[#allocation2] sm:$0x1] %v16_v0 }
   0x3 LB: > { %s6937_s20 = sadd.s32 4294967295, %s9103_s19   ;;  %p6941_p0 = scmp.ge.s32.totalorder %s9103_s19, 1  ;;  %s9103_s19 = sphi %s9171_s19, %s23_s19  }
   0x4   : > { %p339_p1 = scmp.lt.s32.totalorder %s9103_s19, 3 }
   0x6   : > { %p340_p2 = pnand %p6941_p0, %p339_p1 }
   0x7   : > { %p378_p3 = scmp.lt.s32.totalorder (!%p340_p2), %s6937_s20, 1 }
   0x8   : > { %343 = sbr.rel (%p340_p2) target bundleno = 3514 (0xdba), region = 64 }
   0xd   : > { %v396_v1 = vlaneseq  ;;  %v9105_v2 = vmov 0   ;;  %s11086_s20 = smov (!%p378_p3, %s6937_s20), 1  ;;  %vm423_vm1 = vcmask 523264   ;;  %v9106_v23 = vmov 0.0  }
   0xe   : > { %8458 = vset.pattern.permute.xlu0 %v9105_v2  ;;  %8457 = vset.pattern.permute.xlu1 %v9105_v2  ;;  %s7957_s10 = sshll.u32 %s11086_s20, 6  ;;  %s6944_s13 = sshll.u32 %s11086_s20, 2 }
   0xf   : > { %v9183_v3 = vshrl.u32 %v396_v1, 7  ;;  %s9189_s23 = scalar_lea.vmem %s11073_s0, %s7957_s10  ;;  %v9220_v12 = vand.u32 127, %v396_v1  ;;  %s386_s16 = scalar_lea.vmem %s11084_s11, %s6944_s13 }
  0x10   : > { %v9192_v4 = vld [vmem:[%s9189_s23 + $0x38] sm:$0xff]  ;;  %v9195_v5 = vld [vmem:[%s9189_s23 + $0x30] sm:$0xff]  ;;  %v9206_v8 = vld [vmem:[%s9189_s23 + $0x28] sm:$0xff] }
  0x11   : > { %v398_v6 = vadd.s32 8, %v9183_v3  ;;  %8238 = vmatprep.subr.mxu0 %v9192_v4  ;;  %8260 = vmatprep.subr.mxu1 %v9192_v4  ;;  %v9201_v7 = vmul.u32 2, %v9183_v3  ;;  %v9211_v9 = vld [vmem:[%s9189_s23 + $0x20] sm:$0xff]  ;;  %v399_v10 = vadd.s32 16, %v9183_v3  ;;  %v9226_v14 = vld [vmem:[%s9189_s23 + $0x18] sm:$0xff]  ;;  %v400_v15 = vadd.s32 24, %v9183_v3 }
  0x12   : > { %8239 = vmatpush3.msra.mxu0 %v9192_v4  ;;  %8261 = vmatpush3.msra.mxu1 %v9192_v4  ;;  %v9236_v17 = vld [vmem:[%s9189_s23 + $0x10] sm:$0xff]  ;;  %v9245_v19 = vld [vmem:[%s9189_s23 + $0x8] sm:$0xff]  ;;  %v9252_v21 = vld [vmem:[%s9189_s23] sm:$0xff] }
  0x13   : > { %8240 = vmatprep.subr.mxu0 %v9195_v5  ;;  %8262 = vmatprep.subr.mxu1 %v9195_v5  ;;  %v9216_v11 = vmul.u32 2, %v398_v6  ;;  %v407_v13 = vadd.s32 4294967295, %v9201_v7  ;;  %v9231_v16 = vmul.u32 2, %v399_v10  ;;  %vm556_vm2 = vcmp.eq.s32.totalorder %v9220_v12, %v9201_v7 }
  0x14   : > { %8241 = vmatpush3.msra.mxu0 %v9195_v5  ;;  %8263 = vmatpush3.msra.mxu1 %v9195_v5  ;;  %v9247_v20 = vmul.u32 2, %v400_v15  ;;  %v9270_v25 = vsel %vm556_vm2, 1.0, %v9106_v23  ;;  %v701_v32 = vadd.s32 1, %v9201_v7  ;;  %v850_v35 = vadd.s32 2, %v9201_v7  ;;  %v6953_v15 = vld [vmem:[%s11074_s1] ss:$0 sm:$0xff] }
  0x15   : > { %8242 = vmatprep.subr.mxu0 %v9206_v8  ;;  %8264 = vmatprep.subr.mxu1 %v9206_v8  ;;  %v408_v18 = vadd.s32 4294967295, %v9216_v11  ;;  %vm411_vm0 = vcmp.eq.s32.totalorder %v9220_v12, %v407_v13  ;;  %v409_v22 = vadd.s32 4294967295, %v9231_v16  ;;  %vm557_vm4 = vcmp.eq.s32.totalorder %v9220_v12, %v9216_v11 }
  0x16   : > { %8243 = vmatpush3.msra.mxu0 %v9206_v8  ;;  %8265 = vmatpush3.msra.mxu1 %v9206_v8  ;;  %v9260_v24 = vsel %vm411_vm0, 1.0, %v9106_v23  ;;  %v9278_v27 = vsel %vm557_vm4, 1.0, %v9106_v23  ;;  %v410_v28 = vadd.s32 4294967295, %v9247_v20  ;;  %vm558_vm7 = vcmp.eq.s32.totalorder %v9220_v12, %v9231_v16 }
  0x17   : > { %8244 = vmatprep.subr.mxu0 %v9211_v9  ;;  %8266 = vmatprep.subr.mxu1 %v9211_v9  ;;  %vm412_vm3 = vcmp.eq.s32.totalorder %v9220_v12, %v408_v18  ;;  %vm413_vm5 = vcmp.eq.s32.totalorder %v9220_v12, %v409_v22  ;;  %vm559_vm8 = vcmp.eq.s32.totalorder %v9220_v12, %v9247_v20  ;;  %v6956_v31 = vsel %vm558_vm7, 1.0, %v9106_v23 }
  0x18   : > { %8245 = vmatpush3.msra.mxu0 %v9211_v9  ;;  %8267 = vmatpush3.msra.mxu1 %v9211_v9  ;;  %v9275_v26 = vsel %vm412_vm3, 1.0, %v9106_v23  ;;  %v6947_v29 = vsel %vm413_vm5, 1.0, %v9106_v23  ;;  %vm414_vm6 = vcmp.eq.s32.totalorder %v9220_v12, %v410_v28  ;;  %v702_v33 = vadd.s32 1, %v9216_v11 }
  0x19   : > { %8246 = vmatprep.subr.mxu0 %v9226_v14  ;;  %8268 = vmatprep.subr.mxu1 %v9226_v14  ;;  %v6948_v30 = vsel %vm414_vm6, 1.0, %v9106_v23  ;;  %v6957_v34 = vsel %vm559_vm8, 1.0, %v9106_v23  ;;  %v703_v36 = vadd.s32 1, %v9231_v16  ;;  %vm705_vm9 = vcmp.eq.s32.totalorder %v9220_v12, %v701_v32 }
  0x1a   : > { %8247 = vmatpush3.msra.mxu0 %v9226_v14  ;;  %8269 = vmatpush3.msra.mxu1 %v9226_v14  ;;  %v851_v37 = vadd.s32 2, %v9216_v11  ;;  %vm706_vm10 = vcmp.eq.s32.totalorder %v9220_v12, %v702_v33  ;;  %v704_v38 = vadd.s32 1, %v9247_v20  ;;  %v852_v39 = vadd.s32 2, %v9231_v16  ;;  %v6963_v11 = vld [vmem:[%s11074_s1 + $0x1] ss:$0 sm:$0xff] }
  0x1b   : > { %8248 = vmatprep.subr.mxu0 %v9236_v17  ;;  %8270 = vmatprep.subr.mxu1 %v9236_v17  ;;  %vm854_vm11 = vcmp.eq.s32.totalorder %v9220_v12, %v850_v35  ;;  %v9340_v40 = vsel %vm705_vm9, 1.0, %v9106_v23  ;;  %vm707_vm12 = vcmp.eq.s32.totalorder %v9220_v12, %v703_v36  ;;  %v9346_v41 = vsel %vm706_vm10, 1.0, %v9106_v23  ;;  %v6973_v16 = vld [vmem:[%s11074_s1 + $0x2] ss:$0 sm:$0xff] }
  0x1c   : > { %8249 = vmatpush3.msra.mxu0 %v9236_v17  ;;  %8271 = vmatpush3.msra.mxu1 %v9236_v17  ;;  %vm855_vm13 = vcmp.eq.s32.totalorder %v9220_v12, %v851_v37  ;;  %v853_v42 = vadd.s32 2, %v9247_v20  ;;  %v9353_v43 = vsel %vm854_vm11, 1.0, %v9106_v23  ;;  %vm708_vm14 = vcmp.eq.s32.totalorder %v9220_v12, %v704_v38  ;;  %v6984_v38 = vld [vmem:[%s11075_s2] ss:$0 sm:$0xff] }
  0x1d   : > { %8250 = vmatprep.subr.mxu0 %v9245_v19  ;;  %8272 = vmatprep.subr.mxu1 %v9245_v19  ;;  %vm856_vm15 = vcmp.eq.s32.totalorder %v9220_v12, %v852_v39  ;;  %v6966_v44 = vsel %vm707_vm12, 1.0, %v9106_v23  ;;  %v9365_v45 = vsel %vm855_vm13, 1.0, %v9106_v23  ;;  %v6967_v46 = vsel %vm708_vm14, 1.0, %v9106_v23 }
  0x1e   : > { %8251 = vmatpush3.msra.mxu0 %v9245_v19  ;;  %8273 = vmatpush3.msra.mxu1 %v9245_v19  ;;  %v6976_v47 = vsel %vm856_vm15, 1.0, %v9106_v23  ;;  %vm857_vm0 = vcmp.eq.s32.totalorder %v9220_v12, %v853_v42  ;;  %vm1022_vm2 = vcmask 261120   ;;  %vm9107_vm7 = vmmov 0  }
  0x1f   : > { %8252 = vmatprep.subr.mxu0 %v9252_v21  ;;  %8274 = vmatprep.subr.mxu1 %v9252_v21  ;;  %v6977_v48 = vsel %vm857_vm0, 1.0, %v9106_v23  ;;  %vm1694_vm9 = vcmask 130048   ;;  %vm2601_vm12 = vcmask 64512   ;;  %vm4803_vm13 = vcmask 1043456  }
  0x20   : > { %8253 = vmatpush3.msra.mxu0 %v9252_v21  ;;  %8254 = vmatprep.mubr.msk.f32.mxu0 %vm423_vm1, %v9260_v24 }
  0x21   : > { %8275 = vmatpush3.msra.mxu1 %v9252_v21  ;;  %8276 = vmatprep.mubr.msk.f32.mxu1 %vm423_vm1, %v9270_v25 }
  0x22   : > { %8255 = vmatmul.mubr.msk.f32.vlgmr.msra.gmra.mxu0 %vm423_vm1, %v9275_v26  ;;  %8277 = vmatmul.mubr.msk.f32.vlgmr.msra.gmra.mxu1 %vm423_vm1, %v9278_v27 }
  0x23   : > { %8282 = vmatprep.subr.mxu0 %v9192_v4  ;;  %8304 = vmatprep.subr.mxu1 %v9192_v4 }
  0x24   : > { %8283 = vmatpush3.msra.mxu0 %v9192_v4  ;;  %8305 = vmatpush3.msra.mxu1 %v9192_v4 }
  0x25   : > { %8284 = vmatprep.subr.mxu0 %v9195_v5  ;;  %8306 = vmatprep.subr.mxu1 %v9195_v5 }
  0x26   : > { %8285 = vmatpush3.msra.mxu0 %v9195_v5  ;;  %8257 = vmatprep.mubr.msk.f32.mxu0 %vm423_vm1, %v6947_v29 }
  0x27   : > { %8286 = vmatprep.subr.mxu0 %v9206_v8  ;;  %8307 = vmatpush3.msra.mxu1 %v9195_v5 }
  0x28   : > { %8287 = vmatpush3.msra.mxu0 %v9206_v8  ;;  %8308 = vmatprep.subr.mxu1 %v9206_v8 }
  0x29   : > { %8258 = vmatmul.mubr.msk.f32.gmra.mxu0 %vm423_vm1, %v6948_v30  ;;  %8288 = vmatprep.subr.mxu0 %v9211_v9 }
  0x2a   : > { %8289 = vmatpush3.msra.mxu0 %v9211_v9  ;;  %8309 = vmatpush3.msra.mxu1 %v9206_v8 }
  0x2b   : > { %8290 = vmatprep.subr.mxu0 %v9226_v14  ;;  %8310 = vmatprep.subr.mxu1 %v9211_v9 }
  0x2c   : > { %8279 = vmatprep.mubr.msk.f32.mxu1 %vm423_vm1, %v6956_v31  ;;  %8291 = vmatpush3.msra.mxu0 %v9226_v14 }
  0x2d   : > { %8311 = vmatpush3.msra.mxu1 %v9211_v9  ;;  %8292 = vmatprep.subr.mxu0 %v9236_v17 }
  0x2e   : > { %8280 = vmatmul.mubr.msk.f32.gmra.mxu1 %vm423_vm1, %v6957_v34  ;;  %8312 = vmatprep.subr.mxu1 %v9226_v14 }
  0x2f   : > { %8293 = vmatpush3.msra.mxu0 %v9236_v17  ;;  %8313 = vmatpush3.msra.mxu1 %v9226_v14 }
  0x30   : > { %8294 = vmatprep.subr.mxu0 %v9245_v19  ;;  %8314 = vmatprep.subr.mxu1 %v9236_v17 }
  0x31   : > { %8295 = vmatpush3.msra.mxu0 %v9245_v19  ;;  %8315 = vmatpush3.msra.mxu1 %v9236_v17 }
  0x32   : > { %8296 = vmatprep.subr.mxu0 %v9252_v21  ;;  %8316 = vmatprep.subr.mxu1 %v9245_v19 }
  0x33   : > { %8297 = vmatpush3.msra.mxu0 %v9252_v21  ;;  %8298 = vmatprep.mubr.msk.f32.mxu0 %vm423_vm1, %v9340_v40 }
  0x34   : > { %8317 = vmatpush3.msra.mxu1 %v9245_v19  ;;  %8299 = vmatmul.mubr.msk.f32.vlgmr.msra.gmra.mxu0 %vm423_vm1, %v9346_v41 }
  0x35   : > { %8318 = vmatprep.subr.mxu1 %v9252_v21  ;;  %8320 = vmatprep.mubr.msk.f32.mxu1 %vm423_vm1, %v9353_v43 }
  0x36   : > { %8319 = vmatpush3.msra.mxu1 %v9252_v21  ;;  %8301 = vmatprep.mubr.msk.f32.mxu0 %vm423_vm1, %v6966_v44  ;;  %v6983_v21 = vld [vmem:[%s11074_s1 + $0x3] ss:$0 sm:$0xff] }
  0x37   : > { %8321 = vmatmul.mubr.msk.f32.vlgmr.msra.gmra.mxu1 %vm423_vm1, %v9365_v45 }
  0x38   : > { %8302 = vmatmul.mubr.msk.f32.gmra.mxu0 %vm423_vm1, %v6967_v46  ;;  %8323 = vmatprep.mubr.msk.f32.mxu1 %vm423_vm1, %v6976_v47 }
  0x39   : > { %8334 = vmatprep.mubr.msk.f32.mxu0 %vm1022_vm2, %v9260_v24 }
  0x3b   : > { %8324 = vmatmul.mubr.msk.f32.gmra.mxu1 %vm423_vm1, %v6977_v48 }
  0x3c   : > { %8345 = vmatprep.mubr.msk.f32.mxu1 %vm1022_vm2, %v9270_v25 }
  0xe2   : > { %v8256_v49 = vpop.f32.mrf.mxu0  ;;  %v8278_v50 = vpop.f32.mrf.mxu1 }
  0xe3   : > { %674 = vperm.xlu0 %8458, %v8278_v50   ;;  %529 = vperm.xlu1 %8457, %v8256_v49  }
  0xe4   : > { %v646_v51 = vpop.f32.mrf.mxu1  ;;  %v502_v52 = vpop.f32.mrf.mxu0 }
  0xe7   : > { %669 = vperm.xlu0 %8458, %v646_v51   ;;  %524 = vperm.xlu1 %8457, %v502_v52  }
  0xe9   : > { %v8259_v53 = vpop.f32.mrf.mxu0 }
  0xeb   : > { %v512_v54 = vpop.f32.mrf.mxu0  ;;  %539 = vperm.xlu0 %8458, %v8259_v53  }
  0xec   : > { %534 = vperm.xlu1 %8457, %v512_v54  }
  0xee   : > { %v8281_v55 = vpop.f32.mrf.mxu1 }
  0xef   : > { %684 = vperm.xlu0 %8458, %v8281_v55  }
  0xf0   : > { %v656_v56 = vpop.f32.mrf.mxu1 }
  0xf1   : > { %679 = vperm.xlu1 %8457, %v656_v56  }
  0xf4   : > { %v8300_v57 = vpop.f32.mrf.mxu0 }
  0xf5   : > { %823 = vperm.xlu1 %8457, %v8300_v57  }
  0xf6   : > { %v795_v58 = vpop.f32.mrf.mxu0 }
  0xf7   : > { %v8322_v59 = vpop.f32.mrf.mxu1 }
  0xf8   : > { %v8303_v60 = vpop.f32.mrf.mxu0 }
  0xf9   : > { %v944_v61 = vpop.f32.mrf.mxu1  ;;  %833 = vperm.xlu0 %8458, %v8303_v60  }
  0xfa   : > { %v805_v62 = vpop.f32.mrf.mxu0 }
  0xfb   : > { %828 = vperm.xlu1 %8457, %v805_v62   ;;  %v8325_v63 = vpop.f32.mrf.mxu1 }
  0xfd   : > { %982 = vperm.xlu0 %8458, %v8325_v63   ;;  %v954_v0 = vpop.f32.mrf.mxu1 }
  0xff   : > { %818 = vperm.xlu1 %8457, %v795_v58  }
 0x101   : > { %977 = vperm.xlu0 %8458, %v954_v0  }
 0x103   : > { %967 = vperm.xlu1 %8457, %v944_v61  }
 0x105   : > { %972 = vperm.xlu0 %8458, %v8322_v59  }
 0x15e   : > { %v675_v1 = vpop.permute.xlu0 %674  ;;  %v530_v4 = vpop.permute.xlu1 %529 }
 0x15f   : > { %v694_v36 = vmul.f32 %v6963_v11, %v675_v1  ;;  %v549_v37 = vmul.f32 %v6953_v15, %v530_v4 }
 0x161   : > { %v698_v53 = vadd.f32 %v694_v36, %v549_v37 }
 0x162   : > { %v525_v5 = vpop.permute.xlu1 %524  ;;  %v670_v6 = vpop.permute.xlu0 %669 }
 0x163   : > { %v693_v29 = vmul.f32 %v6963_v11, %v670_v6  ;;  %v548_v30 = vmul.f32 %v6953_v15, %v525_v5 }
 0x165   : > { %v697_v47 = vadd.f32 %v693_v29, %v548_v30  ;;  %v8467_v30 = vld [vmem:[%s11076_s3 + $0x58] sm:$0xff]  }
 0x166   : > { %v540_v8 = vpop.permute.xlu0 %539 }
 0x167   : > { %v535_v7 = vpop.permute.xlu1 %534  ;;  %v551_v18 = vmul.f32 %v6953_v15, %v540_v8 }
 0x168   : > { %v550_v32 = vmul.f32 %v6953_v15, %v535_v7  ;;  %v8460_v15 = vld [vmem:[%s11076_s3 + $0x30] sm:$0xff]  }
 0x16a   : > { %v685_v10 = vpop.permute.xlu0 %684 }
 0x16b   : > { %v696_v14 = vmul.f32 %v6963_v11, %v685_v10 }
 0x16c   : > { %v680_v9 = vpop.permute.xlu1 %679 }
 0x16d   : > { %v700_v22 = vadd.f32 %v696_v14, %v551_v18  ;;  %v695_v28 = vmul.f32 %v6963_v11, %v680_v9  ;;  %v8463_v14 = vld [vmem:[%s11076_s3 + $0x18] sm:$0xff]   ;;  %v8466_v18 = vld [vmem:[%s11076_s3] sm:$0xff]  }
 0x16f   : > { %v699_v42 = vadd.f32 %v695_v28, %v550_v32  ;;  %v8471_v32 = vld [vmem:[%s11076_s3 + $0x70] sm:$0xff]  }
 0x170   : > { %v824_v13 = vpop.permute.xlu1 %823 }
 0x171   : > { %v843_v48 = vmul.f32 %v6973_v16, %v824_v13  ;;  %v8459_v13 = vld [vmem:[%s11076_s3 + $0x38] sm:$0xff]  }
 0x173   : > { %v847_v59 = vadd.f32 %v843_v48, %v698_v53 }
 0x174   : > { %v834_v17 = vpop.permute.xlu0 %833 }
 0x175   : > { %v845_v19 = vmul.f32 %v6973_v16, %v834_v17  ;;  %v8462_v17 = vld [vmem:[%s11076_s3 + $0x20] sm:$0xff]  }
 0x176   : > { %v829_v20 = vpop.permute.xlu1 %828 }
 0x177   : > { %v849_v33 = vadd.f32 %v845_v19, %v700_v22  ;;  %v844_v34 = vmul.f32 %v6973_v16, %v829_v20 }
 0x178   : > { %v983_v31 = vpop.permute.xlu0 %982 }
 0x179   : > { %v994_v35 = vmul.f32 %v6983_v21, %v983_v31  ;;  %v848_v50 = vadd.f32 %v844_v34, %v699_v42  ;;  %v8469_v31 = vld [vmem:[%s11076_s3 + $0x78] sm:$0xff]   ;;  %v8473_v34 = vld [vmem:[%s11076_s3 + $0x68] sm:$0xff]  }
 0x17a   : > { %v819_v39 = vpop.permute.xlu1 %818 }
 0x17b   : > { %v998_v44 = vadd.f32 %v994_v35, %v849_v33  ;;  %v842_v46 = vmul.f32 %v6973_v16, %v819_v39  ;;  %v8464_v16 = vld [vmem:[%s11076_s3 + $0x10] sm:$0xff]   ;;  %v8472_v33 = vld [vmem:[%s11076_s3 + $0x40] sm:$0xff]  }
 0x17c   : > { %v978_v49 = vpop.permute.xlu0 %977  ;;  %v8474_v35 = vld [vmem:[%s11076_s3 + $0x60] sm:$0xff]  }
 0x17d   : > { %v1009_v51 = vadd.f32 %v6984_v38, %v998_v44  ;;  %v993_v52 = vmul.f32 %v6983_v21, %v978_v49  ;;  %v846_v54 = vadd.f32 %v842_v46, %v697_v47 }
 0x17e   : > { %v968_v55 = vpop.permute.xlu1 %967 }
 0x17f   : > { %vm1013_vm3 = vcmp.gt.f32.partialorder %v1009_v51, 0.0  ;;  %v1017_v56 = vmul.f32 0.2, %v1009_v51  ;;  %v997_v57 = vadd.f32 %v993_v52, %v848_v50  ;;  %v991_v58 = vmul.f32 %v6983_v21, %v968_v55 }
 0x180   : > { %v973_v60 = vpop.permute.xlu0 %972 }
 0x181   : > { %v9400_v61 = vsel %vm1013_vm3, %v1009_v51, %v1017_v56  ;;  %v1008_v62 = vadd.f32 %v6984_v38, %v997_v57  ;;  %v995_v63 = vadd.f32 %v991_v58, %v846_v54  ;;  %v992_v0 = vmul.f32 %v6983_v21, %v973_v60  ;;  %v8475_v56 = vld [vmem:[%s11078_s5 + $0x70] ss:$8 sps:$4 sm:$0xff]   ;;  %v8477_v57 = vld [vmem:[%s11078_s5 + $0x74] ss:$8 sps:$4 sm:$0xff]   ;;  %v8483_v58 = vld [vmem:[%s11078_s5 + $0x64] ss:$8 sps:$4 sm:$0xff]  }
 0x182   : > { %8326 = vmatprep.subr.mxu0 %v9400_v61  ;;  %8337 = vmatprep.subr.mxu1 %v9400_v61  ;;  %v8489_v60 = vld [vmem:[%s11078_s5 + $0x54] ss:$8 sps:$4 sm:$0xff]  }
 0x183   : > { %vm1012_vm4 = vcmp.gt.f32.partialorder %v1008_v62, 0.0  ;;  %v1016_v1 = vmul.f32 0.2, %v1008_v62  ;;  %v1006_v4 = vadd.f32 %v6984_v38, %v995_v63  ;;  %v996_v5 = vadd.f32 %v992_v0, %v847_v59  ;;  %8327 = vmatpush3.msra.mxu0 %v9400_v61  ;;  %8338 = vmatpush3.msra.mxu1 %v9400_v61  ;;  %v8481_v59 = vld [vmem:[%s11078_s5 + $0x60] ss:$8 sps:$4 sm:$0xff]  }
 0x184   : > { %v8493_v63 = vld [vmem:[%s11078_s5 + $0x40] ss:$8 sps:$4 sm:$0xff]   ;;  %v8501_v0 = vld [vmem:[%s11078_s5 + $0x34] ss:$8 sps:$4 sm:$0xff]  }
 0x185   : > { %v9406_v6 = vsel %vm1012_vm4, %v1008_v62, %v1016_v1  ;;  %v1007_v7 = vadd.f32 %v6984_v38, %v996_v5  ;;  %v1014_v8 = vmul.f32 0.2, %v1006_v4  ;;  %vm1010_vm6 = vcmp.gt.f32.partialorder %v1006_v4, 0.0  ;;  %v8495_v62 = vld [vmem:[%s11078_s5 + $0x44] ss:$8 sps:$4 sm:$0xff]  }
 0x186   : > { %8328 = vmatprep.subr.mxu0 %v9406_v6  ;;  %8339 = vmatprep.subr.mxu1 %v9406_v6  ;;  %v8499_v1 = vld [vmem:[%s11078_s5 + $0x30] ss:$8 sps:$4 sm:$0xff]   ;;  %v8505_v5 = vld [vmem:[%s11078_s5 + $0x20] ss:$8 sps:$4 sm:$0xff]   ;;  %vm4905_vm4 = vcmask 31744  }
 0x187   : > { %vm1011_vm5 = vcmp.gt.f32.partialorder %v1007_v7, 0.0  ;;  %v1015_v9 = vmul.f32 0.2, %v1007_v7  ;;  %8329 = vmatpush3.msra.mxu0 %v9406_v6  ;;  %8340 = vmatpush3.msra.mxu1 %v9406_v6  ;;  %v9416_v11 = vsel %vm1010_vm6, %v1006_v4, %v1014_v8  ;;  %v8507_v4 = vld [vmem:[%s11078_s5 + $0x24] ss:$8 sps:$4 sm:$0xff]  }
 0x188   : > { %v8519_v8 = vld [vmem:[%s11078_s5 + $0x4] ss:$8 sps:$4 sm:$0xff]  }
 0x189   : > { %v9412_v10 = vsel %vm1011_vm5, %v1007_v7, %v1015_v9  ;;  %v8511_v7 = vld [vmem:[%s11078_s5 + $0x10] ss:$8 sps:$4 sm:$0xff]   ;;  %v8517_v9 = vld [vmem:[%s11078_s5] ss:$8 sps:$4 sm:$0xff]   ;;  %vm5131_vm5 = vcmp.eq.s32.totalorder %v9220_v12, %v9183_v3 }
 0x18a   : > { %8330 = vmatprep.subr.mxu0 %v9412_v10  ;;  %8341 = vmatprep.subr.mxu1 %v9412_v10 }
 0x18b   : > { %8331 = vmatpush3.msra.mxu0 %v9412_v10  ;;  %8342 = vmatpush3.msra.mxu1 %v9412_v10 }
 0x18c   : > { %8332 = vmatprep.subr.mxu0 %v9416_v11  ;;  %8343 = vmatprep.subr.mxu1 %v9416_v11 }
 0x18d   : > { %8333 = vmatpush3.msra.mxu0 %v9416_v11  ;;  %8344 = vmatpush3.msra.mxu1 %v9416_v11 }
 0x18e   : > { %8335 = vmatmul.mubr.msk.f32.vlgmr.msra.gmra.mxu0 %vm1022_vm2, %v9275_v26  ;;  %8346 = vmatmul.mubr.msk.f32.vlgmr.msra.gmra.mxu1 %vm1022_vm2, %v9278_v27  ;;  %v8461_v26 = vld [vmem:[%s11076_s3 + $0x28] sm:$0xff]  }
 0x18f   : > { %8348 = vmatprep.subr.bf16.mxu0 %v9106_v23  ;;  %8360 = vmatprep.subr.bf16.mxu1 %v9106_v23  ;;  %v8465_v27 = vld [vmem:[%s11076_s3 + $0x8] sm:$0xff]  }
 0x190   : > { %8349 = vmatpush3.bf16.msra.mxu0 %v8459_v13  ;;  %8361 = vmatpush3.bf16.msra.mxu1 %v8463_v14 }
 0x191   : > { %8350 = vmatprep.subr.bf16.mxu0 %v9106_v23  ;;  %8362 = vmatprep.subr.bf16.mxu1 %v9106_v23 }
 0x192   : > { %8356 = vmatprep.mubr.msk.bf16.mxu0 %vm9107_vm7, %v9106_v23  ;;  %8368 = vmatprep.mubr.msk.bf16.mxu1 %vm9107_vm7, %v9106_v23 }
 0x194   : > { %8351 = vmatpush3.bf16.msra.mxu0 %v8460_v15  ;;  %8363 = vmatpush3.bf16.msra.mxu1 %v8464_v16 }
 0x195   : > { %8352 = vmatprep.subr.bf16.mxu0 %v9106_v23  ;;  %8364 = vmatprep.subr.bf16.mxu1 %v9106_v23 }
 0x198   : > { %8353 = vmatpush3.bf16.msra.mxu0 %v8461_v26  ;;  %8365 = vmatpush3.bf16.msra.mxu1 %v8465_v27 }
 0x199   : > { %8354 = vmatprep.subr.bf16.mxu0 %v9106_v23  ;;  %8366 = vmatprep.subr.bf16.mxu1 %v9106_v23 }
 0x19c   : > { %8355 = vmatpush3.bf16.msra.mxu0 %v8462_v17  ;;  %8367 = vmatpush3.bf16.msra.mxu1 %v8466_v18  ;;  %v7037_v18 = vld [vmem:[%s11077_s4] ss:$0 sm:$0xff] }
 0x19d   : > { %8372 = vmatprep.subr.mxu0 %v9400_v61  ;;  %8383 = vmatprep.subr.bf16.mxu1 %v9106_v23 }
 0x24e   : > { %v8336_v19 = vpop.f32.mrf.mxu0  ;;  %v8347_v20 = vpop.f32.mrf.mxu1 }
 0x250   : > { %v1093_v21 = vpop.f32.mrf.mxu0  ;;  %v1181_v22 = vpop.f32.mrf.mxu1 }
 0x251   : > { %v1110_v28 = vpack.c.bf16 %v8336_v19, %v1093_v21  ;;  %v1199_v29 = vpack.c.bf16 %v8347_v20, %v1181_v22 }
 0x253   : > { %8357 = vmatmul.mubr.msk.bf16.vlgmr.msra.gmra.mxu0 %vm423_vm1, %v1199_v29  ;;  %8369 = vmatmul.mubr.msk.bf16.vlgmr.msra.gmra.mxu1 %vm423_vm1, %v1110_v28 }
 0x254   : > { %8373 = vmatpush3.msra.mxu0 %v9400_v61  ;;  %8380 = vmatprep.mubr.msk.f32.mxu0 %vm1022_vm2, %v9340_v40 }
 0x255   : > { %8374 = vmatprep.subr.mxu0 %v9406_v6  ;;  %8384 = vmatpush3.bf16.msra.mxu1 %v8467_v30 }
 0x256   : > { %8375 = vmatpush3.msra.mxu0 %v9406_v6  ;;  %8385 = vmatprep.subr.bf16.mxu1 %v9106_v23 }
 0x257   : > { %8376 = vmatprep.subr.mxu0 %v9412_v10  ;;  %8391 = vmatprep.mubr.msk.bf16.mxu1 %vm9107_vm7, %v9106_v23 }
 0x258   : > { %8377 = vmatpush3.msra.mxu0 %v9412_v10 }
 0x259   : > { %8378 = vmatprep.subr.mxu0 %v9416_v11 }
 0x25a   : > { %8379 = vmatpush3.msra.mxu0 %v9416_v11 }
 0x25b   : > { %8395 = vmatprep.subr.mxu0 %v9400_v61  ;;  %8381 = vmatmul.mubr.msk.f32.vlgmr.msra.gmra.mxu0 %vm1022_vm2, %v9346_v41  ;;  %v8468_v41 = vld [vmem:[%s11076_s3 + $0x50] sm:$0xff]  }
 0x25c   : > { %8396 = vmatpush3.msra.mxu0 %v9400_v61  ;;  %8403 = vmatprep.mubr.msk.f32.mxu0 %vm1022_vm2, %v9353_v43  ;;  %v8487_v61 = vld [vmem:[%s11078_s5 + $0x50] ss:$8 sps:$4 sm:$0xff]  }
 0x25d   : > { %8397 = vmatprep.subr.mxu0 %v9406_v6  ;;  %8386 = vmatpush3.bf16.msra.mxu1 %v8468_v41 }
 0x25e   : > { %8398 = vmatpush3.msra.mxu0 %v9406_v6  ;;  %8387 = vmatprep.subr.bf16.mxu1 %v9106_v23  ;;  %v8513_v6 = vld [vmem:[%s11078_s5 + $0x14] ss:$8 sps:$4 sm:$0xff]  }
 0x25f   : > { %8399 = vmatprep.subr.mxu0 %v9412_v10 }
 0x260   : > { %8400 = vmatpush3.msra.mxu0 %v9412_v10 }
 0x261   : > { %8401 = vmatprep.subr.mxu0 %v9416_v11 }
 0x262   : > { %8402 = vmatpush3.msra.mxu0 %v9416_v11 }
 0x263   : > { %8404 = vmatmul.mubr.msk.f32.vlgmr.msra.gmra.mxu0 %vm1022_vm2, %v9365_v45  ;;  %8406 = vmatprep.subr.bf16.mxu0 %v9106_v23  ;;  %v8470_v45 = vld [vmem:[%s11076_s3 + $0x48] sm:$0xff]  }
 0x264   : > { %8414 = vmatprep.mubr.msk.bf16.mxu0 %vm9107_vm7, %v9106_v23  ;;  %8407 = vmatpush3.bf16.msra.mxu0 %v8469_v31 }
 0x265   : > { %8388 = vmatpush3.bf16.msra.mxu1 %v8470_v45  ;;  %8408 = vmatprep.subr.bf16.mxu0 %v9106_v23 }
 0x266   : > { %8389 = vmatprep.subr.bf16.mxu1 %v9106_v23 }
 0x268   : > { %8409 = vmatpush3.bf16.msra.mxu0 %v8471_v32 }
 0x269   : > { %8390 = vmatpush3.bf16.msra.mxu1 %v8472_v33  ;;  %8410 = vmatprep.subr.bf16.mxu0 %v9106_v23 }
 0x26a   : > { %8418 = vmatprep.subr.mxu1 %v9106_v23 }
 0x26c   : > { %8411 = vmatpush3.bf16.msra.mxu0 %v8473_v34 }
 0x26d   : > { %8412 = vmatprep.subr.bf16.mxu0 %v9106_v23 }
 0x270   : > { %8413 = vmatpush3.bf16.msra.mxu0 %v8474_v35 }
 0x271   : > { %2075 = vmatprep.subr.bf16.mxu0 %v8477_v57 }
 0x313   : > { %v1261_v36 = vpop.f32.mrf.mxu0  ;;  %v1329_v37 = vpop.f32.mrf.mxu1 }
 0x314   : > { %v1330_v38 = vadd.f32 %v1329_v37, %v1261_v36 }
 0x315   : > { %v8358_v39 = vpop.f32.mrf.mxu0  ;;  %v8370_v42 = vpop.f32.mrf.mxu1 }
 0x317   : > { %v1264_v44 = vpop.f32.mrf.mxu0  ;;  %v1332_v46 = vpop.f32.mrf.mxu1 }
 0x318   : > { %v1333_v47 = vadd.f32 %v1332_v46, %v1264_v44 }
 0x319   : > { %v8359_v48 = vpop.f32.mrf.mxu0  ;;  %v8371_v49 = vpop.f32.mrf.mxu1 }
 0x31b   : > { %v8382_v50 = vpop.f32.mrf.mxu0 }
 0x31d   : > { %v1406_v51 = vpop.f32.mrf.mxu0 }
 0x31e   : > { %v1424_v52 = vpack.c.bf16 %v8382_v50, %v1406_v51 }
 0x320   : > { %8392 = vmatmul.mubr.msk.bf16.vlgmr.msra.gmra.mxu1 %vm423_vm1, %v1424_v52 }
 0x321   : > { %8422 = vmatprep.mubr.msk.f32.mxu1 %vm9107_vm7, %v9106_v23 }
 0x323   : > { %v8405_v53 = vpop.f32.mrf.mxu0 }
 0x325   : > { %v1565_v54 = vpop.f32.mrf.mxu0 }
 0x326   : > { %v1583_v55 = vpack.c.bf16 %v8405_v53, %v1565_v54 }
 0x328   : > { %8415 = vmatmul.mubr.msk.bf16.vlgmr.msra.gmra.mxu0 %vm423_vm1, %v1583_v55 }
 0x329   : > { %2107 = vmatprep.mubr.bf16.mxu0 %v9105_v2  ;;  %2076 = vmatpush1.bf16.msra.mxu0 %v8475_v56 }
 0x32a   : > { %2077 = vmatprep.subr.bf16.mxu0 %v8483_v58 }
 0x32d   : > { %2078 = vmatpush1.bf16.msra.mxu0 %v8481_v59  ;;  %v8480_v59 = vld [vmem:[%s11078_s5 + $0xf4] ss:$8 sps:$4 sm:$0xff]  }
 0x32e   : > { %2079 = vmatprep.subr.bf16.mxu0 %v8489_v60  ;;  %v8478_v60 = vld [vmem:[%s11078_s5 + $0xf0] ss:$8 sps:$4 sm:$0xff]  }
 0x331   : > { %2080 = vmatpush1.bf16.msra.mxu0 %v8487_v61  ;;  %v8486_v61 = vld [vmem:[%s11078_s5 + $0xe4] ss:$8 sps:$4 sm:$0xff]  }
 0x332   : > { %2081 = vmatprep.subr.bf16.mxu0 %v8495_v62  ;;  %v8484_v62 = vld [vmem:[%s11078_s5 + $0xe0] ss:$8 sps:$4 sm:$0xff]  }
 0x335   : > { %2082 = vmatpush1.bf16.msra.mxu0 %v8493_v63  ;;  %v8492_v63 = vld [vmem:[%s11078_s5 + $0xd4] ss:$8 sps:$4 sm:$0xff]  }
 0x336   : > { %2083 = vmatprep.subr.bf16.mxu0 %v8501_v0  ;;  %v8490_v0 = vld [vmem:[%s11078_s5 + $0xd0] ss:$8 sps:$4 sm:$0xff]  }
 0x339   : > { %2084 = vmatpush1.bf16.msra.mxu0 %v8499_v1  ;;  %v8498_v1 = vld [vmem:[%s11078_s5 + $0xc4] ss:$8 sps:$4 sm:$0xff]  }
 0x33a   : > { %2085 = vmatprep.subr.bf16.mxu0 %v8507_v4  ;;  %v8496_v4 = vld [vmem:[%s11078_s5 + $0xc0] ss:$8 sps:$4 sm:$0xff]  }
 0x33d   : > { %2086 = vmatpush1.bf16.msra.mxu0 %v8505_v5  ;;  %v8504_v5 = vld [vmem:[%s11078_s5 + $0xb4] ss:$8 sps:$4 sm:$0xff]  }
 0x33e   : > { %2087 = vmatprep.subr.bf16.mxu0 %v8513_v6  ;;  %v8502_v6 = vld [vmem:[%s11078_s5 + $0xb0] ss:$8 sps:$4 sm:$0xff]  }
 0x341   : > { %2088 = vmatpush1.bf16.msra.mxu0 %v8511_v7  ;;  %v8510_v7 = vld [vmem:[%s11078_s5 + $0xa4] ss:$8 sps:$4 sm:$0xff]  }
 0x342   : > { %2089 = vmatprep.subr.bf16.mxu0 %v8519_v8  ;;  %v8508_v8 = vld [vmem:[%s11078_s5 + $0xa0] ss:$8 sps:$4 sm:$0xff]  }
 0x345   : > { %2090 = vmatpush1.bf16.msra.mxu0 %v8517_v9  ;;  %v8516_v9 = vld [vmem:[%s11078_s5 + $0x94] ss:$8 sps:$4 sm:$0xff]  }
 0x3e0   : > { %v1486_v10 = vpop.f32.mrf.mxu1 }
 0x3e1   : > { %v1493_v16 = vadd.f32 %v1486_v10, %v1330_v38  ;;  %v8514_v10 = vld [vmem:[%s11078_s5 + $0x90] ss:$8 sps:$4 sm:$0xff]  }
 0x3e2   : > { %v8393_v11 = vpop.f32.mrf.mxu1 }
 0x3e3   : > { %v8522_v11 = vld [vmem:[%s11078_s5 + $0x84] ss:$8 sps:$4 sm:$0xff]  }
 0x3e4   : > { %v1489_v13 = vpop.f32.mrf.mxu1 }
 0x3e5   : > { %v1494_v27 = vadd.f32 %v1489_v13, %v1333_v47  ;;  %v8520_v13 = vld [vmem:[%s11078_s5 + $0x80] ss:$8 sps:$4 sm:$0xff]  }
 0x3e6   : > { %v8394_v14 = vpop.f32.mrf.mxu1 }
 0x3e7   : > { %v8525_v14 = vld [vmem:[%s11078_s5 + $0x174] ss:$8 sps:$4 sm:$0xff]  }
 0x3e8   : > { %v1645_v15 = vpop.f32.mrf.mxu0  ;;  %2286 = vmatprep.subr.bf16.mxu0 %v8525_v14  ;;  %v8577_v14 = vld [vmem:[%s11080_s7 + $0x2c0] ss:$16 sps:$4 sm:$0xff]  }
 0x3e9   : > { %v1652_v17 = vadd.f32 %v1645_v15, %v1493_v16  ;;  %v8523_v16 = vld [vmem:[%s11078_s5 + $0x170] ss:$8 sps:$4 sm:$0xff]  }
 0x3ea   : > { %v8416_v26 = vpop.f32.mrf.mxu0 }
 0x3eb   : > { %v1661_v22 = vadd.f32 %v7037_v18, %v1652_v17 }
 0x3ec   : > { %v1648_v19 = vpop.f32.mrf.mxu0 }
 0x3ed   : > { %v1653_v20 = vadd.f32 %v1648_v19, %v1494_v27  ;;  %v8528_v27 = vld [vmem:[%s11078_s5 + $0x164] ss:$8 sps:$4 sm:$0xff]  }
 0x3ee   : > { %v8417_v21 = vpop.f32.mrf.mxu0 }
 0x3ef   : > { %v1662_v28 = vadd.f32 %v7037_v18, %v1653_v20  ;;  %v8526_v20 = vld [vmem:[%s11078_s5 + $0x160] ss:$8 sps:$4 sm:$0xff]  }
 0x3f1   : > { %v1663_v29 = vadd.f32 %v1662_v28, %v1661_v22 }
 0x3f3   : > { %v1664_v30 = vrot.slane %v1663_v29, 4 }
 0x3f5   : > { %v1665_v41 = vadd.f32 %v1664_v30, %v1663_v29  ;;  %v8540_v29 = vld [vmem:[%s11078_s5 + $0x144] ss:$8 sps:$4 sm:$0xff]   ;;  %v8538_v30 = vld [vmem:[%s11078_s5 + $0x140] ss:$8 sps:$4 sm:$0xff]  }
 0x3f7   : > { %v1666_v31 = vrot.slane %v1665_v41, 2 }
 0x3f9   : > { %v1667_v45 = vadd.f32 %v1666_v31, %v1665_v41  ;;  %v8546_v41 = vld [vmem:[%s11078_s5 + $0x134] ss:$8 sps:$4 sm:$0xff]  }
 0x3fa   : > { %v8531_v31 = vld [vmem:[%s11078_s5 + $0x1f4] ss:$8 sps:$4 sm:$0xff]  }
 0x3fb   : > { %v1668_v32 = vrot.slane %v1667_v45, 1 }
 0x3fd   : > { %v1669_v33 = vadd.f32 %v1668_v32, %v1667_v45  ;;  %v8529_v45 = vld [vmem:[%s11078_s5 + $0x1f0] ss:$8 sps:$4 sm:$0xff]   ;;  %v8537_v32 = vld [vmem:[%s11078_s5 + $0x1e4] ss:$8 sps:$4 sm:$0xff]  }
 0x3ff   : > { %v1671_v34 = vmul.f32 0.0625, %v1669_v33  ;;  %v8544_v33 = vld [vmem:[%s11078_s5 + $0x130] ss:$8 sps:$4 sm:$0xff]  }
 0x401   : > { %v1672_v35 = vsub.f32 %v1661_v22, %v1671_v34  ;;  %v1673_v36 = vsub.f32 %v1662_v28, %v1671_v34  ;;  %v8534_v22 = vld [vmem:[%s11078_s5 + $0x154] ss:$8 sps:$4 sm:$0xff]   ;;  %v8532_v28 = vld [vmem:[%s11078_s5 + $0x150] ss:$8 sps:$4 sm:$0xff]   ;;  %v8535_v34 = vld [vmem:[%s11078_s5 + $0x1e0] ss:$8 sps:$4 sm:$0xff]  }
 0x403   : > { %v1674_v37 = vmul.f32 %v1672_v35, %v1672_v35  ;;  %v1675_v38 = vmul.f32 %v1673_v36, %v1673_v36 }
 0x405   : > { %v1676_v39 = vadd.f32 %v1675_v38, %v1674_v37  ;;  %v8549_v37 = vld [vmem:[%s11078_s5 + $0x1c4] ss:$8 sps:$4 sm:$0xff]   ;;  %v8550_v38 = vld [vmem:[%s11078_s5 + $0x120] ss:$8 sps:$4 sm:$0xff]  }
 0x407   : > { %v1677_v42 = vrot.slane %v1676_v39, 4 }
 0x409   : > { %v1678_v44 = vadd.f32 %v1677_v42, %v1676_v39  ;;  %v8552_v39 = vld [vmem:[%s11078_s5 + $0x124] ss:$8 sps:$4 sm:$0xff]   ;;  %v8553_v42 = vld [vmem:[%s11078_s5 + $0x1b0] ss:$8 sps:$4 sm:$0xff]  }
 0x40b   : > { %v1679_v46 = vrot.slane %v1678_v44, 2 }
 0x40d   : > { %v1680_v47 = vadd.f32 %v1679_v46, %v1678_v44  ;;  %v8555_v44 = vld [vmem:[%s11078_s5 + $0x1b4] ss:$8 sps:$4 sm:$0xff]  }
 0x40e   : > { %v8558_v46 = vld [vmem:[%s11078_s5 + $0x114] ss:$8 sps:$4 sm:$0xff]  }
 0x40f   : > { %v1681_v48 = vrot.slane %v1680_v47, 1 }
 0x411   : > { %v1682_v49 = vadd.f32 %v1681_v48, %v1680_v47  ;;  %v8561_v47 = vld [vmem:[%s11078_s5 + $0x1a4] ss:$8 sps:$4 sm:$0xff]   ;;  %v8556_v48 = vld [vmem:[%s11078_s5 + $0x110] ss:$8 sps:$4 sm:$0xff]  }
 0x413   : > { %v1683_v50 = vmul.f32 0.0625, %v1682_v49  ;;  %v8559_v49 = vld [vmem:[%s11078_s5 + $0x1a0] ss:$8 sps:$4 sm:$0xff]  }
 0x415   : > { %v1684_v51 = vadd.f32 1e-05, %v1683_v50  ;;  %v8562_v50 = vld [vmem:[%s11078_s5 + $0x100] ss:$8 sps:$4 sm:$0xff]  }
 0x417   : > { %9083 = vrsqrt.f32 %v1684_v51  ;;  %v8564_v51 = vld [vmem:[%s11078_s5 + $0x104] ss:$8 sps:$4 sm:$0xff]  }
 0x424   : > { %v9084_v52 = vpop.eup %9083 }
 0x425   : > { %v1687_v53 = vmul.f32 %v9084_v52, %v1673_v36  ;;  %v1686_v54 = vmul.f32 %v9084_v52, %v1672_v35  ;;  %v8543_v35 = vld [vmem:[%s11078_s5 + $0x1d4] ss:$8 sps:$4 sm:$0xff]   ;;  %v8541_v36 = vld [vmem:[%s11078_s5 + $0x1d0] ss:$8 sps:$4 sm:$0xff]  }
 0x426   : > { %v8565_v52 = vld [vmem:[%s11078_s5 + $0x190] ss:$8 sps:$4 sm:$0xff]  }
 0x427   : > { %vm1689_vm1 = vcmp.gt.f32.partialorder %v1687_v53, 0.0  ;;  %v1691_v55 = vmul.f32 0.2, %v1687_v53  ;;  %v1690_v56 = vmul.f32 0.2, %v1686_v54  ;;  %vm1688_vm8 = vcmp.gt.f32.partialorder %v1686_v54, 0.0 }
 0x429   : > { %v9583_v57 = vsel %vm1689_vm1, %v1687_v53, %v1691_v55  ;;  %v9587_v58 = vsel %vm1688_vm8, %v1686_v54, %v1690_v56  ;;  %v8567_v53 = vld [vmem:[%s11078_s5 + $0x194] ss:$8 sps:$4 sm:$0xff]   ;;  %v8570_v54 = vld [vmem:[%s11078_s5 + $0x184] ss:$8 sps:$4 sm:$0xff]   ;;  %v8568_v55 = vld [vmem:[%s11078_s5 + $0x180] ss:$8 sps:$4 sm:$0xff]  }
 0x42a   : > { %8419 = vmatpush3.msra.mxu1 %v9583_v57  ;;  %vm6882_vm1 = vcmask 2048  }
 0x42b   : > { %8420 = vmatprep.subr.mxu1 %v9106_v23 }
 0x42c   : > { %8421 = vmatpush3.msra.mxu1 %v9587_v58 }
 0x42d   : > { %8423 = vmatmul.mubr.msk.f32.vlgmr.msra.gmra.mxu1 %vm1694_vm9, %v9260_v24  ;;  %8425 = vmatprep.subr.mxu1 %v9106_v23 }
 0x42e   : > { %8426 = vmatpush3.msra.mxu1 %v9583_v57  ;;  %8429 = vmatprep.mubr.msk.f32.mxu1 %vm9107_vm7, %v9106_v23 }
 0x42f   : > { %8427 = vmatprep.subr.mxu1 %v9106_v23 }
 0x430   : > { %8428 = vmatpush3.msra.mxu1 %v9587_v58 }
 0x431   : > { %8430 = vmatmul.mubr.msk.f32.vlgmr.msra.gmra.mxu1 %vm1694_vm9, %v9270_v25  ;;  %1954 = vmatprep.subr.bf16.mxu1 %v8480_v59 }
 0x432   : > { %1955 = vmatpush1.bf16.msra.mxu1 %v8478_v60  ;;  %1986 = vmatprep.mubr.bf16.mxu1 %v9105_v2 }
 0x433   : > { %1956 = vmatprep.subr.bf16.mxu1 %v8486_v61 }
 0x436   : > { %1957 = vmatpush1.bf16.msra.mxu1 %v8484_v62 }
 0x437   : > { %1958 = vmatprep.subr.bf16.mxu1 %v8492_v63 }
 0x43a   : > { %1959 = vmatpush1.bf16.msra.mxu1 %v8490_v0 }
 0x43b   : > { %1960 = vmatprep.subr.bf16.mxu1 %v8498_v1 }
 0x43e   : > { %1961 = vmatpush1.bf16.msra.mxu1 %v8496_v4 }
 0x43f   : > { %1962 = vmatprep.subr.bf16.mxu1 %v8504_v5 }
 0x442   : > { %1963 = vmatpush1.bf16.msra.mxu1 %v8502_v6 }
 0x443   : > { %1964 = vmatprep.subr.bf16.mxu1 %v8510_v7 }
 0x446   : > { %1965 = vmatpush1.bf16.msra.mxu1 %v8508_v8 }
 0x447   : > { %1966 = vmatprep.subr.bf16.mxu1 %v8516_v9 }
 0x44a   : > { %1967 = vmatpush1.bf16.msra.mxu1 %v8514_v10  ;;  %v8571_v10 = vld [vmem:[%s11080_s7 + $0x2e0] ss:$16 sps:$4 sm:$0xff]  }
 0x44b   : > { %1968 = vmatprep.subr.bf16.mxu1 %v8522_v11  ;;  %v8573_v11 = vld [vmem:[%s11080_s7 + $0x2e4] ss:$16 sps:$4 sm:$0xff]  }
 0x44e   : > { %1969 = vmatpush1.bf16.msra.mxu1 %v8520_v13  ;;  %v8579_v13 = vld [vmem:[%s11080_s7 + $0x2c4] ss:$16 sps:$4 sm:$0xff]  }
 0x44f   : > { %8432 = vmatprep.subr.mxu1 %v9106_v23 }
 0x4ed   : > { %v1763_v15 = vpop.f32.mrf.mxu1 }
 0x4ee   : > { %v1783_v26 = vpack.c.bf16 %v1763_v15, %v1763_v15  ;;  %v8585_v15 = vld [vmem:[%s11080_s7 + $0x2a4] ss:$16 sps:$4 sm:$0xff]  }
 0x4ef   : > { %v8424_v17 = vpop.f32.mrf.mxu1 }
 0x4f0   : > { %2108 = vmatmul.mubr.bf16.vlgmr.msra.gmra.mxu0 %v1783_v26  ;;  %v8591_v26 = vld [vmem:[%s11080_s7 + $0x284] ss:$16 sps:$4 sm:$0xff]  }
 0x4f1   : > { %v1852_v18 = vpop.f32.mrf.mxu1  ;;  %2287 = vmatpush1.bf16.msra.mxu0 %v8523_v16  ;;  %2318 = vmatprep.mubr.bf16.mxu0 %v9105_v2  ;;  %v8583_v16 = vld [vmem:[%s11080_s7 + $0x2a0] ss:$16 sps:$4 sm:$0xff]   ;;  %v8597_v17 = vld [vmem:[%s11080_s7 + $0x264] ss:$16 sps:$4 sm:$0xff]  }
 0x4f2   : > { %v1873_v19 = vpack.c.bf16 %v1852_v18, %v1852_v18  ;;  %2288 = vmatprep.subr.bf16.mxu0 %v8528_v27  ;;  %v8589_v27 = vld [vmem:[%s11080_s7 + $0x280] ss:$16 sps:$4 sm:$0xff]  }
 0x4f3   : > { %v8431_v21 = vpop.f32.mrf.mxu1  ;;  %v8595_v18 = vld [vmem:[%s11080_s7 + $0x260] ss:$16 sps:$4 sm:$0xff]  }
 0x4f4   : > { %1987 = vmatmul.mubr.bf16.vlgmr.msra.gmra.mxu1 %v1873_v19  ;;  %v8603_v19 = vld [vmem:[%s11080_s7 + $0x244] ss:$16 sps:$4 sm:$0xff]  }
 0x4f5   : > { %8433 = vmatpush3.msra.mxu1 %v9583_v57  ;;  %8436 = vmatprep.mubr.msk.f32.mxu1 %vm9107_vm7, %v9106_v23  ;;  %v8609_v21 = vld [vmem:[%s11080_s7 + $0x224] ss:$16 sps:$4 sm:$0xff]  }
 0x4f6   : > { %8434 = vmatprep.subr.mxu1 %v9106_v23  ;;  %2289 = vmatpush1.bf16.msra.mxu0 %v8526_v20  ;;  %v8601_v20 = vld [vmem:[%s11080_s7 + $0x240] ss:$16 sps:$4 sm:$0xff]  }
 0x4f7   : > { %8435 = vmatpush3.msra.mxu1 %v9587_v58  ;;  %2290 = vmatprep.subr.bf16.mxu0 %v8534_v22  ;;  %v8607_v22 = vld [vmem:[%s11080_s7 + $0x220] ss:$16 sps:$4 sm:$0xff]  }
 0x4f8   : > { %8439 = vmatprep.subr.mxu1 %v9106_v23 }
 0x4fa   : > { %2291 = vmatpush1.bf16.msra.mxu0 %v8532_v28  ;;  %v8615_v28 = vld [vmem:[%s11080_s7 + $0x204] ss:$16 sps:$4 sm:$0xff]  }
 0x4fb   : > { %2292 = vmatprep.subr.bf16.mxu0 %v8540_v29  ;;  %v8613_v29 = vld [vmem:[%s11080_s7 + $0x200] ss:$16 sps:$4 sm:$0xff]  }
 0x4fc   : > { %8437 = vmatmul.mubr.msk.f32.vlgmr.msra.gmra.mxu1 %vm1694_vm9, %v9340_v40 }
 0x4fd   : > { %8440 = vmatpush3.msra.mxu1 %v9583_v57  ;;  %8443 = vmatprep.mubr.msk.f32.mxu1 %vm9107_vm7, %v9106_v23 }
 0x4fe   : > { %8441 = vmatprep.subr.mxu1 %v9106_v23  ;;  %2293 = vmatpush1.bf16.msra.mxu0 %v8538_v30  ;;  %v8621_v30 = vld [vmem:[%s11080_s7 + $0x3e4] ss:$16 sps:$4 sm:$0xff]  }
 0x4ff   : > { %8442 = vmatpush3.msra.mxu1 %v9587_v58  ;;  %2294 = vmatprep.subr.bf16.mxu0 %v8546_v41  ;;  %v8619_v41 = vld [vmem:[%s11080_s7 + $0x3e0] ss:$16 sps:$4 sm:$0xff]  }
 0x500   : > { %8444 = vmatmul.mubr.msk.f32.vlgmr.msra.gmra.mxu1 %vm1694_vm9, %v9353_v43  ;;  %2499 = vmatprep.subr.bf16.mxu1 %v8531_v31  ;;  %v8627_v31 = vld [vmem:[%s11080_s7 + $0x3c4] ss:$16 sps:$4 sm:$0xff]  }
 0x501   : > { %2500 = vmatpush1.bf16.msra.mxu1 %v8529_v45  ;;  %2531 = vmatprep.mubr.bf16.mxu1 %v9105_v2  ;;  %v8547_v2 = vld [vmem:[%s11078_s5 + $0x1c0] ss:$8 sps:$4 sm:$0xff]  }
 0x502   : > { %2501 = vmatprep.subr.bf16.mxu1 %v8537_v32  ;;  %2295 = vmatpush1.bf16.msra.mxu0 %v8544_v33  ;;  %v8625_v45 = vld [vmem:[%s11080_s7 + $0x3c0] ss:$16 sps:$4 sm:$0xff]   ;;  %v8633_v32 = vld [vmem:[%s11080_s7 + $0x3a4] ss:$16 sps:$4 sm:$0xff]  }
 0x503   : > { %2296 = vmatprep.subr.bf16.mxu0 %v8552_v39  ;;  %v8631_v33 = vld [vmem:[%s11080_s7 + $0x3a0] ss:$16 sps:$4 sm:$0xff]   ;;  %v2546_v39 = vsub.s32 0, %v9183_v3 }
 0x505   : > { %2502 = vmatpush1.bf16.msra.mxu1 %v8535_v34  ;;  %v8639_v34 = vld [vmem:[%s11080_s7 + $0x384] ss:$16 sps:$4 sm:$0xff]  }
 0x506   : > { %2503 = vmatprep.subr.bf16.mxu1 %v8543_v35  ;;  %2297 = vmatpush1.bf16.msra.mxu0 %v8550_v38  ;;  %v8637_v35 = vld [vmem:[%s11080_s7 + $0x380] ss:$16 sps:$4 sm:$0xff]  }
 0x507   : > { %2298 = vmatprep.subr.bf16.mxu0 %v8558_v46  ;;  %v8649_v38 = vld [vmem:[%s11080_s7 + $0x340] ss:$16 sps:$4 sm:$0xff]   ;;  %v2550_v46 = vsub.s32 1, %v9183_v3 }
 0x509   : > { %2504 = vmatpush1.bf16.msra.mxu1 %v8541_v36  ;;  %v8645_v36 = vld [vmem:[%s11080_s7 + $0x364] ss:$16 sps:$4 sm:$0xff]  }
 0x50a   : > { %2505 = vmatprep.subr.bf16.mxu1 %v8549_v37  ;;  %2299 = vmatpush1.bf16.msra.mxu0 %v8556_v48  ;;  %v8643_v37 = vld [vmem:[%s11080_s7 + $0x360] ss:$16 sps:$4 sm:$0xff]  }
 0x50b   : > { %2300 = vmatprep.subr.bf16.mxu0 %v8564_v51 }
 0x50d   : > { %2506 = vmatpush1.bf16.msra.mxu1 %v8547_v2  ;;  %v8651_v2 = vld [vmem:[%s11080_s7 + $0x344] ss:$16 sps:$4 sm:$0xff]  }
 0x50e   : > { %2507 = vmatprep.subr.bf16.mxu1 %v8555_v44  ;;  %2301 = vmatpush1.bf16.msra.mxu0 %v8562_v50  ;;  %v2542_v44 = vld [vmem:[%s11079_s6] sm:$0x3] }
 0x511   : > { %2508 = vmatpush1.bf16.msra.mxu1 %v8553_v42 }
 0x512   : > { %2509 = vmatprep.subr.bf16.mxu1 %v8561_v47 }
 0x515   : > { %2510 = vmatpush1.bf16.msra.mxu1 %v8559_v49  ;;  %v2547_v49 = vrot.slane %v2542_v44, %v2546_v39 }
 0x516   : > { %2511 = vmatprep.subr.bf16.mxu1 %v8567_v53 }
 0x519   : > { %2512 = vmatpush1.bf16.msra.mxu1 %v8565_v52 }
 0x51a   : > { %2513 = vmatprep.subr.bf16.mxu1 %v8570_v54  ;;  %v2551_v54 = vrot.slane %v2542_v44, %v2550_v46 }
 0x51d   : > { %2514 = vmatpush1.bf16.msra.mxu1 %v8568_v55 }
 0x51e   : > { %3201 = vmatprep.subr.bf16.mxu1 %v8573_v11 }
 0x5b0   : > { %v2109_v56 = vpop.f32.mrf.mxu0 }
 0x5b2   : > { %v2111_v57 = vpop.f32.mrf.mxu0 }
 0x5b4   : > { %v1988_v58 = vpop.f32.mrf.mxu1  ;;  %v2113_v59 = vpop.f32.mrf.mxu0 }
 0x5b5   : > { %v9763_v60 = vadd.f32 %v2109_v56, %v1988_v58 }
 0x5b6   : > { %v1990_v61 = vpop.f32.mrf.mxu1  ;;  %v2114_v62 = vpop.f32.mrf.mxu0 }
 0x5b7   : > { %v9765_v63 = vadd.f32 %v2111_v57, %v1990_v61 }
 0x5b8   : > { %v1992_v0 = vpop.f32.mrf.mxu1 }
 0x5ba   : > { %v1993_v1 = vpop.f32.mrf.mxu1 }
 0x5bc   : > { %v2184_v4 = vpop.f32.mrf.mxu1 }
 0x5bd   : > { %v2205_v5 = vpack.c.bf16 %v2184_v4, %v2184_v4 }
 0x5be   : > { %v8438_v6 = vpop.f32.mrf.mxu1 }
 0x5bf   : > { %2319 = vmatmul.mubr.bf16.vlgmr.msra.gmra.mxu0 %v2205_v5 }
 0x5c0   : > { %v2397_v7 = vpop.f32.mrf.mxu1  ;;  %2668 = vmatprep.mubr.f32.mxu0 %v9106_v23 }
 0x5c1   : > { %v2418_v8 = vpack.c.bf16 %v2397_v7, %v2397_v7 }
 0x5c2   : > { %v8445_v9 = vpop.f32.mrf.mxu1 }
 0x5c3   : > { %2532 = vmatmul.mubr.bf16.vlgmr.msra.gmra.mxu1 %v2418_v8 }
 0x5c4   : > { %3202 = vmatpush1.bf16.msra.mxu1 %v8571_v10 }
 0x5c5   : > { %3203 = vmatprep.subr.bf16.mxu1 %v8579_v13 }
 0x5c8   : > { %3204 = vmatpush1.bf16.msra.mxu1 %v8577_v14 }
 0x5c9   : > { %3205 = vmatprep.subr.bf16.mxu1 %v8585_v15 }
 0x5cc   : > { %3206 = vmatpush1.bf16.msra.mxu1 %v8583_v16 }
 0x5cd   : > { %3207 = vmatprep.subr.bf16.mxu1 %v8591_v26 }
 0x5d0   : > { %3208 = vmatpush1.bf16.msra.mxu1 %v8589_v27 }
 0x5d1   : > { %3209 = vmatprep.subr.bf16.mxu1 %v8597_v17 }
 0x5d4   : > { %3210 = vmatpush1.bf16.msra.mxu1 %v8595_v18 }
 0x5d5   : > { %3211 = vmatprep.subr.bf16.mxu1 %v8603_v19 }
 0x5d8   : > { %3212 = vmatpush1.bf16.msra.mxu1 %v8601_v20 }
 0x5d9   : > { %3213 = vmatprep.subr.bf16.mxu1 %v8609_v21 }
 0x5dc   : > { %3214 = vmatpush1.bf16.msra.mxu1 %v8607_v22 }
 0x5dd   : > { %3215 = vmatprep.subr.bf16.mxu1 %v8615_v28 }
 0x5e0   : > { %3216 = vmatpush1.bf16.msra.mxu1 %v8613_v29 }
 0x5e1   : > { %3217 = vmatprep.subr.bf16.mxu1 %v8621_v30 }
 0x5e4   : > { %3218 = vmatpush2.bf16.msra.mxu1 %v8619_v41 }
 0x5e5   : > { %3219 = vmatprep.subr.bf16.mxu1 %v8627_v31 }
 0x5e8   : > { %3220 = vmatpush2.bf16.msra.mxu1 %v8625_v45 }
 0x5e9   : > { %3221 = vmatprep.subr.bf16.mxu1 %v8633_v32 }
 0x5ec   : > { %3222 = vmatpush2.bf16.msra.mxu1 %v8631_v33 }
 0x5ed   : > { %3223 = vmatprep.subr.bf16.mxu1 %v8639_v34 }
 0x5f0   : > { %3224 = vmatpush2.bf16.msra.mxu1 %v8637_v35 }
 0x5f1   : > { %3225 = vmatprep.subr.bf16.mxu1 %v8645_v36 }
 0x5f4   : > { %3226 = vmatpush2.bf16.msra.mxu1 %v8643_v37 }
 0x5f5   : > { %3227 = vmatprep.subr.bf16.mxu1 %v8651_v2 }
 0x5f8   : > { %3228 = vmatpush2.bf16.msra.mxu1 %v8649_v38 }
 0x67f   : > { %v2320_v42 = vpop.f32.mrf.mxu0 }
 0x680   : > { %v2327_v48 = vadd.f32 %v2320_v42, %v9763_v60 }
 0x681   : > { %v2322_v47 = vpop.f32.mrf.mxu0 }
 0x682   : > { %v2328_v52 = vadd.f32 %v2322_v47, %v9765_v63 }
 0x683   : > { %v2324_v50 = vpop.f32.mrf.mxu0  ;;  %v2533_v51 = vpop.f32.mrf.mxu1 }
 0x684   : > { %v2540_v53 = vadd.f32 %v2533_v51, %v2327_v48  ;;  %v8574_v50 = vld [vmem:[%s11080_s7 + $0x2e8] ss:$16 sps:$4 sm:$0xff]   ;;  %v8582_v51 = vld [vmem:[%s11080_s7 + $0x2cc] ss:$16 sps:$4 sm:$0xff]  }
 0x685   : > { %v2325_v55 = vpop.f32.mrf.mxu0  ;;  %v2535_v56 = vpop.f32.mrf.mxu1 }
 0x686   : > { %v2554_v57 = vadd.f32 %v2547_v49, %v2540_v53  ;;  %v2541_v58 = vadd.f32 %v2535_v56, %v2328_v52  ;;  %v8576_v49 = vld [vmem:[%s11080_s7 + $0x2ec] ss:$16 sps:$4 sm:$0xff]   ;;  %v8586_v53 = vld [vmem:[%s11080_s7 + $0x2a8] ss:$16 sps:$4 sm:$0xff]  }
 0x687   : > { %v2537_v59 = vpop.f32.mrf.mxu1  ;;  %v8588_v52 = vld [vmem:[%s11080_s7 + $0x2ac] ss:$16 sps:$4 sm:$0xff]   ;;  %v8598_v56 = vld [vmem:[%s11080_s7 + $0x268] ss:$16 sps:$4 sm:$0xff]  }
 0x688   : > { %v2556_v61 = vrot.slane %v2554_v57, 4  ;;  %v2555_v62 = vadd.f32 %v2551_v54, %v2541_v58  ;;  %v8592_v54 = vld [vmem:[%s11080_s7 + $0x288] ss:$16 sps:$4 sm:$0xff]   ;;  %v8600_v55 = vld [vmem:[%s11080_s7 + $0x26c] ss:$16 sps:$4 sm:$0xff]  }
 0x689   : > { %v2538_v0 = vpop.f32.mrf.mxu1  ;;  %v8604_v58 = vld [vmem:[%s11080_s7 + $0x248] ss:$16 sps:$4 sm:$0xff]   ;;  %v8612_v59 = vld [vmem:[%s11080_s7 + $0x22c] ss:$16 sps:$4 sm:$0xff]  }
 0x68a   : > { %v2557_v60 = vadd.f32 %v2556_v61, %v2554_v57  ;;  %v2562_v1 = vrot.slane %v2555_v62, 4  ;;  %v8610_v61 = vld [vmem:[%s11080_s7 + $0x228] ss:$16 sps:$4 sm:$0xff]  }
 0x68b   : > { %v8616_v0 = vld [vmem:[%s11080_s7 + $0x208] ss:$16 sps:$4 sm:$0xff]  }
 0x68c   : > { %v2558_v4 = vrot.slane %v2557_v60, 2  ;;  %v2563_v5 = vadd.f32 %v2562_v1, %v2555_v62  ;;  %v8622_v1 = vld [vmem:[%s11080_s7 + $0x3e8] ss:$16 sps:$4 sm:$0xff]  }
 0x68e   : > { %v2559_v6 = vadd.f32 %v2558_v4, %v2557_v60  ;;  %v2564_v7 = vrot.slane %v2563_v5, 2  ;;  %v8624_v60 = vld [vmem:[%s11080_s7 + $0x3ec] ss:$16 sps:$4 sm:$0xff]  }
 0x68f   : > { %v8630_v4 = vld [vmem:[%s11080_s7 + $0x3cc] ss:$16 sps:$4 sm:$0xff]  }
 0x690   : > { %v2560_v8 = vrot.slane %v2559_v6, 1  ;;  %v2565_v63 = vadd.f32 %v2564_v7, %v2563_v5  ;;  %v8628_v5 = vld [vmem:[%s11080_s7 + $0x3c8] ss:$16 sps:$4 sm:$0xff]  }
 0x691   : > { %v8634_v7 = vld [vmem:[%s11080_s7 + $0x3a8] ss:$16 sps:$4 sm:$0xff]  }
 0x692   : > { %v2561_v9 = vadd.f32 %v2560_v8, %v2559_v6  ;;  %v2566_v10 = vrot.slane %v2565_v63, 1  ;;  %v8636_v6 = vld [vmem:[%s11080_s7 + $0x3ac] ss:$16 sps:$4 sm:$0xff]  }
 0x693   : > { %v8642_v8 = vld [vmem:[%s11080_s7 + $0x38c] ss:$16 sps:$4 sm:$0xff]  }
 0x694   : > { %v2569_v11 = vmul.f32 0.125, %v2561_v9  ;;  %v2567_v13 = vadd.f32 %v2566_v10, %v2565_v63  ;;  %v8640_v63 = vld [vmem:[%s11080_s7 + $0x388] ss:$16 sps:$4 sm:$0xff]   ;;  %v8648_v9 = vld [vmem:[%s11080_s7 + $0x36c] ss:$16 sps:$4 sm:$0xff]  }
 0x695   : > { %v8646_v10 = vld [vmem:[%s11080_s7 + $0x368] ss:$16 sps:$4 sm:$0xff]  }
 0x696   : > { %v2571_v14 = vsub.f32 %v2554_v57, %v2569_v11  ;;  %v2570_v15 = vmul.f32 0.125, %v2567_v13  ;;  %v8606_v57 = vld [vmem:[%s11080_s7 + $0x24c] ss:$16 sps:$4 sm:$0xff]   ;;  %v8652_v13 = vld [vmem:[%s11080_s7 + $0x348] ss:$16 sps:$4 sm:$0xff]  }
 0x697   : > { %v8654_v11 = vld [vmem:[%s11080_s7 + $0x34c] ss:$16 sps:$4 sm:$0xff]  }
 0x698   : > { %v2573_v16 = vmul.f32 %v2571_v14, %v2571_v14  ;;  %v2572_v26 = vsub.f32 %v2555_v62, %v2570_v15  ;;  %v8618_v62 = vld [vmem:[%s11080_s7 + $0x20c] ss:$16 sps:$4 sm:$0xff]  }
 0x699   : > { %v8660_v15 = vld [vmem:[%s11080_s7 + $0x32c] ss:$16 sps:$4 sm:$0xff]  }
 0x69a   : > { %v2575_v27 = vrot.slane %v2573_v16, 4  ;;  %v2574_v17 = vmul.f32 %v2572_v26, %v2572_v26 }
 0x69c   : > { %v2576_v18 = vadd.f32 %v2575_v27, %v2573_v16  ;;  %v2581_v19 = vrot.slane %v2574_v17, 4  ;;  %v8655_v16 = vld [vmem:[%s11080_s7 + $0x320] ss:$16 sps:$4 sm:$0xff]   ;;  %v8663_v27 = vld [vmem:[%s11080_s7 + $0x304] ss:$16 sps:$4 sm:$0xff]  }
 0x69e   : > { %v2577_v20 = vrot.slane %v2576_v18, 2  ;;  %v2582_v21 = vadd.f32 %v2581_v19, %v2574_v17  ;;  %v8666_v17 = vld [vmem:[%s11080_s7 + $0x30c] ss:$16 sps:$4 sm:$0xff]   ;;  %v8664_v19 = vld [vmem:[%s11080_s7 + $0x308] ss:$16 sps:$4 sm:$0xff]  }
 0x6a0   : > { %v2578_v22 = vadd.f32 %v2577_v20, %v2576_v18  ;;  %v2583_v28 = vrot.slane %v2582_v21, 2  ;;  %v8661_v18 = vld [vmem:[%s11080_s7 + $0x300] ss:$16 sps:$4 sm:$0xff]   ;;  %v8669_v20 = vld [vmem:[%s11080_s7 + $0xe4] ss:$16 sps:$4 sm:$0xff]  }
 0x6a2   : > { %v2579_v29 = vrot.slane %v2578_v22, 1  ;;  %v2584_v30 = vadd.f32 %v2583_v28, %v2582_v21  ;;  %v8672_v21 = vld [vmem:[%s11080_s7 + $0xec] ss:$16 sps:$4 sm:$0xff]  }
 0x6a4   : > { %v2580_v41 = vadd.f32 %v2579_v29, %v2578_v22  ;;  %v2585_v31 = vrot.slane %v2584_v30, 1 }
 0x6a6   : > { %v2587_v45 = vmul.f32 0.125, %v2580_v41  ;;  %v2586_v32 = vadd.f32 %v2585_v31, %v2584_v30  ;;  %v8667_v31 = vld [vmem:[%s11080_s7 + $0xe0] ss:$16 sps:$4 sm:$0xff]  }
 0x6a8   : > { %v2589_v33 = vadd.f32 1e-05, %v2587_v45  ;;  %v2588_v34 = vmul.f32 0.125, %v2586_v32  ;;  %v8670_v45 = vld [vmem:[%s11080_s7 + $0xe8] ss:$16 sps:$4 sm:$0xff]  }
 0x6aa   : > { %9085 = vrsqrt.f32 %v2589_v33  ;;  %v2590_v35 = vadd.f32 1e-05, %v2588_v34  ;;  %v8675_v33 = vld [vmem:[%s11080_s7 + $0xc4] ss:$16 sps:$4 sm:$0xff]   ;;  %v8678_v34 = vld [vmem:[%s11080_s7 + $0xcc] ss:$16 sps:$4 sm:$0xff]  }
 0x6ac   : > { %9087 = vrsqrt.f32 %v2590_v35 }
 0x6b7   : > { %v9086_v36 = vpop.eup %9085 }
 0x6b8   : > { %v2593_v37 = vmul.f32 %v9086_v36, %v2571_v14  ;;  %v8657_v14 = vld [vmem:[%s11080_s7 + $0x324] ss:$16 sps:$4 sm:$0xff]   ;;  %v8673_v36 = vld [vmem:[%s11080_s7 + $0xc0] ss:$16 sps:$4 sm:$0xff]  }
 0x6b9   : > { %v9088_v2 = vpop.eup %9087  ;;  %3229 = vmatprep.subr.bf16.mxu1 %v8657_v14  ;;  %v8729_v14 = vld [vmem:[%s11080_s7 + $0x1a4] ss:$16 sps:$4 sm:$0xff]  }
 0x6ba   : > { %v2594_v38 = vmul.f32 %v9088_v2, %v2572_v26  ;;  %v2597_v42 = vmul.f32 0.2, %v2593_v37  ;;  %vm2595_vm11 = vcmp.gt.f32.partialorder %v2593_v37, 0.0  ;;  %v8658_v26 = vld [vmem:[%s11080_s7 + $0x328] ss:$16 sps:$4 sm:$0xff]   ;;  %3230 = vmatpush2.bf16.msra.mxu1 %v8655_v16 }
 0x6bb   : > { %3231 = vmatprep.subr.bf16.mxu1 %v8663_v27  ;;  %v8681_v2 = vld [vmem:[%s11080_s7 + $0xa4] ss:$16 sps:$4 sm:$0xff]   ;;  %v8727_v16 = vld [vmem:[%s11080_s7 + $0x1a0] ss:$16 sps:$4 sm:$0xff]  }
 0x6bc   : > { %vm2596_vm10 = vcmp.gt.f32.partialorder %v2594_v38, 0.0  ;;  %v2598_v44 = vmul.f32 0.2, %v2594_v38  ;;  %v9866_v48 = vsel %vm2595_vm11, %v2593_v37, %v2597_v42  ;;  %v8676_v37 = vld [vmem:[%s11080_s7 + $0xc8] ss:$16 sps:$4 sm:$0xff]  }
 0x6bd   : > { %v8679_v42 = vld [vmem:[%s11080_s7 + $0xa0] ss:$16 sps:$4 sm:$0xff]   ;;  %v8735_v27 = vld [vmem:[%s11080_s7 + $0x184] ss:$16 sps:$4 sm:$0xff]  }
 0x6be   : > { %v9863_v47 = vsel %vm2596_vm10, %v2594_v38, %v2598_v44  ;;  %3232 = vmatpush2.bf16.msra.mxu1 %v8661_v18  ;;  %v8684_v38 = vld [vmem:[%s11080_s7 + $0xac] ss:$16 sps:$4 sm:$0xff]   ;;  %v8682_v44 = vld [vmem:[%s11080_s7 + $0xa8] ss:$16 sps:$4 sm:$0xff]   ;;  %v8733_v18 = vld [vmem:[%s11080_s7 + $0x180] ss:$16 sps:$4 sm:$0xff]  }
 0x6bf   : > { %2634 = vmatprep.subr.mxu0 %v9863_v47  ;;  %3603 = vmatprep.subr.bf16.mxu1 %v8669_v20  ;;  %v8741_v20 = vld [vmem:[%s11080_s7 + $0x164] ss:$16 sps:$4 sm:$0xff]  }
 0x6c0   : > { %2635 = vmatpush1.msra.mxu0 %v9866_v48 }
 0x6c1   : > { %7154 = vmatmul.mubr.msk.f32.vlgmr.msra.gmra.mxu0 %vm2601_vm12, %v9260_v24  ;;  %2773 = vmatprep.subr.mxu0 %v9863_v47  ;;  %v8580_v24 = vld [vmem:[%s11080_s7 + $0x2c8] ss:$16 sps:$4 sm:$0xff]  }
 0x6c2   : > { %2774 = vmatpush1.msra.mxu0 %v9866_v48  ;;  %2807 = vmatprep.mubr.f32.mxu0 %v9106_v23 }
 0x6c3   : > { %3242 = vmatprep.subr.bf16.mxu0 %v8576_v49  ;;  %v8687_v49 = vld [vmem:[%s11080_s7 + $0x84] ss:$16 sps:$4 sm:$0xff]  }
 0x6c5   : > { %7155 = vmatmul.mubr.msk.f32.vlgmr.msra.gmra.mxu0 %vm2601_vm12, %v9270_v25  ;;  %v8594_v25 = vld [vmem:[%s11080_s7 + $0x28c] ss:$16 sps:$4 sm:$0xff]  }
 0x6c6   : > { %3243 = vmatpush1.bf16.msra.mxu0 %v8574_v50  ;;  %v8690_v50 = vld [vmem:[%s11080_s7 + $0x8c] ss:$16 sps:$4 sm:$0xff]  }
 0x6c7   : > { %3244 = vmatprep.subr.bf16.mxu0 %v8582_v51  ;;  %v8685_v51 = vld [vmem:[%s11080_s7 + $0x80] ss:$16 sps:$4 sm:$0xff]  }
 0x6ca   : > { %3245 = vmatpush1.bf16.msra.mxu0 %v8580_v24  ;;  %v8688_v24 = vld [vmem:[%s11080_s7 + $0x88] ss:$16 sps:$4 sm:$0xff]  }
 0x6cb   : > { %3246 = vmatprep.subr.bf16.mxu0 %v8588_v52  ;;  %v8693_v52 = vld [vmem:[%s11080_s7 + $0x64] ss:$16 sps:$4 sm:$0xff]  }
 0x6ce   : > { %3247 = vmatpush1.bf16.msra.mxu0 %v8586_v53  ;;  %v8696_v53 = vld [vmem:[%s11080_s7 + $0x6c] ss:$16 sps:$4 sm:$0xff]  }
 0x6cf   : > { %3248 = vmatprep.subr.bf16.mxu0 %v8594_v25  ;;  %v8691_v25 = vld [vmem:[%s11080_s7 + $0x60] ss:$16 sps:$4 sm:$0xff]  }
 0x6d2   : > { %3249 = vmatpush1.bf16.msra.mxu0 %v8592_v54  ;;  %v8694_v54 = vld [vmem:[%s11080_s7 + $0x68] ss:$16 sps:$4 sm:$0xff]  }
 0x6d3   : > { %3250 = vmatprep.subr.bf16.mxu0 %v8600_v55  ;;  %v8699_v55 = vld [vmem:[%s11080_s7 + $0x44] ss:$16 sps:$4 sm:$0xff]  }
 0x6d6   : > { %3251 = vmatpush1.bf16.msra.mxu0 %v8598_v56  ;;  %v8702_v56 = vld [vmem:[%s11080_s7 + $0x4c] ss:$16 sps:$4 sm:$0xff]  }
 0x6d7   : > { %3252 = vmatprep.subr.bf16.mxu0 %v8606_v57  ;;  %v8697_v57 = vld [vmem:[%s11080_s7 + $0x40] ss:$16 sps:$4 sm:$0xff]  }
 0x6da   : > { %3253 = vmatpush1.bf16.msra.mxu0 %v8604_v58  ;;  %v8700_v58 = vld [vmem:[%s11080_s7 + $0x48] ss:$16 sps:$4 sm:$0xff]  }
 0x6db   : > { %3254 = vmatprep.subr.bf16.mxu0 %v8612_v59  ;;  %v8705_v59 = vld [vmem:[%s11080_s7 + $0x24] ss:$16 sps:$4 sm:$0xff]  }
 0x6de   : > { %3255 = vmatpush1.bf16.msra.mxu0 %v8610_v61  ;;  %v8708_v61 = vld [vmem:[%s11080_s7 + $0x2c] ss:$16 sps:$4 sm:$0xff]  }
 0x6df   : > { %3256 = vmatprep.subr.bf16.mxu0 %v8618_v62  ;;  %v8703_v62 = vld [vmem:[%s11080_s7 + $0x20] ss:$16 sps:$4 sm:$0xff]  }
 0x6e2   : > { %3257 = vmatpush1.bf16.msra.mxu0 %v8616_v0  ;;  %v8706_v0 = vld [vmem:[%s11080_s7 + $0x28] ss:$16 sps:$4 sm:$0xff]  }
 0x6e3   : > { %3258 = vmatprep.subr.bf16.mxu0 %v8624_v60  ;;  %v8711_v60 = vld [vmem:[%s11080_s7 + $0x4] ss:$16 sps:$4 sm:$0xff]  }
 0x6e6   : > { %3259 = vmatpush2.bf16.msra.mxu0 %v8622_v1  ;;  %v8714_v1 = vld [vmem:[%s11080_s7 + $0xc] ss:$16 sps:$4 sm:$0xff]  }
 0x6e7   : > { %3260 = vmatprep.subr.bf16.mxu0 %v8630_v4  ;;  %v8709_v4 = vld [vmem:[%s11080_s7] ss:$16 sps:$4 sm:$0xff]  }
 0x6ea   : > { %3261 = vmatpush2.bf16.msra.mxu0 %v8628_v5  ;;  %v8712_v5 = vld [vmem:[%s11080_s7 + $0x8] ss:$16 sps:$4 sm:$0xff]  }
 0x6eb   : > { %3262 = vmatprep.subr.bf16.mxu0 %v8636_v6  ;;  %v8717_v6 = vld [vmem:[%s11080_s7 + $0x1e4] ss:$16 sps:$4 sm:$0xff]  }
 0x6ee   : > { %3263 = vmatpush2.bf16.msra.mxu0 %v8634_v7  ;;  %v8720_v7 = vld [vmem:[%s11080_s7 + $0x1ec] ss:$16 sps:$4 sm:$0xff]  }
 0x6ef   : > { %3264 = vmatprep.subr.bf16.mxu0 %v8642_v8  ;;  %v8715_v8 = vld [vmem:[%s11080_s7 + $0x1e0] ss:$16 sps:$4 sm:$0xff]  }
 0x6f2   : > { %3265 = vmatpush2.bf16.msra.mxu0 %v8640_v63  ;;  %v8718_v63 = vld [vmem:[%s11080_s7 + $0x1e8] ss:$16 sps:$4 sm:$0xff]  }
 0x6f3   : > { %3266 = vmatprep.subr.bf16.mxu0 %v8648_v9  ;;  %v8723_v9 = vld [vmem:[%s11080_s7 + $0x1c4] ss:$16 sps:$4 sm:$0xff]  }
 0x6f6   : > { %3267 = vmatpush2.bf16.msra.mxu0 %v8646_v10  ;;  %v8726_v10 = vld [vmem:[%s11080_s7 + $0x1cc] ss:$16 sps:$4 sm:$0xff]  }
 0x6f7   : > { %3268 = vmatprep.subr.bf16.mxu0 %v8654_v11  ;;  %v8721_v11 = vld [vmem:[%s11080_s7 + $0x1c0] ss:$16 sps:$4 sm:$0xff]  }
 0x6fa   : > { %3269 = vmatpush2.bf16.msra.mxu0 %v8652_v13  ;;  %v8724_v13 = vld [vmem:[%s11080_s7 + $0x1c8] ss:$16 sps:$4 sm:$0xff]  }
 0x6fb   : > { %3270 = vmatprep.subr.bf16.mxu0 %v8660_v15  ;;  %v8732_v15 = vld [vmem:[%s11080_s7 + $0x1ac] ss:$16 sps:$4 sm:$0xff]  }
 0x6fe   : > { %3271 = vmatpush2.bf16.msra.mxu0 %v8658_v26  ;;  %v8730_v26 = vld [vmem:[%s11080_s7 + $0x1a8] ss:$16 sps:$4 sm:$0xff]  }
 0x6ff   : > { %3272 = vmatprep.subr.bf16.mxu0 %v8666_v17  ;;  %v8738_v17 = vld [vmem:[%s11080_s7 + $0x18c] ss:$16 sps:$4 sm:$0xff]  }
 0x702   : > { %3273 = vmatpush2.bf16.msra.mxu0 %v8664_v19  ;;  %v8736_v19 = vld [vmem:[%s11080_s7 + $0x188] ss:$16 sps:$4 sm:$0xff]  }
 0x703   : > { %3644 = vmatprep.subr.bf16.mxu0 %v8672_v21  ;;  %v8744_v21 = vld [vmem:[%s11080_s7 + $0x16c] ss:$16 sps:$4 sm:$0xff]  }
 0x781   : > { %v9990_v22 = vpop.f32.mrf.mxu0 }
 0x783   : > { %v2672_v28 = vpop.f32.mrf.mxu0 }
 0x784   : > { %v2740_v35 = vpack.c.bf16 %v2672_v28, %v2672_v28  ;;  %v8739_v28 = vld [vmem:[%s11080_s7 + $0x160] ss:$16 sps:$4 sm:$0xff]  }
 0x785   : > { %v2809_v29 = vpop.f32.mrf.mxu0 }
 0x786   : > { %v2879_v32 = vpack.c.bf16 %v2809_v29, %v2809_v29  ;;  %v8742_v29 = vld [vmem:[%s11080_s7 + $0x168] ss:$16 sps:$4 sm:$0xff]  }
 0x787   : > { %v2811_v30 = vpop.f32.mrf.mxu0 }
 0x788   : > { %v2880_v41 = vpack.c.bf16 %v2811_v30, %v2811_v30  ;;  %v8747_v30 = vld [vmem:[%s11080_s7 + $0x144] ss:$16 sps:$4 sm:$0xff]  }
 0x78a   : > { %3233 = vmatprep.mubr.bf16.mxu1 %v2880_v41  ;;  %3274 = vmatprep.mubr.bf16.mxu0 %v2880_v41  ;;  %v8750_v41 = vld [vmem:[%s11080_s7 + $0x14c] ss:$16 sps:$4 sm:$0xff]  }
 0x78b   : > { %3234 = vmatmul.mubr.bf16.vlgmr.msra.gmra.mxu1 %v2879_v32  ;;  %3275 = vmatmul.mubr.bf16.vlgmr.msra.gmra.mxu0 %v2879_v32  ;;  %v8753_v32 = vld [vmem:[%s11080_s7 + $0x124] ss:$16 sps:$4 sm:$0xff]  }
 0x78c   : > { %3604 = vmatpush1.bf16.msra.mxu1 %v8667_v31  ;;  %3645 = vmatpush1.bf16.msra.mxu0 %v8670_v45  ;;  %v8745_v31 = vld [vmem:[%s11080_s7 + $0x140] ss:$16 sps:$4 sm:$0xff]   ;;  %v8748_v45 = vld [vmem:[%s11080_s7 + $0x148] ss:$16 sps:$4 sm:$0xff]  }
 0x78d   : > { %3635 = vmatprep.mubr.bf16.mxu1 %v2740_v35  ;;  %3676 = vmatprep.mubr.bf16.mxu0 %v2740_v35  ;;  %v8754_v35 = vld [vmem:[%s11080_s7 + $0x128] ss:$16 sps:$4 sm:$0xff]  }
 0x78e   : > { %3605 = vmatprep.subr.bf16.mxu1 %v8675_v33  ;;  %3646 = vmatprep.subr.bf16.mxu0 %v8678_v34  ;;  %v8756_v33 = vld [vmem:[%s11080_s7 + $0x12c] ss:$16 sps:$4 sm:$0xff]   ;;  %v8751_v34 = vld [vmem:[%s11080_s7 + $0x120] ss:$16 sps:$4 sm:$0xff]  }
 0x790   : > { %3606 = vmatpush1.bf16.msra.mxu1 %v8673_v36  ;;  %3647 = vmatpush1.bf16.msra.mxu0 %v8676_v37  ;;  %v8759_v36 = vld [vmem:[%s11080_s7 + $0x104] ss:$16 sps:$4 sm:$0xff]   ;;  %v8762_v37 = vld [vmem:[%s11080_s7 + $0x10c] ss:$16 sps:$4 sm:$0xff]  }
 0x791   : > { %3607 = vmatprep.subr.bf16.mxu1 %v8681_v2  ;;  %3648 = vmatprep.subr.bf16.mxu0 %v8684_v38  ;;  %v8757_v2 = vld [vmem:[%s11080_s7 + $0x100] ss:$16 sps:$4 sm:$0xff]   ;;  %v8760_v38 = vld [vmem:[%s11080_s7 + $0x108] ss:$16 sps:$4 sm:$0xff]  }
 0x794   : > { %3608 = vmatpush1.bf16.msra.mxu1 %v8679_v42  ;;  %3649 = vmatpush1.bf16.msra.mxu0 %v8682_v44  ;;  %v8765_v42 = vld [vmem:[%s11080_s7 + $0x4e4] ss:$16 sps:$4 sm:$0xff]   ;;  %v8763_v44 = vld [vmem:[%s11080_s7 + $0x4e0] ss:$16 sps:$4 sm:$0xff]  }
 0x795   : > { %3609 = vmatprep.subr.bf16.mxu1 %v8687_v49  ;;  %3650 = vmatprep.subr.bf16.mxu0 %v8690_v50  ;;  %v2739_v49 = vpack.c.bf16 %v9990_v22, %v9990_v22  ;;  %v8768_v50 = vld [vmem:[%s11080_s7 + $0x4c4] ss:$16 sps:$4 sm:$0xff]  }
 0x796   : > { %v8771_v22 = vld [vmem:[%s11080_s7 + $0x4a4] ss:$16 sps:$4 sm:$0xff]  }
 0x798   : > { %3610 = vmatpush1.bf16.msra.mxu1 %v8685_v51  ;;  %3651 = vmatpush1.bf16.msra.mxu0 %v8688_v24  ;;  %v8766_v51 = vld [vmem:[%s11080_s7 + $0x4c0] ss:$16 sps:$4 sm:$0xff]  }
 0x799   : > { %3611 = vmatprep.subr.bf16.mxu1 %v8693_v52  ;;  %3652 = vmatprep.subr.bf16.mxu0 %v8696_v53  ;;  %v8769_v24 = vld [vmem:[%s11080_s7 + $0x4a0] ss:$16 sps:$4 sm:$0xff]   ;;  %v8774_v52 = vld [vmem:[%s11080_s7 + $0x484] ss:$16 sps:$4 sm:$0xff]   ;;  %v8811_v53 = vld [vmem:[%s11080_s7 + $0x4e8] ss:$16 sps:$4 sm:$0xff]  }
 0x79c   : > { %3612 = vmatpush1.bf16.msra.mxu1 %v8691_v25  ;;  %3653 = vmatpush1.bf16.msra.mxu0 %v8694_v54  ;;  %v8813_v25 = vld [vmem:[%s11080_s7 + $0x4ec] ss:$16 sps:$4 sm:$0xff]  }
 0x79d   : > { %3613 = vmatprep.subr.bf16.mxu1 %v8699_v55  ;;  %3654 = vmatprep.subr.bf16.mxu0 %v8702_v56  ;;  %v8816_v54 = vld [vmem:[%s11080_s7 + $0x4cc] ss:$16 sps:$4 sm:$0xff]   ;;  %v8772_v55 = vld [vmem:[%s11080_s7 + $0x480] ss:$16 sps:$4 sm:$0xff]   ;;  %v8814_v56 = vld [vmem:[%s11080_s7 + $0x4c8] ss:$16 sps:$4 sm:$0xff]  }
 0x7a0   : > { %3614 = vmatpush1.bf16.msra.mxu1 %v8697_v57  ;;  %3655 = vmatpush1.bf16.msra.mxu0 %v8700_v58  ;;  %v8777_v57 = vld [vmem:[%s11080_s7 + $0x464] ss:$16 sps:$4 sm:$0xff]   ;;  %v8775_v58 = vld [vmem:[%s11080_s7 + $0x460] ss:$16 sps:$4 sm:$0xff]  }
 0x7a1   : > { %3615 = vmatprep.subr.bf16.mxu1 %v8705_v59  ;;  %3656 = vmatprep.subr.bf16.mxu0 %v8708_v61  ;;  %v8817_v59 = vld [vmem:[%s11080_s7 + $0x4a8] ss:$16 sps:$4 sm:$0xff]   ;;  %v8780_v61 = vld [vmem:[%s11080_s7 + $0x444] ss:$16 sps:$4 sm:$0xff]  }
 0x7a4   : > { %3616 = vmatpush1.bf16.msra.mxu1 %v8703_v62  ;;  %3657 = vmatpush1.bf16.msra.mxu0 %v8706_v0  ;;  %v8822_v62 = vld [vmem:[%s11080_s7 + $0x48c] ss:$16 sps:$4 sm:$0xff]   ;;  %v8778_v0 = vld [vmem:[%s11080_s7 + $0x440] ss:$16 sps:$4 sm:$0xff]  }
 0x7a5   : > { %3617 = vmatprep.subr.bf16.mxu1 %v8711_v60  ;;  %3658 = vmatprep.subr.bf16.mxu0 %v8714_v1  ;;  %v8820_v60 = vld [vmem:[%s11080_s7 + $0x488] ss:$16 sps:$4 sm:$0xff]   ;;  %v8783_v1 = vld [vmem:[%s11080_s7 + $0x424] ss:$16 sps:$4 sm:$0xff]  }
 0x7a8   : > { %3618 = vmatpush1.bf16.msra.mxu1 %v8709_v4  ;;  %3659 = vmatpush1.bf16.msra.mxu0 %v8712_v5  ;;  %v8825_v4 = vld [vmem:[%s11080_s7 + $0x46c] ss:$16 sps:$4 sm:$0xff]   ;;  %v8781_v5 = vld [vmem:[%s11080_s7 + $0x420] ss:$16 sps:$4 sm:$0xff]  }
 0x7a9   : > { %3619 = vmatprep.subr.bf16.mxu1 %v8717_v6  ;;  %3660 = vmatprep.subr.bf16.mxu0 %v8720_v7  ;;  %v8823_v6 = vld [vmem:[%s11080_s7 + $0x468] ss:$16 sps:$4 sm:$0xff]   ;;  %v8786_v7 = vld [vmem:[%s11080_s7 + $0x404] ss:$16 sps:$4 sm:$0xff]  }
 0x7ac   : > { %3620 = vmatpush2.bf16.msra.mxu1 %v8715_v8  ;;  %3661 = vmatpush2.bf16.msra.mxu0 %v8718_v63  ;;  %v8828_v8 = vld [vmem:[%s11080_s7 + $0x44c] ss:$16 sps:$4 sm:$0xff]   ;;  %v8784_v63 = vld [vmem:[%s11080_s7 + $0x400] ss:$16 sps:$4 sm:$0xff]  }
 0x7ad   : > { %3621 = vmatprep.subr.bf16.mxu1 %v8723_v9  ;;  %3662 = vmatprep.subr.bf16.mxu0 %v8726_v10  ;;  %v8826_v9 = vld [vmem:[%s11080_s7 + $0x448] ss:$16 sps:$4 sm:$0xff]   ;;  %v8789_v10 = vld [vmem:[%s11080_s7 + $0x5e4] ss:$16 sps:$4 sm:$0xff]  }
 0x7b0   : > { %3622 = vmatpush2.bf16.msra.mxu1 %v8721_v11  ;;  %3663 = vmatpush2.bf16.msra.mxu0 %v8724_v13  ;;  %v8831_v11 = vld [vmem:[%s11080_s7 + $0x42c] ss:$16 sps:$4 sm:$0xff]   ;;  %v8787_v13 = vld [vmem:[%s11080_s7 + $0x5e0] ss:$16 sps:$4 sm:$0xff]  }
 0x7b1   : > { %3623 = vmatprep.subr.bf16.mxu1 %v8729_v14  ;;  %3664 = vmatprep.subr.bf16.mxu0 %v8732_v15  ;;  %v8829_v14 = vld [vmem:[%s11080_s7 + $0x428] ss:$16 sps:$4 sm:$0xff]   ;;  %v8792_v15 = vld [vmem:[%s11080_s7 + $0x5c4] ss:$16 sps:$4 sm:$0xff]  }
 0x7b4   : > { %3624 = vmatpush2.bf16.msra.mxu1 %v8727_v16  ;;  %3665 = vmatpush2.bf16.msra.mxu0 %v8730_v26  ;;  %v8834_v16 = vld [vmem:[%s11080_s7 + $0x40c] ss:$16 sps:$4 sm:$0xff]   ;;  %v8790_v26 = vld [vmem:[%s11080_s7 + $0x5c0] ss:$16 sps:$4 sm:$0xff]  }
 0x7b5   : > { %3625 = vmatprep.subr.bf16.mxu1 %v8735_v27  ;;  %3666 = vmatprep.subr.bf16.mxu0 %v8738_v17  ;;  %v8832_v27 = vld [vmem:[%s11080_s7 + $0x408] ss:$16 sps:$4 sm:$0xff]   ;;  %v8795_v17 = vld [vmem:[%s11080_s7 + $0x5a4] ss:$16 sps:$4 sm:$0xff]  }
 0x7b8   : > { %3626 = vmatpush2.bf16.msra.mxu1 %v8733_v18  ;;  %3667 = vmatpush2.bf16.msra.mxu0 %v8736_v19  ;;  %v8837_v18 = vld [vmem:[%s11080_s7 + $0x5ec] ss:$16 sps:$4 sm:$0xff]   ;;  %v8793_v19 = vld [vmem:[%s11080_s7 + $0x5a0] ss:$16 sps:$4 sm:$0xff]  }
 0x7b9   : > { %3627 = vmatprep.subr.bf16.mxu1 %v8741_v20  ;;  %3668 = vmatprep.subr.bf16.mxu0 %v8744_v21  ;;  %v8835_v20 = vld [vmem:[%s11080_s7 + $0x5e8] ss:$16 sps:$4 sm:$0xff]   ;;  %v8798_v21 = vld [vmem:[%s11080_s7 + $0x584] ss:$16 sps:$4 sm:$0xff]  }
 0x7bc   : > { %3628 = vmatpush2.bf16.msra.mxu1 %v8739_v28  ;;  %3669 = vmatpush2.bf16.msra.mxu0 %v8742_v29  ;;  %v8840_v28 = vld [vmem:[%s11080_s7 + $0x5cc] ss:$16 sps:$4 sm:$0xff]   ;;  %v8796_v29 = vld [vmem:[%s11080_s7 + $0x580] ss:$16 sps:$4 sm:$0xff]  }
 0x7bd   : > { %3629 = vmatprep.subr.bf16.mxu1 %v8747_v30  ;;  %3670 = vmatprep.subr.bf16.mxu0 %v8750_v41  ;;  %v8838_v30 = vld [vmem:[%s11080_s7 + $0x5c8] ss:$16 sps:$4 sm:$0xff]   ;;  %v8801_v41 = vld [vmem:[%s11080_s7 + $0x564] ss:$16 sps:$4 sm:$0xff]  }
 0x7c0   : > { %3630 = vmatpush2.bf16.msra.mxu1 %v8745_v31  ;;  %3671 = vmatpush2.bf16.msra.mxu0 %v8748_v45  ;;  %v8843_v31 = vld [vmem:[%s11080_s7 + $0x5ac] ss:$16 sps:$4 sm:$0xff]   ;;  %v8799_v45 = vld [vmem:[%s11080_s7 + $0x560] ss:$16 sps:$4 sm:$0xff]  }
 0x7c1   : > { %3631 = vmatprep.subr.bf16.mxu1 %v8753_v32  ;;  %3672 = vmatprep.subr.bf16.mxu0 %v8756_v33  ;;  %v8841_v32 = vld [vmem:[%s11080_s7 + $0x5a8] ss:$16 sps:$4 sm:$0xff]   ;;  %v8804_v33 = vld [vmem:[%s11080_s7 + $0x544] ss:$16 sps:$4 sm:$0xff]  }
 0x7c4   : > { %3632 = vmatpush2.bf16.msra.mxu1 %v8751_v34  ;;  %3673 = vmatpush2.bf16.msra.mxu0 %v8754_v35  ;;  %v8846_v34 = vld [vmem:[%s11080_s7 + $0x58c] ss:$16 sps:$4 sm:$0xff]   ;;  %v8802_v35 = vld [vmem:[%s11080_s7 + $0x540] ss:$16 sps:$4 sm:$0xff]  }
 0x7c5   : > { %3633 = vmatprep.subr.bf16.mxu1 %v8759_v36  ;;  %3674 = vmatprep.subr.bf16.mxu0 %v8762_v37  ;;  %v8844_v36 = vld [vmem:[%s11080_s7 + $0x588] ss:$16 sps:$4 sm:$0xff]   ;;  %v8807_v37 = vld [vmem:[%s11080_s7 + $0x524] ss:$16 sps:$4 sm:$0xff]  }
 0x7c8   : > { %3634 = vmatpush2.bf16.msra.mxu1 %v8757_v2  ;;  %3675 = vmatpush2.bf16.msra.mxu0 %v8760_v38  ;;  %v8849_v2 = vld [vmem:[%s11080_s7 + $0x56c] ss:$16 sps:$4 sm:$0xff]   ;;  %v8805_v38 = vld [vmem:[%s11080_s7 + $0x520] ss:$16 sps:$4 sm:$0xff]  }
 0x7c9   : > { %3717 = vmatprep.subr.mxu1 %v9863_v47  ;;  %4145 = vmatprep.subr.bf16.mxu0 %v8765_v42  ;;  %v8847_v42 = vld [vmem:[%s11080_s7 + $0x568] ss:$16 sps:$4 sm:$0xff]  }
 0x7cb   : > { %3636 = vmatmul.mubr.bf16.vlgmr.msra.gmra.mxu1 %v2739_v49  ;;  %3677 = vmatmul.mubr.bf16.vlgmr.msra.gmra.mxu0 %v2739_v49  ;;  %v8808_v49 = vld [vmem:[%s11080_s7 + $0x500] ss:$16 sps:$4 sm:$0xff]  }
 0x7cc   : > { %3718 = vmatpush1.msra.mxu1 %v9866_v48  ;;  %4146 = vmatpush1.bf16.msra.mxu0 %v8763_v44  ;;  %v8810_v44 = vld [vmem:[%s11080_s7 + $0x504] ss:$16 sps:$4 sm:$0xff]  }
 0x7cd   : > { %4147 = vmatprep.subr.bf16.mxu0 %v8768_v50  ;;  %3751 = vmatprep.mubr.f32.mxu1 %v9106_v23  ;;  %v8852_v50 = vld [vmem:[%s11080_s7 + $0x54c] ss:$16 sps:$4 sm:$0xff]  }
 0x7ce   : > { %4186 = vmatprep.subr.bf16.mxu1 %v8813_v25 }
 0x7d0   : > { %4148 = vmatpush1.bf16.msra.mxu0 %v8766_v51  ;;  %v8850_v51 = vld [vmem:[%s11080_s7 + $0x548] ss:$16 sps:$4 sm:$0xff]  }
 0x7d1   : > { %4149 = vmatprep.subr.bf16.mxu0 %v8771_v22  ;;  %v8855_v22 = vld [vmem:[%s11080_s7 + $0x52c] ss:$16 sps:$4 sm:$0xff]  }
 0x7d3   : > { %7348 = vmatmul.mubr.msk.f32.vlgmr.msra.gmra.mxu1 %vm2601_vm12, %v9340_v40  ;;  %v8819_v40 = vld [vmem:[%s11080_s7 + $0x4ac] ss:$16 sps:$4 sm:$0xff]  }
 0x7d4   : > { %4150 = vmatpush1.bf16.msra.mxu0 %v8769_v24  ;;  %4187 = vmatpush1.bf16.msra.mxu1 %v8811_v53  ;;  %v8853_v24 = vld [vmem:[%s11080_s7 + $0x528] ss:$16 sps:$4 sm:$0xff]   ;;  %v8861_v53 = vld [vmem:[%s11080_s7 + $0x6e4] ss:$16 sps:$4 sm:$0xff]  }
 0x7d5   : > { %4151 = vmatprep.subr.bf16.mxu0 %v8774_v52  ;;  %4188 = vmatprep.subr.bf16.mxu1 %v8816_v54  ;;  %v8856_v52 = vld [vmem:[%s11080_s7 + $0x508] ss:$16 sps:$4 sm:$0xff]  }
 0x7d8   : > { %4152 = vmatpush1.bf16.msra.mxu0 %v8772_v55  ;;  %4189 = vmatpush1.bf16.msra.mxu1 %v8814_v56 }
 0x7d9   : > { %4153 = vmatprep.subr.bf16.mxu0 %v8777_v57  ;;  %4190 = vmatprep.subr.bf16.mxu1 %v8819_v40 }
 0x7dc   : > { %4154 = vmatpush1.bf16.msra.mxu0 %v8775_v58  ;;  %4191 = vmatpush1.bf16.msra.mxu1 %v8817_v59 }
 0x7dd   : > { %4155 = vmatprep.subr.bf16.mxu0 %v8780_v61  ;;  %4192 = vmatprep.subr.bf16.mxu1 %v8822_v62 }
 0x7e0   : > { %4156 = vmatpush1.bf16.msra.mxu0 %v8778_v0  ;;  %4193 = vmatpush1.bf16.msra.mxu1 %v8820_v60 }
 0x7e1   : > { %4157 = vmatprep.subr.bf16.mxu0 %v8783_v1  ;;  %4194 = vmatprep.subr.bf16.mxu1 %v8825_v4 }
 0x7e4   : > { %4158 = vmatpush1.bf16.msra.mxu0 %v8781_v5  ;;  %4195 = vmatpush1.bf16.msra.mxu1 %v8823_v6 }
 0x7e5   : > { %4159 = vmatprep.subr.bf16.mxu0 %v8786_v7  ;;  %4196 = vmatprep.subr.bf16.mxu1 %v8828_v8 }
 0x7e8   : > { %4160 = vmatpush1.bf16.msra.mxu0 %v8784_v63  ;;  %4197 = vmatpush1.bf16.msra.mxu1 %v8826_v9 }
 0x7e9   : > { %4161 = vmatprep.subr.bf16.mxu0 %v8789_v10  ;;  %4198 = vmatprep.subr.bf16.mxu1 %v8831_v11 }
 0x7ec   : > { %4162 = vmatpush2.bf16.msra.mxu0 %v8787_v13  ;;  %4199 = vmatpush1.bf16.msra.mxu1 %v8829_v14 }
 0x7ed   : > { %4163 = vmatprep.subr.bf16.mxu0 %v8792_v15  ;;  %4200 = vmatprep.subr.bf16.mxu1 %v8834_v16  ;;  %v8859_v15 = vld [vmem:[%s11080_s7 + $0x6e0] ss:$16 sps:$4 sm:$0xff]   ;;  %v8864_v16 = vld [vmem:[%s11080_s7 + $0x6ec] ss:$16 sps:$4 sm:$0xff]  }
 0x7f0   : > { %4164 = vmatpush2.bf16.msra.mxu0 %v8790_v26  ;;  %4201 = vmatpush1.bf16.msra.mxu1 %v8832_v27  ;;  %v8867_v26 = vld [vmem:[%s11080_s7 + $0x6c4] ss:$16 sps:$4 sm:$0xff]   ;;  %v8865_v27 = vld [vmem:[%s11080_s7 + $0x6c0] ss:$16 sps:$4 sm:$0xff]  }
 0x7f1   : > { %4165 = vmatprep.subr.bf16.mxu0 %v8795_v17  ;;  %4202 = vmatprep.subr.bf16.mxu1 %v8837_v18  ;;  %v8873_v17 = vld [vmem:[%s11080_s7 + $0x6a4] ss:$16 sps:$4 sm:$0xff]   ;;  %v8862_v18 = vld [vmem:[%s11080_s7 + $0x6e8] ss:$16 sps:$4 sm:$0xff]  }
 0x7f4   : > { %4166 = vmatpush2.bf16.msra.mxu0 %v8793_v19  ;;  %4203 = vmatpush2.bf16.msra.mxu1 %v8835_v20  ;;  %v8871_v19 = vld [vmem:[%s11080_s7 + $0x6a0] ss:$16 sps:$4 sm:$0xff]   ;;  %v8879_v20 = vld [vmem:[%s11080_s7 + $0x684] ss:$16 sps:$4 sm:$0xff]  }
 0x7f5   : > { %4167 = vmatprep.subr.bf16.mxu0 %v8798_v21  ;;  %4204 = vmatprep.subr.bf16.mxu1 %v8840_v28  ;;  %v8868_v21 = vld [vmem:[%s11080_s7 + $0x6c8] ss:$16 sps:$4 sm:$0xff]   ;;  %v8876_v28 = vld [vmem:[%s11080_s7 + $0x6ac] ss:$16 sps:$4 sm:$0xff]  }
 0x7f8   : > { %4168 = vmatpush2.bf16.msra.mxu0 %v8796_v29  ;;  %4205 = vmatpush2.bf16.msra.mxu1 %v8838_v30  ;;  %v8877_v29 = vld [vmem:[%s11080_s7 + $0x680] ss:$16 sps:$4 sm:$0xff]   ;;  %v8874_v30 = vld [vmem:[%s11080_s7 + $0x6a8] ss:$16 sps:$4 sm:$0xff]  }
 0x7f9   : > { %4169 = vmatprep.subr.bf16.mxu0 %v8801_v41  ;;  %4206 = vmatprep.subr.bf16.mxu1 %v8843_v31  ;;  %v8882_v41 = vld [vmem:[%s11080_s7 + $0x68c] ss:$16 sps:$4 sm:$0xff]   ;;  %v8883_v31 = vld [vmem:[%s11080_s7 + $0x660] ss:$16 sps:$4 sm:$0xff]  }
 0x7fc   : > { %4170 = vmatpush2.bf16.msra.mxu0 %v8799_v45  ;;  %4207 = vmatpush2.bf16.msra.mxu1 %v8841_v32  ;;  %v8891_v45 = vld [vmem:[%s11080_s7 + $0x644] ss:$16 sps:$4 sm:$0xff]   ;;  %v8880_v32 = vld [vmem:[%s11080_s7 + $0x688] ss:$16 sps:$4 sm:$0xff]  }
 0x7fd   : > { %4171 = vmatprep.subr.bf16.mxu0 %v8804_v33  ;;  %4208 = vmatprep.subr.bf16.mxu1 %v8846_v34  ;;  %v8888_v33 = vld [vmem:[%s11080_s7 + $0x66c] ss:$16 sps:$4 sm:$0xff]   ;;  %v8889_v34 = vld [vmem:[%s11080_s7 + $0x640] ss:$16 sps:$4 sm:$0xff]  }
 0x800   : > { %4172 = vmatpush2.bf16.msra.mxu0 %v8802_v35  ;;  %4209 = vmatpush2.bf16.msra.mxu1 %v8844_v36  ;;  %v8897_v35 = vld [vmem:[%s11080_s7 + $0x624] ss:$16 sps:$4 sm:$0xff]   ;;  %v8886_v36 = vld [vmem:[%s11080_s7 + $0x668] ss:$16 sps:$4 sm:$0xff]  }
 0x801   : > { %4173 = vmatprep.subr.bf16.mxu0 %v8807_v37  ;;  %4210 = vmatprep.subr.bf16.mxu1 %v8849_v2  ;;  %v8894_v37 = vld [vmem:[%s11080_s7 + $0x64c] ss:$16 sps:$4 sm:$0xff]   ;;  %v8895_v2 = vld [vmem:[%s11080_s7 + $0x620] ss:$16 sps:$4 sm:$0xff]  }
 0x804   : > { %4174 = vmatpush2.bf16.msra.mxu0 %v8805_v38  ;;  %4211 = vmatpush2.bf16.msra.mxu1 %v8847_v42  ;;  %v8903_v38 = vld [vmem:[%s11080_s7 + $0x604] ss:$16 sps:$4 sm:$0xff]   ;;  %v8892_v42 = vld [vmem:[%s11080_s7 + $0x648] ss:$16 sps:$4 sm:$0xff]  }
 0x805   : > { %4175 = vmatprep.subr.bf16.mxu0 %v8810_v44  ;;  %4212 = vmatprep.subr.bf16.mxu1 %v8852_v50  ;;  %v8900_v44 = vld [vmem:[%s11080_s7 + $0x62c] ss:$16 sps:$4 sm:$0xff]   ;;  %v8909_v50 = vld [vmem:[%s11080_s7 + $0x7e4] ss:$16 sps:$4 sm:$0xff]  }
 0x808   : > { %4176 = vmatpush2.bf16.msra.mxu0 %v8808_v49  ;;  %4213 = vmatpush2.bf16.msra.mxu1 %v8850_v51  ;;  %v8901_v49 = vld [vmem:[%s11080_s7 + $0x600] ss:$16 sps:$4 sm:$0xff]   ;;  %v8898_v51 = vld [vmem:[%s11080_s7 + $0x628] ss:$16 sps:$4 sm:$0xff]  }
 0x809   : > { %4263 = vmatprep.subr.mxu0 %v9863_v47  ;;  %4214 = vmatprep.subr.bf16.mxu1 %v8855_v22  ;;  %v8858_v47 = vld [vmem:[%s11080_s7 + $0x50c] ss:$16 sps:$4 sm:$0xff]  }
 0x80a   : > { %v8906_v22 = vld [vmem:[%s11080_s7 + $0x60c] ss:$16 sps:$4 sm:$0xff]  }
 0x80c   : > { %4215 = vmatpush2.bf16.msra.mxu1 %v8853_v24  ;;  %v8907_v24 = vld [vmem:[%s11080_s7 + $0x7e0] ss:$16 sps:$4 sm:$0xff]  }
 0x80d   : > { %4216 = vmatprep.subr.bf16.mxu1 %v8858_v47  ;;  %v8915_v47 = vld [vmem:[%s11080_s7 + $0x7c4] ss:$16 sps:$4 sm:$0xff]  }
 0x810   : > { %4217 = vmatpush2.bf16.msra.mxu1 %v8856_v52  ;;  %v8904_v52 = vld [vmem:[%s11080_s7 + $0x608] ss:$16 sps:$4 sm:$0xff]  }
 0x811   : > { %4691 = vmatprep.subr.bf16.mxu1 %v8861_v53  ;;  %v8912_v53 = vld [vmem:[%s11080_s7 + $0x7ec] ss:$16 sps:$4 sm:$0xff]  }
 0x84b   : > { %v3235_v25 = vpop.f32.mrf.mxu1  ;;  %v3276_v54 = vpop.f32.mrf.mxu0 }
 0x84d   : > { %v3237_v55 = vpop.f32.mrf.mxu1  ;;  %v3278_v56 = vpop.f32.mrf.mxu0 }
 0x84f   : > { %v3239_v57 = vpop.f32.mrf.mxu1  ;;  %v3280_v40 = vpop.f32.mrf.mxu0 }
 0x850   : > { %v8919_v57 = vld [vmem:[%s11080_s7 + $0x7a0] ss:$16 sps:$4 sm:$0xff]   ;;  %v8927_v40 = vld [vmem:[%s11080_s7 + $0x784] ss:$16 sps:$4 sm:$0xff]  }
 0x851   : > { %v3240_v58 = vpop.f32.mrf.mxu1  ;;  %v3281_v59 = vpop.f32.mrf.mxu0 }
 0x852   : > { %v8916_v58 = vld [vmem:[%s11080_s7 + $0x7c8] ss:$16 sps:$4 sm:$0xff]   ;;  %v8924_v59 = vld [vmem:[%s11080_s7 + $0x7ac] ss:$16 sps:$4 sm:$0xff]  }
 0x88b   : > { %v3637_v61 = vpop.f32.mrf.mxu1  ;;  %v3678_v62 = vpop.f32.mrf.mxu0 }
 0x88c   : > { %v10381_v0 = vadd.f32 %v3637_v61, %v3235_v25  ;;  %v10383_v60 = vadd.f32 %v3678_v62, %v3276_v54  ;;  %v8913_v25 = vld [vmem:[%s11080_s7 + $0x7c0] ss:$16 sps:$4 sm:$0xff]   ;;  %v8921_v54 = vld [vmem:[%s11080_s7 + $0x7a4] ss:$16 sps:$4 sm:$0xff]  }
 0x88d   : > { %v3639_v1 = vpop.f32.mrf.mxu1  ;;  %v3680_v4 = vpop.f32.mrf.mxu0  ;;  %v8925_v61 = vld [vmem:[%s11080_s7 + $0x780] ss:$16 sps:$4 sm:$0xff]   ;;  %v8933_v62 = vld [vmem:[%s11080_s7 + $0x764] ss:$16 sps:$4 sm:$0xff]  }
 0x88e   : > { %v10385_v5 = vadd.f32 %v3639_v1, %v3237_v55  ;;  %v10387_v6 = vadd.f32 %v3680_v4, %v3278_v56  ;;  %v8910_v55 = vld [vmem:[%s11080_s7 + $0x7e8] ss:$16 sps:$4 sm:$0xff]   ;;  %v8918_v56 = vld [vmem:[%s11080_s7 + $0x7cc] ss:$16 sps:$4 sm:$0xff]  }
 0x88f   : > { %v3641_v7 = vpop.f32.mrf.mxu1  ;;  %v3682_v8 = vpop.f32.mrf.mxu0  ;;  %v8922_v1 = vld [vmem:[%s11080_s7 + $0x7a8] ss:$16 sps:$4 sm:$0xff]   ;;  %v8930_v4 = vld [vmem:[%s11080_s7 + $0x78c] ss:$16 sps:$4 sm:$0xff]  }
 0x890   : > { %v8931_v7 = vld [vmem:[%s11080_s7 + $0x760] ss:$16 sps:$4 sm:$0xff]   ;;  %v8928_v8 = vld [vmem:[%s11080_s7 + $0x788] ss:$16 sps:$4 sm:$0xff]  }
 0x891   : > { %v3642_v63 = vpop.f32.mrf.mxu1  ;;  %v3683_v9 = vpop.f32.mrf.mxu0 }
 0x892   : > { %v8936_v63 = vld [vmem:[%s11080_s7 + $0x76c] ss:$16 sps:$4 sm:$0xff]   ;;  %v8934_v9 = vld [vmem:[%s11080_s7 + $0x768] ss:$16 sps:$4 sm:$0xff]  }
 0x893   : > { %v3753_v10 = vpop.f32.mrf.mxu1 }
 0x894   : > { %v3823_v14 = vpack.c.bf16 %v3753_v10, %v3753_v10  ;;  %v8939_v10 = vld [vmem:[%s11080_s7 + $0x744] ss:$16 sps:$4 sm:$0xff]  }
 0x895   : > { %v3755_v11 = vpop.f32.mrf.mxu1 }
 0x896   : > { %v3824_v13 = vpack.c.bf16 %v3755_v11, %v3755_v11  ;;  %v8942_v11 = vld [vmem:[%s11080_s7 + $0x74c] ss:$16 sps:$4 sm:$0xff]  }
 0x898   : > { %4177 = vmatprep.mubr.bf16.mxu0 %v3824_v13  ;;  %4218 = vmatprep.mubr.bf16.mxu1 %v3824_v13  ;;  %v8937_v13 = vld [vmem:[%s11080_s7 + $0x740] ss:$16 sps:$4 sm:$0xff]  }
 0x899   : > { %4178 = vmatmul.mubr.bf16.vlgmr.msra.gmra.mxu0 %v3823_v14  ;;  %4219 = vmatmul.mubr.bf16.vlgmr.msra.gmra.mxu1 %v3823_v14  ;;  %v8940_v14 = vld [vmem:[%s11080_s7 + $0x748] ss:$16 sps:$4 sm:$0xff]  }
 0x89a   : > { %4264 = vmatpush1.msra.mxu0 %v9866_v48  ;;  %4297 = vmatprep.mubr.f32.mxu0 %v9106_v23  ;;  %v8870_v48 = vld [vmem:[%s11080_s7 + $0x6cc] ss:$16 sps:$4 sm:$0xff]  }
 0x89b   : > { %4732 = vmatprep.subr.bf16.mxu0 %v8864_v16  ;;  %4692 = vmatpush1.bf16.msra.mxu1 %v8859_v15  ;;  %v8945_v15 = vld [vmem:[%s11080_s7 + $0x724] ss:$16 sps:$4 sm:$0xff]   ;;  %v8948_v16 = vld [vmem:[%s11080_s7 + $0x72c] ss:$16 sps:$4 sm:$0xff]  }
 0x89c   : > { %4693 = vmatprep.subr.bf16.mxu1 %v8867_v26  ;;  %v8943_v26 = vld [vmem:[%s11080_s7 + $0x720] ss:$16 sps:$4 sm:$0xff]  }
 0x89f   : > { %4694 = vmatpush1.bf16.msra.mxu1 %v8865_v27  ;;  %v8946_v27 = vld [vmem:[%s11080_s7 + $0x728] ss:$16 sps:$4 sm:$0xff]  }
 0x8a0   : > { %4695 = vmatprep.subr.bf16.mxu1 %v8873_v17  ;;  %v8951_v17 = vld [vmem:[%s11080_s7 + $0x704] ss:$16 sps:$4 sm:$0xff]  }
 0x8a1   : > { %7477 = vmatmul.mubr.msk.f32.vlgmr.msra.gmra.mxu0 %vm2601_vm12, %v9353_v43  ;;  %v8885_v43 = vld [vmem:[%s11080_s7 + $0x664] ss:$16 sps:$4 sm:$0xff]  }
 0x8a2   : > { %4733 = vmatpush1.bf16.msra.mxu0 %v8862_v18  ;;  %v8954_v18 = vld [vmem:[%s11080_s7 + $0x70c] ss:$16 sps:$4 sm:$0xff]  }
 0x8a3   : > { %4734 = vmatprep.subr.bf16.mxu0 %v8870_v48  ;;  %4696 = vmatpush1.bf16.msra.mxu1 %v8871_v19  ;;  %v8949_v48 = vld [vmem:[%s11080_s7 + $0x700] ss:$16 sps:$4 sm:$0xff]   ;;  %v8952_v19 = vld [vmem:[%s11080_s7 + $0x708] ss:$16 sps:$4 sm:$0xff]  }
 0x8a4   : > { %4697 = vmatprep.subr.bf16.mxu1 %v8879_v20 }
 0x8a6   : > { %4735 = vmatpush1.bf16.msra.mxu0 %v8868_v21 }
 0x8a7   : > { %4736 = vmatprep.subr.bf16.mxu0 %v8876_v28  ;;  %4698 = vmatpush1.bf16.msra.mxu1 %v8877_v29 }
 0x8a8   : > { %4699 = vmatprep.subr.bf16.mxu1 %v8885_v43 }
 0x8aa   : > { %4737 = vmatpush1.bf16.msra.mxu0 %v8874_v30 }
 0x8ab   : > { %4738 = vmatprep.subr.bf16.mxu0 %v8882_v41  ;;  %4700 = vmatpush1.bf16.msra.mxu1 %v8883_v31 }
 0x8ac   : > { %4701 = vmatprep.subr.bf16.mxu1 %v8891_v45 }
 0x8ae   : > { %4739 = vmatpush1.bf16.msra.mxu0 %v8880_v32 }
 0x8af   : > { %4740 = vmatprep.subr.bf16.mxu0 %v8888_v33  ;;  %4702 = vmatpush1.bf16.msra.mxu1 %v8889_v34 }
 0x8b0   : > { %4703 = vmatprep.subr.bf16.mxu1 %v8897_v35 }
 0x8b2   : > { %4741 = vmatpush1.bf16.msra.mxu0 %v8886_v36 }
 0x8b3   : > { %4742 = vmatprep.subr.bf16.mxu0 %v8894_v37  ;;  %4704 = vmatpush1.bf16.msra.mxu1 %v8895_v2 }
 0x8b4   : > { %4705 = vmatprep.subr.bf16.mxu1 %v8903_v38 }
 0x8b6   : > { %4743 = vmatpush1.bf16.msra.mxu0 %v8892_v42 }
 0x8b7   : > { %4744 = vmatprep.subr.bf16.mxu0 %v8900_v44  ;;  %4706 = vmatpush1.bf16.msra.mxu1 %v8901_v49 }
 0x8b8   : > { %4707 = vmatprep.subr.bf16.mxu1 %v8909_v50 }
 0x8ba   : > { %4745 = vmatpush1.bf16.msra.mxu0 %v8898_v51 }
 0x8bb   : > { %4746 = vmatprep.subr.bf16.mxu0 %v8906_v22  ;;  %4708 = vmatpush2.bf16.msra.mxu1 %v8907_v24 }
 0x8bc   : > { %4709 = vmatprep.subr.bf16.mxu1 %v8915_v47 }
 0x8be   : > { %4747 = vmatpush1.bf16.msra.mxu0 %v8904_v52 }
 0x8bf   : > { %4748 = vmatprep.subr.bf16.mxu0 %v8912_v53  ;;  %4710 = vmatpush2.bf16.msra.mxu1 %v8913_v25 }
 0x8c0   : > { %4711 = vmatprep.subr.bf16.mxu1 %v8921_v54 }
 0x8c2   : > { %4749 = vmatpush2.bf16.msra.mxu0 %v8910_v55 }
 0x8c3   : > { %4750 = vmatprep.subr.bf16.mxu0 %v8918_v56  ;;  %4712 = vmatpush2.bf16.msra.mxu1 %v8919_v57 }
 0x8c4   : > { %4713 = vmatprep.subr.bf16.mxu1 %v8927_v40 }
 0x8c6   : > { %4751 = vmatpush2.bf16.msra.mxu0 %v8916_v58 }
 0x8c7   : > { %4752 = vmatprep.subr.bf16.mxu0 %v8924_v59  ;;  %4714 = vmatpush2.bf16.msra.mxu1 %v8925_v61 }
 0x8c8   : > { %4715 = vmatprep.subr.bf16.mxu1 %v8933_v62 }
 0x8ca   : > { %4753 = vmatpush2.bf16.msra.mxu0 %v8922_v1 }
 0x8cb   : > { %4754 = vmatprep.subr.bf16.mxu0 %v8930_v4  ;;  %4716 = vmatpush2.bf16.msra.mxu1 %v8931_v7 }
 0x8cc   : > { %4717 = vmatprep.subr.bf16.mxu1 %v8939_v10 }
 0x8ce   : > { %4755 = vmatpush2.bf16.msra.mxu0 %v8928_v8 }
 0x8cf   : > { %4756 = vmatprep.subr.bf16.mxu0 %v8936_v63  ;;  %4718 = vmatpush2.bf16.msra.mxu1 %v8937_v13 }
 0x8d0   : > { %4719 = vmatprep.subr.bf16.mxu1 %v8945_v15 }
 0x8d2   : > { %4757 = vmatpush2.bf16.msra.mxu0 %v8934_v9 }
 0x8d3   : > { %4758 = vmatprep.subr.bf16.mxu0 %v8942_v11  ;;  %4720 = vmatpush2.bf16.msra.mxu1 %v8943_v26 }
 0x8d4   : > { %4721 = vmatprep.subr.bf16.mxu1 %v8951_v17 }
 0x8d6   : > { %4759 = vmatpush2.bf16.msra.mxu0 %v8940_v14 }
 0x8d7   : > { %4760 = vmatprep.subr.bf16.mxu0 %v8948_v16  ;;  %4722 = vmatpush2.bf16.msra.mxu1 %v8949_v48 }
 0x8da   : > { %4761 = vmatpush2.bf16.msra.mxu0 %v8946_v27 }
 0x8db   : > { %4762 = vmatprep.subr.bf16.mxu0 %v8954_v18 }
 0x8de   : > { %4763 = vmatpush2.bf16.msra.mxu0 %v8952_v19 }
 0x959   : > { %v4179_v20 = vpop.f32.mrf.mxu0  ;;  %v4220_v21 = vpop.f32.mrf.mxu1 }
 0x95a   : > { %v4227_v28 = vadd.f32 %v4179_v20, %v10381_v0  ;;  %v4229_v29 = vadd.f32 %v4220_v21, %v10383_v60  ;;  %v4789_v0 = vsub.s32 2, %v9183_v3  ;;  %v4777_v60 = vld [vmem:[%s11081_s8] sm:$0xf] }
 0x95b   : > { %v4181_v43 = vpop.f32.mrf.mxu0  ;;  %v4222_v30 = vpop.f32.mrf.mxu1  ;;  %v4786_v51 = vrot.slane %v4777_v60, %v2550_v46 }
 0x95c   : > { %v4228_v41 = vadd.f32 %v4181_v43, %v10385_v5  ;;  %v4230_v31 = vadd.f32 %v4222_v30, %v10387_v6  ;;  %v4793_v5 = vsub.s32 3, %v9183_v3  ;;  %v4782_v6 = vrot.slane %v4777_v60, %v2546_v39 }
 0x95d   : > { %v4183_v45 = vpop.f32.mrf.mxu0  ;;  %v4224_v32 = vpop.f32.mrf.mxu1  ;;  %v4790_v38 = vrot.slane %v4777_v60, %v4789_v0 }
 0x95e   : > { %v4794_v22 = vrot.slane %v4777_v60, %v4793_v5 }
 0x95f   : > { %v4184_v33 = vpop.f32.mrf.mxu0  ;;  %v4225_v34 = vpop.f32.mrf.mxu1 }
 0x961   : > { %v4299_v35 = vpop.f32.mrf.mxu0 }
 0x962   : > { %v4369_v2 = vpack.c.bf16 %v4299_v35, %v4299_v35 }
 0x963   : > { %v4301_v36 = vpop.f32.mrf.mxu0 }
 0x964   : > { %v4370_v37 = vpack.c.bf16 %v4301_v36, %v4301_v36 }
 0x966   : > { %4723 = vmatprep.mubr.bf16.mxu1 %v4370_v37  ;;  %4764 = vmatprep.mubr.bf16.mxu0 %v4370_v37 }
 0x967   : > { %4724 = vmatmul.mubr.bf16.vlgmr.msra.gmra.mxu1 %v4369_v2  ;;  %4765 = vmatmul.mubr.bf16.vlgmr.msra.gmra.mxu0 %v4369_v2 }
 0x968   : > { %4985 = vmatprep.mubr.f32.mxu1 %v9106_v23  ;;  %5056 = vmatprep.mubr.f32.mxu0 %v9106_v23 }
 0xa27   : > { %v4725_v42 = vpop.f32.mrf.mxu1  ;;  %v4766_v44 = vpop.f32.mrf.mxu0 }
 0xa28   : > { %v4773_v49 = vadd.f32 %v4725_v42, %v4227_v28  ;;  %v4775_v50 = vadd.f32 %v4766_v44, %v4229_v29 }
 0xa29   : > { %v4727_v24 = vpop.f32.mrf.mxu1  ;;  %v4768_v47 = vpop.f32.mrf.mxu0 }
 0xa2a   : > { %v4799_v52 = vadd.f32 %v4782_v6, %v4773_v49  ;;  %v4801_v53 = vadd.f32 %v4790_v38, %v4775_v50  ;;  %v4774_v25 = vadd.f32 %v4727_v24, %v4228_v41  ;;  %v4776_v54 = vadd.f32 %v4768_v47, %v4230_v31 }
 0xa2b   : > { %v4729_v55 = vpop.f32.mrf.mxu1  ;;  %v4770_v56 = vpop.f32.mrf.mxu0 }
 0xa2c   : > { %v4804_v39 = vsel %vm4803_vm13, %v4799_v52, 0.0  ;;  %v4818_v57 = vsel %vm4803_vm13, %v4801_v53, 0.0  ;;  %v4800_v40 = vadd.f32 %v4786_v51, %v4774_v25  ;;  %v4802_v58 = vadd.f32 %v4794_v22, %v4776_v54 }
 0xa2d   : > { %v4805_v59 = vrot.slane %v4804_v39, 4  ;;  %v4819_v61 = vrot.slane %v4818_v57, 4  ;;  %v4730_v62 = vpop.f32.mrf.mxu1  ;;  %v4771_v46 = vpop.f32.mrf.mxu0 }
 0xa2e   : > { %v4811_v1 = vsel %vm4803_vm13, %v4800_v40, 0.0  ;;  %v4825_v4 = vsel %vm4803_vm13, %v4802_v58, 0.0 }
 0xa2f   : > { %v4806_v7 = vadd.f32 %v4805_v59, %v4804_v39  ;;  %v4820_v8 = vadd.f32 %v4819_v61, %v4818_v57  ;;  %v4812_v63 = vrot.slane %v4811_v1, 4  ;;  %v4826_v9 = vrot.slane %v4825_v4, 4 }
 0xa31   : > { %v4807_v10 = vrot.slane %v4806_v7, 2  ;;  %v4821_v11 = vrot.slane %v4820_v8, 2  ;;  %v4813_v13 = vadd.f32 %v4812_v63, %v4811_v1  ;;  %v4827_v14 = vadd.f32 %v4826_v9, %v4825_v4 }
 0xa33   : > { %v4808_v15 = vadd.f32 %v4807_v10, %v4806_v7  ;;  %v4822_v16 = vadd.f32 %v4821_v11, %v4820_v8  ;;  %v4814_v26 = vrot.slane %v4813_v13, 2  ;;  %v4828_v27 = vrot.slane %v4827_v14, 2 }
 0xa35   : > { %v4809_v17 = vrot.slane %v4808_v15, 1  ;;  %v4823_v18 = vrot.slane %v4822_v16, 1  ;;  %v4815_v48 = vadd.f32 %v4814_v26, %v4813_v13  ;;  %v4829_v19 = vadd.f32 %v4828_v27, %v4827_v14 }
 0xa36   : > { %v4901_v26 = vadd.s32 4294967295, %v9183_v3 }
 0xa37   : > { %v4810_v20 = vadd.f32 %v4809_v17, %v4808_v15  ;;  %v4824_v21 = vadd.f32 %v4823_v18, %v4822_v16  ;;  %v4816_v28 = vrot.slane %v4815_v48, 1  ;;  %v4830_v29 = vrot.slane %v4829_v19, 1 }
 0xa38   : > { %vm4902_vm14 = vcmp.eq.s32.totalorder %v9220_v12, %v4901_v26  ;;  %v8989_v26 = vld [vmem:[%s11082_s9 + $0x38] sm:$0xff]  }
 0xa39   : > { %v4833_v43 = vmul.f32 0.25, %v4810_v20  ;;  %v4835_v30 = vmul.f32 0.25, %v4824_v21  ;;  %v4817_v41 = vadd.f32 %v4816_v28, %v4815_v48  ;;  %v4831_v31 = vadd.f32 %v4830_v29, %v4829_v19 }
 0xa3b   : > { %v4837_v45 = vsub.f32 %v4799_v52, %v4833_v43  ;;  %v4839_v32 = vsub.f32 %v4801_v53, %v4835_v30  ;;  %v4834_v33 = vmul.f32 0.25, %v4817_v41  ;;  %v4836_v34 = vmul.f32 0.25, %v4831_v31 }
 0xa3c   : > { %v7606_v31 = vsel %vm4902_vm14, 1.0, %v9106_v23 }
 0xa3d   : > { %v4841_v35 = vmul.f32 %v4837_v45, %v4837_v45  ;;  %v4843_v36 = vmul.f32 %v4839_v32, %v4839_v32  ;;  %v4838_v37 = vsub.f32 %v4800_v40, %v4834_v33  ;;  %v4840_v2 = vsub.f32 %v4802_v58, %v4836_v34 }
 0xa3e   : > { %v7613_v34 = vsel %vm5131_vm5, 1.0, %v9106_v23 }
 0xa3f   : > { %v4845_v0 = vsel %vm4803_vm13, %v4841_v35, 0.0  ;;  %v4859_v60 = vsel %vm4803_vm13, %v4843_v36, 0.0  ;;  %v4842_v5 = vmul.f32 %v4838_v37, %v4838_v37  ;;  %v4844_v6 = vmul.f32 %v4840_v2, %v4840_v2  ;;  %v8955_v35 = vld [vmem:[%s11082_s9 + $0x178] sm:$0xff]  }
 0xa40   : > { %v4846_v38 = vrot.slane %v4845_v0, 4  ;;  %v4860_v42 = vrot.slane %v4859_v60, 4  ;;  %v8956_v36 = vld [vmem:[%s11082_s9 + $0x1f8] sm:$0xff]  }
 0xa41   : > { %v4852_v44 = vsel %vm4803_vm13, %v4842_v5, 0.0  ;;  %v4866_v49 = vsel %vm4803_vm13, %v4844_v6, 0.0  ;;  %v8961_v5 = vld [vmem:[%s11082_s9 + $0x130] sm:$0xff]  }
 0xa42   : > { %v4847_v50 = vadd.f32 %v4846_v38, %v4845_v0  ;;  %v4861_v51 = vadd.f32 %v4860_v42, %v4859_v60  ;;  %v4853_v22 = vrot.slane %v4852_v44, 4  ;;  %v4867_v24 = vrot.slane %v4866_v49, 4  ;;  %v8959_v0 = vld [vmem:[%s11082_s9 + $0x170] sm:$0xff]   ;;  %v8963_v38 = vld [vmem:[%s11082_s9 + $0x168] sm:$0xff]  }
 0xa43   : > { %v8960_v60 = vld [vmem:[%s11082_s9 + $0x1f0] sm:$0xff]   ;;  %v8964_v42 = vld [vmem:[%s11082_s9 + $0x1e8] sm:$0xff]  }
 0xa44   : > { %v4848_v47 = vrot.slane %v4847_v50, 2  ;;  %v4862_v52 = vrot.slane %v4861_v51, 2  ;;  %v4854_v53 = vadd.f32 %v4853_v22, %v4852_v44  ;;  %v4868_v25 = vadd.f32 %v4867_v24, %v4866_v49  ;;  %v8962_v6 = vld [vmem:[%s11082_s9 + $0x1b0] sm:$0xff]   ;;  %v8965_v44 = vld [vmem:[%s11082_s9 + $0x128] sm:$0xff]   ;;  %v8969_v22 = vld [vmem:[%s11082_s9 + $0x120] sm:$0xff]  }
 0xa45   : > { %v8966_v49 = vld [vmem:[%s11082_s9 + $0x1a8] sm:$0xff]   ;;  %v8970_v24 = vld [vmem:[%s11082_s9 + $0x1a0] sm:$0xff]  }
 0xa46   : > { %v4849_v54 = vadd.f32 %v4848_v47, %v4847_v50  ;;  %v4863_v55 = vadd.f32 %v4862_v52, %v4861_v51  ;;  %v4855_v56 = vrot.slane %v4854_v53, 2  ;;  %v4869_v39 = vrot.slane %v4868_v25, 2  ;;  %v8967_v50 = vld [vmem:[%s11082_s9 + $0x160] sm:$0xff]   ;;  %v8971_v47 = vld [vmem:[%s11082_s9 + $0x158] sm:$0xff]  }
 0xa47   : > { %v8968_v51 = vld [vmem:[%s11082_s9 + $0x1e0] sm:$0xff]   ;;  %v8972_v52 = vld [vmem:[%s11082_s9 + $0x1d8] sm:$0xff]  }
 0xa48   : > { %v4850_v57 = vrot.slane %v4849_v54, 1  ;;  %v4864_v40 = vrot.slane %v4863_v55, 1  ;;  %v4856_v58 = vadd.f32 %v4855_v56, %v4854_v53  ;;  %v4870_v59 = vadd.f32 %v4869_v39, %v4868_v25  ;;  %v8973_v53 = vld [vmem:[%s11082_s9 + $0x118] sm:$0xff]   ;;  %v8977_v56 = vld [vmem:[%s11082_s9 + $0x110] sm:$0xff]  }
 0xa49   : > { %v8974_v25 = vld [vmem:[%s11082_s9 + $0x198] sm:$0xff]   ;;  %v8978_v39 = vld [vmem:[%s11082_s9 + $0x190] sm:$0xff]  }
 0xa4a   : > { %v4851_v61 = vadd.f32 %v4850_v57, %v4849_v54  ;;  %v4865_v62 = vadd.f32 %v4864_v40, %v4863_v55  ;;  %v4857_v46 = vrot.slane %v4856_v58, 1  ;;  %v4871_v1 = vrot.slane %v4870_v59, 1  ;;  %v8975_v54 = vld [vmem:[%s11082_s9 + $0x150] sm:$0xff]   ;;  %v8979_v57 = vld [vmem:[%s11082_s9 + $0x148] sm:$0xff]  }
 0xa4b   : > { %v8976_v55 = vld [vmem:[%s11082_s9 + $0x1d0] sm:$0xff]   ;;  %v8980_v40 = vld [vmem:[%s11082_s9 + $0x1c8] sm:$0xff]  }
 0xa4c   : > { %v4873_v4 = vmul.f32 0.25, %v4851_v61  ;;  %v4875_v7 = vmul.f32 0.25, %v4865_v62  ;;  %v4858_v8 = vadd.f32 %v4857_v46, %v4856_v58  ;;  %v4872_v63 = vadd.f32 %v4871_v1, %v4870_v59  ;;  %v8981_v58 = vld [vmem:[%s11082_s9 + $0x108] sm:$0xff]   ;;  %v8983_v61 = vld [vmem:[%s11082_s9 + $0x140] sm:$0xff]  }
 0xa4d   : > { %v8982_v59 = vld [vmem:[%s11082_s9 + $0x188] sm:$0xff]   ;;  %v8984_v62 = vld [vmem:[%s11082_s9 + $0x1c0] sm:$0xff]  }
 0xa4e   : > { %v4877_v9 = vadd.f32 1e-05, %v4873_v4  ;;  %v4879_v10 = vadd.f32 1e-05, %v4875_v7  ;;  %v4874_v11 = vmul.f32 0.25, %v4858_v8  ;;  %v4876_v13 = vmul.f32 0.25, %v4872_v63 }
 0xa4f   : > { %v8985_v46 = vld [vmem:[%s11082_s9 + $0x100] sm:$0xff]   ;;  %v8987_v4 = vld [vmem:[%s11082_s9 + $0x78] sm:$0xff]  }
 0xa50   : > { %9089 = vrsqrt.f32 %v4877_v9  ;;  %v4878_v14 = vadd.f32 1e-05, %v4874_v11  ;;  %v4880_v15 = vadd.f32 1e-05, %v4876_v13  ;;  %v8986_v1 = vld [vmem:[%s11082_s9 + $0x180] sm:$0xff]   ;;  %v8988_v7 = vld [vmem:[%s11082_s9 + $0xf8] sm:$0xff]  }
 0xa51   : > { %9091 = vrsqrt.f32 %v4879_v10 }
 0xa52   : > { %9093 = vrsqrt.f32 %v4878_v14 }
 0xa53   : > { %9095 = vrsqrt.f32 %v4880_v15 }
 0xa5d   : > { %v9090_v16 = vpop.eup %9089 }
 0xa5e   : > { %v9092_v27 = vpop.eup %9091  ;;  %v4885_v17 = vmul.f32 %v9090_v16, %v4837_v45 }
 0xa5f   : > { %v9094_v18 = vpop.eup %9093  ;;  %v4887_v48 = vmul.f32 %v9092_v27, %v4839_v32 }
 0xa60   : > { %v9096_v19 = vpop.eup %9095  ;;  %v4886_v20 = vmul.f32 %v9094_v18, %v4838_v37  ;;  %v4893_v28 = vmul.f32 0.2, %v4885_v17  ;;  %vm4889_vm0 = vcmp.gt.f32.partialorder %v4885_v17, 0.0  ;;  %v8957_v37 = vld [vmem:[%s11082_s9 + $0x138] sm:$0xff]  }
 0xa61   : > { %v4888_v21 = vmul.f32 %v9096_v19, %v4840_v2  ;;  %v4895_v43 = vmul.f32 0.2, %v4887_v48  ;;  %vm4891_vm3 = vcmp.gt.f32.partialorder %v4887_v48, 0.0  ;;  %v8958_v2 = vld [vmem:[%s11082_s9 + $0x1b8] sm:$0xff]   ;;  %v8991_v19 = vld [vmem:[%s11082_s9 + $0x70] sm:$0xff]  }
 0xa62   : > { %vm4890_vm15 = vcmp.gt.f32.partialorder %v4886_v20, 0.0  ;;  %v4894_v29 = vmul.f32 0.2, %v4886_v20  ;;  %v10614_v32 = vsel %vm4889_vm0, %v4885_v17, %v4893_v28  ;;  %v8990_v18 = vld [vmem:[%s11082_s9 + $0xb8] sm:$0xff]  }
 0xa63   : > { %vm4892_vm2 = vcmp.gt.f32.partialorder %v4888_v21, 0.0  ;;  %v4896_v30 = vmul.f32 0.2, %v4888_v21  ;;  %v10622_v33 = vsel %vm4891_vm3, %v4887_v48, %v4895_v43  ;;  %v8994_v43 = vld [vmem:[%s11082_s9 + $0xb0] sm:$0xff]  }
 0xa64   : > { %v10607_v41 = vsel %vm4890_vm15, %v4886_v20, %v4894_v29  ;;  %v8993_v29 = vld [vmem:[%s11082_s9 + $0x30] sm:$0xff]  }
 0xa65   : > { %7607 = vmatprep.subr.msk.mxu1 %vm4803_vm13, %v10607_v41  ;;  %v10612_v45 = vsel %vm4892_vm2, %v4888_v21, %v4896_v30  ;;  %v8992_v21 = vld [vmem:[%s11082_s9 + $0xf0] sm:$0xff]   ;;  %v8995_v30 = vld [vmem:[%s11082_s9 + $0x68] sm:$0xff]  }
 0xa66   : > { %7610 = vmatprep.subr.msk.mxu0 %vm4803_vm13, %v10612_v45  ;;  %7608 = vmatpush1.msk.msra.mxu1 %vm4803_vm13, %v10614_v32 }
 0xa67   : > { %7611 = vmatpush1.msk.msra.mxu0 %vm4803_vm13, %v10622_v33  ;;  %7609 = vmatmul.mubr.msk.f32.vlgmr.msra.gmra.mxu1 %vm4905_vm4, %v7606_v31 }
 0xa68   : > { %7612 = vmatmul.mubr.msk.f32.vlgmr.msra.gmra.mxu0 %vm4905_vm4, %v7606_v31  ;;  %7614 = vmatprep.subr.msk.mxu1 %vm4803_vm13, %v10607_v41  ;;  %v8996_v31 = vld [vmem:[%s11082_s9 + $0xe8] sm:$0xff]  }
 0xa69   : > { %7617 = vmatprep.subr.msk.mxu0 %vm4803_vm13, %v10612_v45  ;;  %7615 = vmatpush1.msk.msra.mxu1 %vm4803_vm13, %v10614_v32 }
 0xa6a   : > { %7618 = vmatpush1.msk.msra.mxu0 %vm4803_vm13, %v10622_v33  ;;  %5201 = vmatprep.mubr.f32.mxu1 %v9106_v23 }
 0xa6b   : > { %5272 = vmatprep.mubr.f32.mxu0 %v9106_v23  ;;  %7616 = vmatmul.mubr.msk.f32.vlgmr.msra.gmra.mxu1 %vm4905_vm4, %v7613_v34 }
 0xa6c   : > { %7619 = vmatmul.mubr.msk.f32.vlgmr.msra.gmra.mxu0 %vm4905_vm4, %v7613_v34  ;;  %8062 = vmatprep.subr.bf16.mxu1 %v8955_v35  ;;  %v8997_v34 = vld [vmem:[%s11082_s9 + $0x28] sm:$0xff]  }
 0xa6d   : > { %8084 = vmatprep.subr.bf16.mxu0 %v8956_v36  ;;  %8063 = vmatpush3.bf16.msra.mxu1 %v8957_v37  ;;  %v8998_v35 = vld [vmem:[%s11082_s9 + $0xa8] sm:$0xff]   ;;  %v8999_v36 = vld [vmem:[%s11082_s9 + $0x60] sm:$0xff]  }
 0xa6e   : > { %8085 = vmatpush3.bf16.msra.mxu0 %v8958_v2  ;;  %8064 = vmatprep.subr.bf16.mxu1 %v8959_v0  ;;  %v9000_v37 = vld [vmem:[%s11082_s9 + $0xe0] sm:$0xff]  }
 0xa6f   : > { %8086 = vmatprep.subr.bf16.mxu0 %v8960_v60  ;;  %v9001_v2 = vld [vmem:[%s11082_s9 + $0x20] sm:$0xff]   ;;  %v9003_v60 = vld [vmem:[%s11082_s9 + $0x58] sm:$0xff]  }
 0xa70   : > { %v9002_v0 = vld [vmem:[%s11082_s9 + $0xa0] sm:$0xff]  }
 0xa71   : > { %8065 = vmatpush3.bf16.msra.mxu1 %v8961_v5  ;;  %v9004_v5 = vld [vmem:[%s11082_s9 + $0xd8] sm:$0xff]  }
 0xa72   : > { %8087 = vmatpush3.bf16.msra.mxu0 %v8962_v6  ;;  %8066 = vmatprep.subr.bf16.mxu1 %v8963_v38  ;;  %v9005_v6 = vld [vmem:[%s11082_s9 + $0x18] sm:$0xff]  }
 0xa73   : > { %8088 = vmatprep.subr.bf16.mxu0 %v8964_v42  ;;  %v9006_v38 = vld [vmem:[%s11082_s9 + $0x98] sm:$0xff]   ;;  %v9007_v42 = vld [vmem:[%s11082_s9 + $0x50] sm:$0xff]  }
 0xa75   : > { %8067 = vmatpush3.bf16.msra.mxu1 %v8965_v44  ;;  %v9008_v44 = vld [vmem:[%s11082_s9 + $0xd0] sm:$0xff]  }
 0xa76   : > { %8089 = vmatpush3.bf16.msra.mxu0 %v8966_v49  ;;  %8068 = vmatprep.subr.bf16.mxu1 %v8967_v50  ;;  %v9009_v49 = vld [vmem:[%s11082_s9 + $0x10] sm:$0xff]  }
 0xa77   : > { %8090 = vmatprep.subr.bf16.mxu0 %v8968_v51  ;;  %v9010_v50 = vld [vmem:[%s11082_s9 + $0x90] sm:$0xff]   ;;  %v9011_v51 = vld [vmem:[%s11082_s9 + $0x48] sm:$0xff]  }
 0xa79   : > { %8069 = vmatpush3.bf16.msra.mxu1 %v8969_v22  ;;  %v9012_v22 = vld [vmem:[%s11082_s9 + $0xc8] sm:$0xff]  }
 0xa7a   : > { %8091 = vmatpush3.bf16.msra.mxu0 %v8970_v24  ;;  %8070 = vmatprep.subr.bf16.mxu1 %v8971_v47  ;;  %v9013_v24 = vld [vmem:[%s11082_s9 + $0x8] sm:$0xff]  }
 0xa7b   : > { %8092 = vmatprep.subr.bf16.mxu0 %v8972_v52  ;;  %v9014_v47 = vld [vmem:[%s11082_s9 + $0x88] sm:$0xff]   ;;  %v9015_v52 = vld [vmem:[%s11082_s9 + $0x40] sm:$0xff]  }
 0xa7d   : > { %8071 = vmatpush3.bf16.msra.mxu1 %v8973_v53  ;;  %v9016_v53 = vld [vmem:[%s11082_s9 + $0xc0] sm:$0xff]  }
 0xa7e   : > { %8093 = vmatpush3.bf16.msra.mxu0 %v8974_v25  ;;  %8072 = vmatprep.subr.bf16.mxu1 %v8975_v54  ;;  %v9017_v25 = vld [vmem:[%s11082_s9] sm:$0xff]  }
 0xa7f   : > { %8094 = vmatprep.subr.bf16.mxu0 %v8976_v55  ;;  %v9018_v54 = vld [vmem:[%s11082_s9 + $0x80] sm:$0xff]  }
 0xa81   : > { %8073 = vmatpush3.bf16.msra.mxu1 %v8977_v56  ;;  %v5892_v56 = vadd.s32 1, %v9183_v3 }
 0xa82   : > { %8095 = vmatpush3.bf16.msra.mxu0 %v8978_v39  ;;  %8074 = vmatprep.subr.bf16.mxu1 %v8979_v57  ;;  %v9019_v57 = vld [vmem:[%s11082_s9 + $0x278] sm:$0xff]  }
 0xa83   : > { %8096 = vmatprep.subr.bf16.mxu0 %v8980_v40  ;;  %v9020_v40 = vld [vmem:[%s11082_s9 + $0x2f8] sm:$0xff]   ;;  %vm5893_vm6 = vcmp.eq.s32.totalorder %v9220_v12, %v5892_v56 }
 0xa85   : > { %8075 = vmatpush3.bf16.msra.mxu1 %v8981_v58  ;;  %v7748_v58 = vsel %vm5893_vm6, 1.0, %v9106_v23 }
 0xa86   : > { %8097 = vmatpush3.bf16.msra.mxu0 %v8982_v59  ;;  %8076 = vmatprep.subr.bf16.mxu1 %v8983_v61  ;;  %v9021_v59 = vld [vmem:[%s11082_s9 + $0x238] sm:$0xff]  }
 0xa87   : > { %8098 = vmatprep.subr.bf16.mxu0 %v8984_v62  ;;  %v9022_v61 = vld [vmem:[%s11082_s9 + $0x2b8] sm:$0xff]   ;;  %v9023_v62 = vld [vmem:[%s11082_s9 + $0x270] sm:$0xff]  }
 0xa89   : > { %8077 = vmatpush3.bf16.msra.mxu1 %v8985_v46  ;;  %v9024_v46 = vld [vmem:[%s11082_s9 + $0x2f0] sm:$0xff]  }
 0xa8a   : > { %8099 = vmatpush3.bf16.msra.mxu0 %v8986_v1  ;;  %8106 = vmatprep.subr.bf16.mxu1 %v8987_v4  ;;  %v9025_v1 = vld [vmem:[%s11082_s9 + $0x230] sm:$0xff]  }
 0xa8b   : > { %8128 = vmatprep.subr.bf16.mxu0 %v8988_v7  ;;  %v9026_v4 = vld [vmem:[%s11082_s9 + $0x2b0] sm:$0xff]   ;;  %v9027_v7 = vld [vmem:[%s11082_s9 + $0x268] sm:$0xff]  }
 0xb27   : > { %v10743_v8 = vpop.f32.mrf.mxu1 }
 0xb28   : > { %v10745_v63 = vpop.f32.mrf.mxu0  ;;  %v5127_v55 = vpack.c.bf16 %v10743_v8, %v10743_v8  ;;  %v9028_v8 = vld [vmem:[%s11082_s9 + $0x2e8] sm:$0xff]  }
 0xb29   : > { %v4989_v9 = vpop.f32.mrf.mxu1  ;;  %v5129_v39 = vpack.c.bf16 %v10745_v63, %v10745_v63  ;;  %v9029_v63 = vld [vmem:[%s11082_s9 + $0x228] sm:$0xff]  }
 0xb2a   : > { %v5060_v10 = vpop.f32.mrf.mxu0  ;;  %v5128_v20 = vpack.c.bf16 %v4989_v9, %v4989_v9  ;;  %v9030_v9 = vld [vmem:[%s11082_s9 + $0x2a8] sm:$0xff]  }
 0xb2b   : > { %v5203_v11 = vpop.f32.mrf.mxu1  ;;  %v5130_v28 = vpack.c.bf16 %v5060_v10, %v5060_v10  ;;  %v9031_v10 = vld [vmem:[%s11082_s9 + $0x260] sm:$0xff]  }
 0xb2c   : > { %v5274_v13 = vpop.f32.mrf.mxu0  ;;  %v5344_v27 = vpack.c.bf16 %v5203_v11, %v5203_v11  ;;  %v9032_v11 = vld [vmem:[%s11082_s9 + $0x2e0] sm:$0xff]  }
 0xb2d   : > { %v5205_v14 = vpop.f32.mrf.mxu1  ;;  %v5346_v48 = vpack.c.bf16 %v5274_v13, %v5274_v13  ;;  %v9033_v13 = vld [vmem:[%s11082_s9 + $0x220] sm:$0xff]  }
 0xb2e   : > { %v5345_v15 = vpack.c.bf16 %v5205_v14, %v5205_v14  ;;  %v5276_v16 = vpop.f32.mrf.mxu0  ;;  %v9034_v14 = vld [vmem:[%s11082_s9 + $0x2a0] sm:$0xff]  }
 0xb2f   : > { %v5347_v17 = vpack.c.bf16 %v5276_v16, %v5276_v16  ;;  %v9036_v16 = vld [vmem:[%s11082_s9 + $0x2d8] sm:$0xff]  }
 0xb30   : > { %5572 = vmatprep.mubr.bf16.mxu1 %v5345_v15  ;;  %v9035_v15 = vld [vmem:[%s11082_s9 + $0x258] sm:$0xff]  }
 0xb31   : > { %5612 = vmatprep.mubr.bf16.mxu0 %v5347_v17  ;;  %5573 = vmatmul.mubr.bf16.vlgmr.msra.gmra.mxu1 %v5344_v27  ;;  %v9038_v27 = vld [vmem:[%s11082_s9 + $0x298] sm:$0xff]   ;;  %v9039_v17 = vld [vmem:[%s11082_s9 + $0x250] sm:$0xff]  }
 0xb32   : > { %5613 = vmatmul.mubr.bf16.vlgmr.msra.gmra.mxu0 %v5346_v48  ;;  %8107 = vmatpush3.bf16.msra.mxu1 %v8989_v26  ;;  %v9037_v26 = vld [vmem:[%s11082_s9 + $0x218] sm:$0xff]   ;;  %v9041_v48 = vld [vmem:[%s11082_s9 + $0x210] sm:$0xff]  }
 0xb33   : > { %8129 = vmatpush3.bf16.msra.mxu0 %v8990_v18  ;;  %5844 = vmatprep.mubr.bf16.mxu1 %v5128_v20  ;;  %v9040_v18 = vld [vmem:[%s11082_s9 + $0x2d0] sm:$0xff]   ;;  %v9043_v20 = vld [vmem:[%s11082_s9 + $0x248] sm:$0xff]  }
 0xb34   : > { %5884 = vmatprep.mubr.bf16.mxu0 %v5130_v28  ;;  %8108 = vmatprep.subr.bf16.mxu1 %v8991_v19  ;;  %v9042_v19 = vld [vmem:[%s11082_s9 + $0x290] sm:$0xff]   ;;  %v9045_v28 = vld [vmem:[%s11082_s9 + $0x208] sm:$0xff]  }
 0xb35   : > { %8130 = vmatprep.subr.bf16.mxu0 %v8992_v21  ;;  %v9044_v21 = vld [vmem:[%s11082_s9 + $0x2c8] sm:$0xff]  }
 0xb36   : > { %8109 = vmatpush3.bf16.msra.mxu1 %v8993_v29  ;;  %v9046_v29 = vld [vmem:[%s11082_s9 + $0x288] sm:$0xff]  }
 0xb37   : > { %8131 = vmatpush3.bf16.msra.mxu0 %v8994_v43  ;;  %8110 = vmatprep.subr.bf16.mxu1 %v8995_v30  ;;  %v9047_v43 = vld [vmem:[%s11082_s9 + $0x240] sm:$0xff]  }
 0xb38   : > { %8132 = vmatprep.subr.bf16.mxu0 %v8996_v31  ;;  %v9048_v30 = vld [vmem:[%s11082_s9 + $0x2c0] sm:$0xff]  }
 0xb39   : > { %v9049_v31 = vld [vmem:[%s11082_s9 + $0x200] sm:$0xff]  }
 0xb3a   : > { %8111 = vmatpush3.bf16.msra.mxu1 %v8997_v34  ;;  %v9050_v34 = vld [vmem:[%s11082_s9 + $0x280] sm:$0xff]  }
 0xb3b   : > { %8133 = vmatpush3.bf16.msra.mxu0 %v8998_v35  ;;  %8112 = vmatprep.subr.bf16.mxu1 %v8999_v36 }
 0xb3c   : > { %8134 = vmatprep.subr.bf16.mxu0 %v9000_v37 }
 0xb3e   : > { %8113 = vmatpush3.bf16.msra.mxu1 %v9001_v2 }
 0xb3f   : > { %8135 = vmatpush3.bf16.msra.mxu0 %v9002_v0  ;;  %8114 = vmatprep.subr.bf16.mxu1 %v9003_v60 }
 0xb40   : > { %8136 = vmatprep.subr.bf16.mxu0 %v9004_v5 }
 0xb42   : > { %8115 = vmatpush3.bf16.msra.mxu1 %v9005_v6 }
 0xb43   : > { %8137 = vmatpush3.bf16.msra.mxu0 %v9006_v38  ;;  %8116 = vmatprep.subr.bf16.mxu1 %v9007_v42 }
 0xb44   : > { %8138 = vmatprep.subr.bf16.mxu0 %v9008_v44 }
 0xb46   : > { %8117 = vmatpush3.bf16.msra.mxu1 %v9009_v49 }
 0xb47   : > { %8139 = vmatpush3.bf16.msra.mxu0 %v9010_v50  ;;  %8118 = vmatprep.subr.bf16.mxu1 %v9011_v51 }
 0xb48   : > { %8140 = vmatprep.subr.bf16.mxu0 %v9012_v22 }
 0xb4a   : > { %8119 = vmatpush3.bf16.msra.mxu1 %v9013_v24 }
 0xb4b   : > { %8141 = vmatpush3.bf16.msra.mxu0 %v9014_v47  ;;  %8120 = vmatprep.subr.bf16.mxu1 %v9015_v52 }
 0xb4c   : > { %8142 = vmatprep.subr.bf16.mxu0 %v9016_v53 }
 0xb4e   : > { %8121 = vmatpush3.bf16.msra.mxu1 %v9017_v25 }
 0xb4f   : > { %8143 = vmatpush3.bf16.msra.mxu0 %v9018_v54  ;;  %7749 = vmatprep.subr.msk.mxu1 %vm4803_vm13, %v10607_v41 }
 0xb50   : > { %7752 = vmatprep.subr.msk.mxu0 %vm4803_vm13, %v10612_v45 }
 0xb51   : > { %5845 = vmatmul.mubr.bf16.vlgmr.msra.gmra.mxu1 %v5127_v55 }
 0xb52   : > { %5885 = vmatmul.mubr.bf16.vlgmr.msra.gmra.mxu0 %v5129_v39  ;;  %7750 = vmatpush1.msk.msra.mxu1 %vm4803_vm13, %v10614_v32 }
 0xb53   : > { %7753 = vmatpush1.msk.msra.mxu0 %vm4803_vm13, %v10622_v33  ;;  %5963 = vmatprep.mubr.f32.mxu1 %v9106_v23 }
 0xb54   : > { %6034 = vmatprep.mubr.f32.mxu0 %v9106_v23  ;;  %8150 = vmatprep.subr.bf16.mxu1 %v9019_v57 }
 0xb55   : > { %8172 = vmatprep.subr.bf16.mxu0 %v9020_v40 }
 0xb59   : > { %7751 = vmatmul.mubr.msk.f32.vlgmr.msra.gmra.mxu1 %vm4905_vm4, %v7748_v58 }
 0xb5a   : > { %7754 = vmatmul.mubr.msk.f32.vlgmr.msra.gmra.mxu0 %vm4905_vm4, %v7748_v58  ;;  %8151 = vmatpush3.bf16.msra.mxu1 %v9021_v59 }
 0xb5b   : > { %8173 = vmatpush3.bf16.msra.mxu0 %v9022_v61  ;;  %8152 = vmatprep.subr.bf16.mxu1 %v9023_v62  ;;  %v6383_v61 = vadd.s32 2, %v9183_v3 }
 0xb5c   : > { %8174 = vmatprep.subr.bf16.mxu0 %v9024_v46  ;;  %v9051_v46 = vld [vmem:[%s11082_s9 + $0x378] sm:$0xff]  }
 0xb5d   : > { %vm6384_vm7 = vcmp.eq.s32.totalorder %v9220_v12, %v6383_v61  ;;  %v9056_v12 = vld [vmem:[%s11082_s9 + $0x3f0] sm:$0xff]  }
 0xb5e   : > { %8153 = vmatpush3.bf16.msra.mxu1 %v9025_v1  ;;  %v9052_v1 = vld [vmem:[%s11082_s9 + $0x3f8] sm:$0xff]   ;;  %v7851_v3 = vsel %vm6384_vm7, 1.0, %v9106_v23 }
 0xb5f   : > { %8175 = vmatpush3.bf16.msra.mxu0 %v9026_v4  ;;  %8154 = vmatprep.subr.bf16.mxu1 %v9027_v7  ;;  %v9053_v4 = vld [vmem:[%s11082_s9 + $0x338] sm:$0xff]   ;;  %v9058_v7 = vld [vmem:[%s11082_s9 + $0x3b0] sm:$0xff]  }
 0xb60   : > { %8176 = vmatprep.subr.bf16.mxu0 %v9028_v8  ;;  %v9059_v8 = vld [vmem:[%s11082_s9 + $0x368] sm:$0xff]  }
 0xb62   : > { %8155 = vmatpush3.bf16.msra.mxu1 %v9029_v63  ;;  %v9060_v63 = vld [vmem:[%s11082_s9 + $0x3e8] sm:$0xff]  }
 0xb63   : > { %8177 = vmatpush3.bf16.msra.mxu0 %v9030_v9  ;;  %8156 = vmatprep.subr.bf16.mxu1 %v9031_v10  ;;  %v9061_v9 = vld [vmem:[%s11082_s9 + $0x328] sm:$0xff]  }
 0xb64   : > { %8178 = vmatprep.subr.bf16.mxu0 %v9032_v11  ;;  %v9062_v10 = vld [vmem:[%s11082_s9 + $0x3a8] sm:$0xff]   ;;  %v9063_v11 = vld [vmem:[%s11082_s9 + $0x360] sm:$0xff]  }
 0xb66   : > { %8157 = vmatpush3.bf16.msra.mxu1 %v9033_v13  ;;  %v9064_v13 = vld [vmem:[%s11082_s9 + $0x3e0] sm:$0xff]  }
 0xb67   : > { %8179 = vmatpush3.bf16.msra.mxu0 %v9034_v14  ;;  %8158 = vmatprep.subr.bf16.mxu1 %v9035_v15  ;;  %v9065_v14 = vld [vmem:[%s11082_s9 + $0x320] sm:$0xff]  }
 0xb68   : > { %8180 = vmatprep.subr.bf16.mxu0 %v9036_v16  ;;  %v9066_v15 = vld [vmem:[%s11082_s9 + $0x3a0] sm:$0xff]   ;;  %v9067_v16 = vld [vmem:[%s11082_s9 + $0x358] sm:$0xff]  }
 0xb6a   : > { %8159 = vmatpush3.bf16.msra.mxu1 %v9037_v26  ;;  %v9068_v26 = vld [vmem:[%s11082_s9 + $0x3d8] sm:$0xff]  }
 0xb6b   : > { %8181 = vmatpush3.bf16.msra.mxu0 %v9038_v27  ;;  %8160 = vmatprep.subr.bf16.mxu1 %v9039_v17  ;;  %v9069_v27 = vld [vmem:[%s11082_s9 + $0x318] sm:$0xff]  }
 0xb6c   : > { %8182 = vmatprep.subr.bf16.mxu0 %v9040_v18  ;;  %v9070_v17 = vld [vmem:[%s11082_s9 + $0x398] sm:$0xff]   ;;  %v9071_v18 = vld [vmem:[%s11082_s9 + $0x350] sm:$0xff]  }
 0xb6e   : > { %8161 = vmatpush3.bf16.msra.mxu1 %v9041_v48  ;;  %v9072_v48 = vld [vmem:[%s11082_s9 + $0x3d0] sm:$0xff]  }
 0xb6f   : > { %8183 = vmatpush3.bf16.msra.mxu0 %v9042_v19  ;;  %8162 = vmatprep.subr.bf16.mxu1 %v9043_v20  ;;  %v9073_v19 = vld [vmem:[%s11082_s9 + $0x310] sm:$0xff]  }
 0xb70   : > { %8184 = vmatprep.subr.bf16.mxu0 %v9044_v21  ;;  %v9074_v20 = vld [vmem:[%s11082_s9 + $0x390] sm:$0xff]   ;;  %v9075_v21 = vld [vmem:[%s11082_s9 + $0x348] sm:$0xff]  }
 0xb72   : > { %8163 = vmatpush3.bf16.msra.mxu1 %v9045_v28  ;;  %v9076_v28 = vld [vmem:[%s11082_s9 + $0x3c8] sm:$0xff]  }
 0xb73   : > { %8185 = vmatpush3.bf16.msra.mxu0 %v9046_v29  ;;  %8164 = vmatprep.subr.bf16.mxu1 %v9047_v43  ;;  %v9077_v29 = vld [vmem:[%s11082_s9 + $0x308] sm:$0xff]  }
 0xb74   : > { %8186 = vmatprep.subr.bf16.mxu0 %v9048_v30  ;;  %v9078_v43 = vld [vmem:[%s11082_s9 + $0x388] sm:$0xff]   ;;  %v9079_v30 = vld [vmem:[%s11082_s9 + $0x340] sm:$0xff]  }
 0xb76   : > { %8165 = vmatpush3.bf16.msra.mxu1 %v9049_v31  ;;  %v9080_v31 = vld [vmem:[%s11082_s9 + $0x3c0] sm:$0xff]  }
 0xb77   : > { %8187 = vmatpush3.bf16.msra.mxu0 %v9050_v34  ;;  %7852 = vmatprep.subr.msk.mxu1 %vm4803_vm13, %v10607_v41  ;;  %v9081_v34 = vld [vmem:[%s11082_s9 + $0x300] sm:$0xff]  }
 0xb78   : > { %7855 = vmatprep.subr.msk.mxu0 %vm4803_vm13, %v10612_v45 }
 0xbf1   : > { %v8078_v35 = vpop.f32.mrf.mxu1 }
 0xbf2   : > { %v8100_v36 = vpop.f32.mrf.mxu0 }
 0xbf3   : > { %v8079_v37 = vpop.f32.mrf.mxu1 }
 0xbf4   : > { %v8080_v2 = vadd.f32 %v8079_v37, %v8078_v35  ;;  %v8101_v0 = vpop.f32.mrf.mxu0  ;;  %v9082_v35 = vld [vmem:[%s11082_s9 + $0x380] sm:$0xff]  }
 0xbf5   : > { %v8102_v60 = vadd.f32 %v8101_v0, %v8100_v36  ;;  %v8081_v5 = vpop.f32.mrf.mxu1 }
 0xbf6   : > { %v8103_v6 = vpop.f32.mrf.mxu0 }
 0xbf7   : > { %v5615_v38 = vadd.f32 %v8102_v60, %v8080_v2  ;;  %v8082_v42 = vpop.f32.mrf.mxu1 }
 0xbf8   : > { %v8104_v44 = vpop.f32.mrf.mxu0 }
 0xc11   : > { %v8122_v49 = vpop.f32.mrf.mxu1 }
 0xc12   : > { %v8144_v50 = vpop.f32.mrf.mxu0 }
 0xc13   : > { %v8123_v51 = vpop.f32.mrf.mxu1 }
 0xc14   : > { %v8124_v22 = vadd.f32 %v8123_v51, %v8122_v49  ;;  %v8145_v24 = vpop.f32.mrf.mxu0 }
 0xc15   : > { %v8146_v41 = vadd.f32 %v8145_v24, %v8144_v50  ;;  %v8125_v47 = vpop.f32.mrf.mxu1 }
 0xc16   : > { %v5847_v52 = vadd.f32 %v8124_v22, %v5615_v38  ;;  %v8147_v45 = vpop.f32.mrf.mxu0 }
 0xc17   : > { %v8126_v53 = vpop.f32.mrf.mxu1 }
 0xc18   : > { %v10956_v25 = vadd.f32 %v8146_v41, %v5847_v52  ;;  %v8148_v54 = vpop.f32.mrf.mxu0 }
 0xc19   : > { %v5965_v55 = vpop.f32.mrf.mxu1 }
 0xc1a   : > { %v6036_v56 = vpop.f32.mrf.mxu0  ;;  %v6106_v58 = vpack.c.bf16 %v5965_v55, %v5965_v55 }
 0xc1b   : > { %v5967_v39 = vpop.f32.mrf.mxu1  ;;  %v6108_v62 = vpack.c.bf16 %v6036_v56, %v6036_v56 }
 0xc1c   : > { %v6107_v57 = vpack.c.bf16 %v5967_v39, %v5967_v39  ;;  %v6038_v40 = vpop.f32.mrf.mxu0 }
 0xc1d   : > { %v6109_v59 = vpack.c.bf16 %v6038_v40, %v6038_v40 }
 0xc1e   : > { %6334 = vmatprep.mubr.bf16.mxu1 %v6107_v57 }
 0xc1f   : > { %6374 = vmatprep.mubr.bf16.mxu0 %v6109_v59  ;;  %6335 = vmatmul.mubr.bf16.vlgmr.msra.gmra.mxu1 %v6106_v58 }
 0xc20   : > { %6375 = vmatmul.mubr.bf16.vlgmr.msra.gmra.mxu0 %v6108_v62  ;;  %7853 = vmatpush1.msk.msra.mxu1 %vm4803_vm13, %v10614_v32  ;;  %v9054_v32 = vld [vmem:[%s11082_s9 + $0x3b8] sm:$0xff]   ;;  %v7954_v62 = vld [vmem:[#allocation2] ss:$0 sm:$0xff] }
 0xc21   : > { %7856 = vmatpush1.msk.msra.mxu0 %vm4803_vm13, %v10622_v33  ;;  %6454 = vmatprep.mubr.f32.mxu1 %v9106_v23  ;;  %v9055_v33 = vld [vmem:[%s11082_s9 + $0x370] sm:$0xff]  }
 0xc22   : > { %6525 = vmatprep.mubr.f32.mxu0 %v9106_v23  ;;  %8194 = vmatprep.subr.bf16.mxu1 %v9051_v46  ;;  %v9057_v23 = vld [vmem:[%s11082_s9 + $0x330] sm:$0xff]  }
 0xc23   : > { %8216 = vmatprep.subr.bf16.mxu0 %v9052_v1 }
 0xc27   : > { %7854 = vmatmul.mubr.msk.f32.vlgmr.msra.gmra.mxu1 %vm4905_vm4, %v7851_v3 }
 0xc28   : > { %7857 = vmatmul.mubr.msk.f32.vlgmr.msra.gmra.mxu0 %vm4905_vm4, %v7851_v3  ;;  %8195 = vmatpush3.bf16.msra.mxu1 %v9053_v4 }
 0xc29   : > { %8217 = vmatpush3.bf16.msra.mxu0 %v9054_v32  ;;  %8196 = vmatprep.subr.bf16.mxu1 %v9055_v33 }
 0xc2a   : > { %8218 = vmatprep.subr.bf16.mxu0 %v9056_v12 }
 0xc2c   : > { %8197 = vmatpush3.bf16.msra.mxu1 %v9057_v23 }
 0xc2d   : > { %8219 = vmatpush3.bf16.msra.mxu0 %v9058_v7  ;;  %8198 = vmatprep.subr.bf16.mxu1 %v9059_v8 }
 0xc2e   : > { %8220 = vmatprep.subr.bf16.mxu0 %v9060_v63 }
 0xc30   : > { %8199 = vmatpush3.bf16.msra.mxu1 %v9061_v9 }
 0xc31   : > { %8221 = vmatpush3.bf16.msra.mxu0 %v9062_v10  ;;  %8200 = vmatprep.subr.bf16.mxu1 %v9063_v11 }
 0xc32   : > { %8222 = vmatprep.subr.bf16.mxu0 %v9064_v13 }
 0xc34   : > { %8201 = vmatpush3.bf16.msra.mxu1 %v9065_v14 }
 0xc35   : > { %8223 = vmatpush3.bf16.msra.mxu0 %v9066_v15  ;;  %8202 = vmatprep.subr.bf16.mxu1 %v9067_v16 }
 0xc36   : > { %8224 = vmatprep.subr.bf16.mxu0 %v9068_v26 }
 0xc38   : > { %8203 = vmatpush3.bf16.msra.mxu1 %v9069_v27 }
 0xc39   : > { %8225 = vmatpush3.bf16.msra.mxu0 %v9070_v17  ;;  %8204 = vmatprep.subr.bf16.mxu1 %v9071_v18 }
 0xc3a   : > { %8226 = vmatprep.subr.bf16.mxu0 %v9072_v48 }
 0xc3c   : > { %8205 = vmatpush3.bf16.msra.mxu1 %v9073_v19 }
 0xc3d   : > { %8227 = vmatpush3.bf16.msra.mxu0 %v9074_v20  ;;  %8206 = vmatprep.subr.bf16.mxu1 %v9075_v21 }
 0xc3e   : > { %8228 = vmatprep.subr.bf16.mxu0 %v9076_v28 }
 0xc40   : > { %8207 = vmatpush3.bf16.msra.mxu1 %v9077_v29 }
 0xc41   : > { %8229 = vmatpush3.bf16.msra.mxu0 %v9078_v43  ;;  %8208 = vmatprep.subr.bf16.mxu1 %v9079_v30 }
 0xc42   : > { %8230 = vmatprep.subr.bf16.mxu0 %v9080_v31 }
 0xc44   : > { %8209 = vmatpush3.bf16.msra.mxu1 %v9081_v34 }
 0xc45   : > { %8231 = vmatpush3.bf16.msra.mxu0 %v9082_v35 }
 0xcdf   : > { %v8166_v36 = vpop.f32.mrf.mxu1 }
 0xce0   : > { %v8188_v37 = vpop.f32.mrf.mxu0 }
 0xce1   : > { %v8167_v2 = vpop.f32.mrf.mxu1 }
 0xce2   : > { %v8168_v0 = vadd.f32 %v8167_v2, %v8166_v36  ;;  %v8189_v60 = vpop.f32.mrf.mxu0 }
 0xce3   : > { %v8190_v5 = vadd.f32 %v8189_v60, %v8188_v37  ;;  %v8169_v6 = vpop.f32.mrf.mxu1 }
 0xce4   : > { %v8191_v38 = vpop.f32.mrf.mxu0 }
 0xce5   : > { %v6377_v42 = vadd.f32 %v8190_v5, %v8168_v0  ;;  %v8170_v44 = vpop.f32.mrf.mxu1 }
 0xce6   : > { %v8192_v49 = vpop.f32.mrf.mxu0 }
 0xce7   : > { %v6382_v50 = vadd.f32 %v6377_v42, %v10956_v25  ;;  %v6456_v51 = vpop.f32.mrf.mxu1 }
 0xce8   : > { %v6527_v22 = vpop.f32.mrf.mxu0  ;;  %v6597_v52 = vpack.c.bf16 %v6456_v51, %v6456_v51 }
 0xce9   : > { %v6458_v24 = vpop.f32.mrf.mxu1  ;;  %v6599_v53 = vpack.c.bf16 %v6527_v22, %v6527_v22 }
 0xcea   : > { %v6598_v41 = vpack.c.bf16 %v6458_v24, %v6458_v24  ;;  %v6529_v47 = vpop.f32.mrf.mxu0 }
 0xceb   : > { %v6600_v45 = vpack.c.bf16 %v6529_v47, %v6529_v47 }
 0xcec   : > { %6825 = vmatprep.mubr.bf16.mxu1 %v6598_v41 }
 0xced   : > { %6865 = vmatprep.mubr.bf16.mxu0 %v6600_v45  ;;  %6826 = vmatmul.mubr.bf16.vlgmr.msra.gmra.mxu1 %v6597_v52 }
 0xcee   : > { %6866 = vmatmul.mubr.bf16.vlgmr.msra.gmra.mxu0 %v6599_v53 }
 0xdad   : > { %v8210_v54 = vpop.f32.mrf.mxu1 }
 0xdae   : > { %v8232_v55 = vpop.f32.mrf.mxu0 }
 0xdaf   : > { %v8211_v56 = vpop.f32.mrf.mxu1 }
 0xdb0   : > { %v8212_v39 = vadd.f32 %v8211_v56, %v8210_v54  ;;  %v8233_v57 = vpop.f32.mrf.mxu0 }
 0xdb1   : > { %v8234_v40 = vadd.f32 %v8233_v57, %v8232_v55  ;;  %v8213_v25 = vpop.f32.mrf.mxu1 }
 0xdb2   : > { %v8235_v58 = vpop.f32.mrf.mxu0 }
 0xdb3   : > { %v6868_v59 = vadd.f32 %v8234_v40, %v8212_v39  ;;  %v8214_v61 = vpop.f32.mrf.mxu1 }
 0xdb4   : > { %v8236_v46 = vpop.f32.mrf.mxu0 }
 0xdb5   : > { %v6873_v1 = vadd.f32 %v6868_v59, %v6382_v50 }
 0xdb7   : > { %v6881_v3 = vadd.f32 %v7954_v62, %v6873_v1 }
 0xdb9   : > { %6883 = vst.msk [vmem:[%s386_s16] sm:$0x7] %vm6882_vm1, %v6881_v3 }
 0xdba PF: > { %s23_s19 = sadd.s32 1, %s9103_s19  }
 0xdbb   : > { %p20_p4 = scmp.ge.s32.totalorder %s23_s19, 4  }
 0xdbd   :  { %22 = sbr.rel (!%p20_p4) target bundleno = 3 (0x3), region = 109 }

</bundles_post_ra>
